<compile_context>
chip_gen: v5e
topology: v5e:2x2
jax: 0.10.0
libtpu: 0.0.40
codegen_flags: <defaults>
</compile_context>

<pallas_src>
import functools

import jax
import jax.numpy as jnp
from jax import lax
from jax.experimental import pallas as pl
from jax.experimental.pallas import tpu as pltpu
import numpy as np


def _round_up(x, m):
    return (x + m - 1) // m * m


# --------------------------- generic tiled matmul ----------------------------

def _matmul_kernel(a_ref, b_ref, o_ref):
    o_ref[...] = jnp.dot(a_ref[...], b_ref[...],
                         preferred_element_type=jnp.float32).astype(o_ref.dtype)


def _matmul_bias_kernel(a_ref, b_ref, bias_ref, o_ref):
    acc = jnp.dot(a_ref[...], b_ref[...], preferred_element_type=jnp.float32)
    o_ref[...] = (acc + bias_ref[...]).astype(o_ref.dtype)


def pallas_matmul(a, b, bias=None, *, tm=256, tn=512, out_dtype=jnp.float32):
    """a:(M,K) @ b:(K,N) [+ bias:(N,)] -> (M,N). Pads internally to TPU tiles."""
    M, K = a.shape
    K2, N = b.shape
    assert K == K2
    tm = min(tm, _round_up(M, 8))
    tn = min(tn, _round_up(N, 128))
    Mp, Np, Kp = _round_up(M, tm), _round_up(N, tn), _round_up(K, 128)

    a_p = jnp.pad(a, ((0, Mp - M), (0, Kp - K))) if (Mp != M or Kp != K) else a
    b_p = jnp.pad(b, ((0, Kp - K), (0, Np - N))) if (Kp != K or Np != N) else b

    in_specs = [
        pl.BlockSpec((tm, Kp), lambda i, j: (i, 0)),
        pl.BlockSpec((Kp, tn), lambda i, j: (0, j)),
    ]
    args = [a_p, b_p]
    if bias is not None:
        bias_p = jnp.pad(bias.reshape(1, N), ((0, 0), (0, Np - N)))
        in_specs.append(pl.BlockSpec((1, tn), lambda i, j: (0, j)))
        args.append(bias_p)
        kernel = _matmul_bias_kernel
    else:
        kernel = _matmul_kernel

    out = pl.pallas_call(
        kernel,
        out_shape=jax.ShapeDtypeStruct((Mp, Np), out_dtype),
        grid_spec=pltpu.PrefetchScalarGridSpec(
            num_scalar_prefetch=0,
            grid=(Mp // tm, Np // tn),
            in_specs=in_specs,
            out_specs=pl.BlockSpec((tm, tn), lambda i, j: (i, j)),
        ),
        compiler_params=pltpu.CompilerParams(
            dimension_semantics=("parallel", "parallel"),
            vmem_limit_bytes=64 * 1024 * 1024,
        ),
    )(*args)
    if (Mp, Np) != (M, N):
        out = out[:M, :N]
    return out


# ------------------------- LSTM recurrence (per layer) ------------------------

def _lstm_recurrent_kernel(xg_ref, whh_t_ref, out_ref, h_scr, c_scr,
                           *, hidden_p, chunk):
    # (h, c) scratch persists across the (sequential, "arbitrary") time-chunk grid.
    @pl.when(pl.program_id(0) == 0)
    def _():
        h_scr[...] = jnp.zeros_like(h_scr)
        c_scr[...] = jnp.zeros_like(c_scr)

    H = hidden_p
    whh_t = whh_t_ref[...]                       # (Hp, 4Hp), already transposed

    def step(t, carry):
        h_prev, c_prev = carry
        # x-projection + bias were precomputed (hoisted); only the recurrent
        # matmul is left inside the serial loop.
        gates = xg_ref[t] + jnp.dot(h_prev, whh_t,
                                    preferred_element_type=jnp.float32)
        # Gate order i, f, g, o (PyTorch nn.LSTM); slices are 128-aligned (H=Hp).
        i_g = jax.nn.sigmoid(gates[:, 0 * H:1 * H])
        f_g = jax.nn.sigmoid(gates[:, 1 * H:2 * H])
        g_g = jnp.tanh(gates[:, 2 * H:3 * H])
        o_g = jax.nn.sigmoid(gates[:, 3 * H:4 * H])
        c_new = f_g * c_prev + i_g * g_g
        h_new = o_g * jnp.tanh(c_new)
        out_ref[t] = h_new.astype(out_ref.dtype)
        return h_new, c_new

    h_fin, c_fin = lax.fori_loop(0, chunk, step,
                                 (h_scr[...], c_scr[...]), unroll=True)
    h_scr[...] = h_fin
    c_scr[...] = c_fin


def _pack_gate_weight_t(w, h, h_pad, c, c_pad):
    """w:(4h, c) -> transposed, gate-blocked, zero-padded (c_pad, 4*h_pad)."""
    w4 = w.reshape(4, h, c)
    w4 = jnp.pad(w4, ((0, 0), (0, h_pad - h), (0, c_pad - c)))
    return jnp.transpose(w4, (2, 0, 1)).reshape(c_pad, 4 * h_pad)


def _pack_gate_bias(b, h, h_pad):
    b4 = b.reshape(4, h)
    return jnp.pad(b4, ((0, 0), (0, h_pad - h))).reshape(4 * h_pad)


def lstm_layer(x_p, w_ih, w_hh, bias, *, hidden, chunk):
    """One LSTM layer on padded time-major input.

    x_p: (Tp, Bp, Inp) f32, zero-padded (Tp % chunk == 0, Bp % 8 == 0,
         Inp % 128 == 0; valid input columns are [:w_ih.shape[1]]).
    Returns padded hidden sequence (Tp, Bp, Hp), Hp = round_up(hidden, 128);
    columns >= hidden are exactly zero, so layers chain without re-padding.
    """
    Tp, Bp, Inp = x_p.shape
    in_sz = w_ih.shape[1]
    Hp = _round_up(hidden, 128)

    # One-time weight repack (XLA glue): transposed + gate-blocked + zero-padded.
    w_ih_t = _pack_gate_weight_t(w_ih, hidden, Hp, in_sz, Inp)    # (Inp, 4Hp)
    w_hh_t = _pack_gate_weight_t(w_hh, hidden, Hp, hidden, Hp)    # (Hp, 4Hp)
    bias_p = _pack_gate_bias(bias, hidden, Hp)                    # (4Hp,)

    # (1) Hoisted input projection: dense MXU matmul over all T*B rows at once.
    xg = pallas_matmul(x_p.reshape(Tp * Bp, Inp), w_ih_t, bias=bias_p)
    xg = xg.reshape(Tp, Bp, 4 * Hp)

    # (2) Recurrence with the time loop inside the kernel (chunked grid).
    n_chunks = Tp // chunk
    flops = 2 * Tp * Bp * Hp * (4 * Hp) + 12 * Tp * Bp * 4 * Hp
    bytes_accessed = 4 * (xg.size + Tp * Bp * Hp + w_hh_t.size)
    kernel = functools.partial(_lstm_recurrent_kernel, hidden_p=Hp, chunk=chunk)
    # TODO(synk): for real AWD-LSTM sizes on v7x, cast resident weights to bf16
    # (keep f32 accumulation) to fit the 64 MiB VMEM budget.
    return pl.pallas_call(
        kernel,
        out_shape=jax.ShapeDtypeStruct((Tp, Bp, Hp), jnp.float32),
        grid_spec=pltpu.PrefetchScalarGridSpec(
            num_scalar_prefetch=0,
            grid=(n_chunks,),
            in_specs=[
                pl.BlockSpec((chunk, Bp, 4 * Hp), lambda c: (c, 0, 0)),  # xg chunk
                pl.BlockSpec((Hp, 4 * Hp), lambda c: (0, 0)),            # W_hh^T resident
            ],
            out_specs=pl.BlockSpec((chunk, Bp, Hp), lambda c: (c, 0, 0)),
            scratch_shapes=[
                pltpu.VMEM((Bp, Hp), jnp.float32),   # h carry
                pltpu.VMEM((Bp, Hp), jnp.float32),   # c carry
            ],
        ),
        compiler_params=pltpu.CompilerParams(
            # Time axis MUST stay sequential: (h, c) carry lives in scratch.
            dimension_semantics=("arbitrary",),
            vmem_limit_bytes=64 * 1024 * 1024,
        ),
        cost_estimate=pl.CostEstimate(
            flops=int(flops),
            transcendentals=int(5 * Tp * Bp * Hp),
            bytes_accessed=int(bytes_accessed),
        ),
    )(xg, w_hh_t)


# ------------------------------ full language model --------------------------

def init_params(key, n_tok, emb_sz, nhid, nlayers, initrange=0.1):
    keys = jax.random.split(key, 1 + 4 * nlayers)
    params = {}
    params["emb"] = jax.random.uniform(
        keys[0], (n_tok, emb_sz), jnp.float32, -initrange, initrange)
    lstms = []
    for l in range(nlayers):
        in_sz = emb_sz if l == 0 else nhid
        hid = nhid if l != nlayers - 1 else emb_sz
        k = 1.0 / np.sqrt(hid)
        kw = keys[1 + 4 * l: 1 + 4 * (l + 1)]
        w_ih = jax.random.uniform(kw[0], (4 * hid, in_sz), jnp.float32, -k, k)
        w_hh = jax.random.uniform(kw[1], (4 * hid, hid), jnp.float32, -k, k)
        b_ih = jax.random.uniform(kw[2], (4 * hid,), jnp.float32, -k, k)
        b_hh = jax.random.uniform(kw[3], (4 * hid,), jnp.float32, -k, k)
        lstms.append({"w_ih": w_ih, "w_hh": w_hh, "b": b_ih + b_hh})
    params["lstms"] = lstms
    return params


@functools.partial(jax.jit, static_argnames=("chunk",))
def language_model_forward(params, x_tokens, chunk=8):
    """x_tokens: (T, B) int32 token ids (time-major). Returns logits (T*B, n_tok)."""
    T, B = x_tokens.shape
    emb_w = params["emb"]                         # (V, E)
    V, E = emb_w.shape

    # Embedding gather stays in plain JAX (glue).
    # TODO(synk): EmbeddingDropout / LockedDropout / WeightDrop are identity in
    # eval mode and intentionally omitted.
    emb = jnp.take(emb_w, x_tokens, axis=0).astype(jnp.float32)   # (T, B, E)

    chunk = min(chunk, T)
    Tp = _round_up(T, chunk)
    Bp = _round_up(B, 8)
    Ep = _round_up(E, 128)
    h = jnp.pad(emb, ((0, Tp - T), (0, Bp - B), (0, Ep - E)))     # (Tp, Bp, Ep)

    for layer in params["lstms"]:
        hidden = layer["w_hh"].shape[1]
        h = lstm_layer(h, layer["w_ih"], layer["w_hh"], layer["b"],
                       hidden=hidden, chunk=chunk)

    # Last layer hidden size == emb_sz (tie_weights); drop T/B padding.
    h_flat = h[:T, :B, :].reshape(T * B, -1)      # (T*B, Ep), pad cols are zero

    # Tied decoder: logits = h @ E^T; transpose (lane-padded along E) done once
    # in the wrapper instead of inside the kernel.
    emb_t = jnp.pad(emb_w, ((0, 0), (0, Ep - E))).astype(jnp.float32).T   # (Ep, V)
    logits = pallas_matmul(h_flat, emb_t)         # (T*B, V)
    return logits


# ------------------------------ pure-JAX reference ---------------------------

def _lstm_ref(x, w_ih, w_hh, b):
    T, B, _ = x.shape
    H = w_hh.shape[1]

    def step(carry, xt):
        h, c = carry
        gates = xt @ w_ih.T + h @ w_hh.T + b
        i = jax.nn.sigmoid(gates[:, :H])
        f = jax.nn.sigmoid(gates[:, H:2 * H])
        g = jnp.tanh(gates[:, 2 * H:3 * H])
        o = jax.nn.sigmoid(gates[:, 3 * H:])
        c = f * c + i * g
        h = o * jnp.tanh(c)
        return (h, c), h

    init = (jnp.zeros((B, H), jnp.float32), jnp.zeros((B, H), jnp.float32))
    _, hs = lax.scan(step, init, x)
    return hs


def _forward_ref(params, x_tokens):
    h = jnp.take(params["emb"], x_tokens, axis=0).astype(jnp.float32)
    for layer in params["lstms"]:
        h = _lstm_ref(h, layer["w_ih"], layer["w_hh"], layer["b"])
    T, B, E = h.shape
    return h.reshape(T * B, E) @ params["emb"].T


# ---------------------------------- main --------------------------------------

if __name__ == "__main__":
    # Small, module-consistent shapes.
    n_tok = 16        # len(itos)
    emb_sz = 32
    nhid = 64
    nlayers = 3
    T, B = 8, 2       # seq_len, batch (time-major, PyTorch RNN convention)

    key = jax.random.PRNGKey(0)
    pkey, xkey = jax.random.split(key)
    params = init_params(pkey, n_tok, emb_sz, nhid, nlayers)
    x_tokens = jax.random.randint(xkey, (T, B), 0, n_tok, dtype=jnp.int32)

    logits = language_model_forward(params, x_tokens)
    logits = jax.block_until_ready(logits)
    assert logits.shape == (T * B, n_tok)

    ref = jax.block_until_ready(_forward_ref(params, x_tokens))
    np.testing.assert_allclose(np.asarray(logits), np.asarray(ref),
                               rtol=1e-4, atol=1e-4)

    print("KERNEL_OK")
</pallas_src>

<mosaic_0001>
module attributes {stable_mosaic.version = 11 : i64} {
  func.func @_matmul_bias_kernel(%arg0: i32, %arg1: i32, %arg2: memref<64x128xf32, #tpu.memory_space<vmem>>, %arg3: memref<128x512xf32, #tpu.memory_space<vmem>>, %arg4: memref<1x512xf32, #tpu.memory_space<vmem>>, %arg5: memref<64x512xf32, #tpu.memory_space<vmem>>) attributes {dimension_semantics = [#tpu.dimension_semantics<parallel>, #tpu.dimension_semantics<parallel>], iteration_bounds = array<i64: 1, 1>, scalar_prefetch = 0 : i64, scratch_operands = 0 : i64, tpu.core_type = #tpu.core_type<tc>, window_params = [{transform_indices = @transform_0, window_bounds = array<i64: 64, 128>}, {transform_indices = @transform_1, window_bounds = array<i64: 128, 512>}, {transform_indices = @transform_2, window_bounds = array<i64: 1, 512>}, {transform_indices = @transform_3, window_bounds = array<i64: 64, 512>}]} {
    %c0 = arith.constant 0 : index
    %c0_0 = arith.constant 0 : index
    %0 = vector.load %arg2[%c0, %c0_0] : memref<64x128xf32, #tpu.memory_space<vmem>>, vector<64x128xf32>
    %c0_1 = arith.constant 0 : index
    %c0_2 = arith.constant 0 : index
    %1 = vector.load %arg3[%c0_1, %c0_2] : memref<128x512xf32, #tpu.memory_space<vmem>>, vector<128x512xf32>
    %cst = arith.constant dense<0.000000e+00> : vector<64x512xf32>
    %2 = tpu.matmul %0, %1, %cst {dimension_numbers = #tpu.dot_dimension_numbers<[1], [0], [0], [1], [0, 0, 1, 1], [], []>} : vector<64x128xf32>, vector<128x512xf32>, vector<64x512xf32> -> vector<64x512xf32>
    %c0_3 = arith.constant 0 : index
    %c0_4 = arith.constant 0 : index
    %3 = vector.load %arg4[%c0_3, %c0_4] : memref<1x512xf32, #tpu.memory_space<vmem>>, vector<1x512xf32>
    %4 = vector.broadcast %3 : vector<1x512xf32> to vector<64x512xf32>
    %5 = arith.addf %2, %4 : vector<64x512xf32>
    %c0_5 = arith.constant 0 : index
    %c0_6 = arith.constant 0 : index
    %6 = vector.load %arg5[%c0_5, %c0_6] : memref<64x512xf32, #tpu.memory_space<vmem>>, vector<64x512xf32>
    tpu.vector_store %arg5[%c0_5, %c0_6], %5 {strides = array<i32>} : memref<64x512xf32, #tpu.memory_space<vmem>>, vector<64x512xf32>,
    return
  }
  func.func @transform_0(%arg0: i32, %arg1: i32) -> (i32, i32) {
    %c0_i32 = arith.constant 0 : i32
    %c0_i32_0 = arith.constant 0 : i32
    return %arg0, %c0_i32 : i32, i32
  }
  func.func @transform_1(%arg0: i32, %arg1: i32) -> (i32, i32) {
    %c0_i32 = arith.constant 0 : i32
    %c0_i32_0 = arith.constant 0 : i32
    return %c0_i32, %arg1 : i32, i32
  }
  func.func @transform_2(%arg0: i32, %arg1: i32) -> (i32, i32) {
    %c0_i32 = arith.constant 0 : i32
    %c0_i32_0 = arith.constant 0 : i32
    return %c0_i32, %arg1 : i32, i32
  }
  func.func @transform_3(%arg0: i32, %arg1: i32) -> (i32, i32) {
    %c0_i32 = arith.constant 0 : i32
    return %arg0, %arg1 : i32, i32
  }
}

module attributes {stable_mosaic.version = 11 : i64} {
  func.func @_lstm_recurrent_kernel(%arg0: i32, %arg1: memref<8x8x512xf32, #tpu.memory_space<vmem>>, %arg2: memref<128x512xf32, #tpu.memory_space<vmem>>, %arg3: memref<8x8x128xf32, #tpu.memory_space<vmem>>, %arg4: memref<8x128xf32, #tpu.memory_space<vmem>>, %arg5: memref<8x128xf32, #tpu.memory_space<vmem>>) attributes {dimension_semantics = [#tpu.dimension_semantics<arbitrary>], iteration_bounds = array<i64: 1>, scalar_prefetch = 0 : i64, scratch_operands = 2 : i64, tpu.core_type = #tpu.core_type<tc>, window_params = [{transform_indices = @transform_0, window_bounds = array<i64: 8, 8, 512>}, {pipeline_mode = #tpu.pipeline_mode<synchronous>, transform_indices = @transform_1, window_bounds = array<i64: 128, 512>}, {transform_indices = @transform_2, window_bounds = array<i64: 8, 8, 128>}]} {
    %c0_i32 = arith.constant 0 : i32
    %0 = arith.cmpi eq, %arg0, %c0_i32 : i32
    %1 = arith.extui %0 : i1 to i32
    %c0_i32_0 = arith.constant 0 : i32
    %2 = arith.cmpi ne, %1, %c0_i32_0 : i32
    scf.if %2 {
      %cst_74 = arith.constant 0.000000e+00 : f32
      %280 = vector.broadcast %cst_74 : f32 to vector<8x128xf32>
      %c0_75 = arith.constant 0 : index
      %c0_76 = arith.constant 0 : index
      %281 = vector.load %arg4[%c0_75, %c0_76] : memref<8x128xf32, #tpu.memory_space<vmem>>, vector<8x128xf32>
      tpu.vector_store %arg4[%c0_75, %c0_76], %280 {strides = array<i32>} : memref<8x128xf32, #tpu.memory_space<vmem>>, vector<8x128xf32>,
      %cst_77 = arith.constant 0.000000e+00 : f32
      %282 = vector.broadcast %cst_77 : f32 to vector<8x128xf32>
      %c0_78 = arith.constant 0 : index
      %c0_79 = arith.constant 0 : index
      %283 = vector.load %arg5[%c0_78, %c0_79] : memref<8x128xf32, #tpu.memory_space<vmem>>, vector<8x128xf32>
      tpu.vector_store %arg5[%c0_78, %c0_79], %282 {strides = array<i32>} : memref<8x128xf32, #tpu.memory_space<vmem>>, vector<8x128xf32>,
    } else {
    }
    %c0 = arith.constant 0 : index
    %c0_1 = arith.constant 0 : index
    %3 = vector.load %arg2[%c0, %c0_1] : memref<128x512xf32, #tpu.memory_space<vmem>>, vector<128x512xf32>
    %c0_2 = arith.constant 0 : index
    %c0_3 = arith.constant 0 : index
    %4 = vector.load %arg4[%c0_2, %c0_3] : memref<8x128xf32, #tpu.memory_space<vmem>>, vector<8x128xf32>
    %c0_4 = arith.constant 0 : index
    %c0_5 = arith.constant 0 : index
    %5 = vector.load %arg5[%c0_4, %c0_5] : memref<8x128xf32, #tpu.memory_space<vmem>>, vector<8x128xf32>
    %c0_i32_6 = arith.constant 0 : i32
    %6 = arith.index_cast %c0_i32_6 : i32 to index
    %c0_7 = arith.constant 0 : index
    %c0_8 = arith.constant 0 : index
    %7 = vector.load %arg1[%6, %c0_7, %c0_8] : memref<8x8x512xf32, #tpu.memory_space<vmem>>, vector<1x8x512xf32>
    %8 = vector.shape_cast %7 : vector<1x8x512xf32> to vector<8x512xf32>
    %cst = arith.constant dense<0.000000e+00> : vector<8x512xf32>
    %9 = tpu.matmul %4, %3, %cst {dimension_numbers = #tpu.dot_dimension_numbers<[1], [0], [0], [1], [0, 0, 1, 1], [], []>} : vector<8x128xf32>, vector<128x512xf32>, vector<8x512xf32> -> vector<8x512xf32>
    %10 = arith.addf %8, %9 : vector<8x512xf32>
    %11 = vector.extract_strided_slice %10 {offsets = [0, 0], sizes = [8, 128], strides = [1, 1]} : vector<8x512xf32> to vector<8x128xf32>
    %12 = arith.negf %11 : vector<8x128xf32>
    %13 = math.exp %12 : vector<8x128xf32>
    %cst_9 = arith.constant 1.000000e+00 : f32
    %14 = vector.broadcast %cst_9 : f32 to vector<8x128xf32>
    %15 = arith.addf %14, %13 : vector<8x128xf32>
    %16 = arith.divf %14, %15 : vector<8x128xf32>
    %17 = vector.extract_strided_slice %10 {offsets = [0, 128], sizes = [8, 128], strides = [1, 1]} : vector<8x512xf32> to vector<8x128xf32>
    %18 = arith.negf %17 : vector<8x128xf32>
    %19 = math.exp %18 : vector<8x128xf32>
    %cst_10 = arith.constant 1.000000e+00 : f32
    %20 = vector.broadcast %cst_10 : f32 to vector<8x128xf32>
    %21 = arith.addf %20, %19 : vector<8x128xf32>
    %22 = arith.divf %20, %21 : vector<8x128xf32>
    %23 = vector.extract_strided_slice %10 {offsets = [0, 256], sizes = [8, 128], strides = [1, 1]} : vector<8x512xf32> to vector<8x128xf32>
    %24 = math.tanh %23 : vector<8x128xf32>
    %25 = vector.extract_strided_slice %10 {offsets = [0, 384], sizes = [8, 128], strides = [1, 1]} : vector<8x512xf32> to vector<8x128xf32>
    %26 = arith.negf %25 : vector<8x128xf32>
    %27 = math.exp %26 : vector<8x128xf32>
    %cst_11 = arith.constant 1.000000e+00 : f32
    %28 = vector.broadcast %cst_11 : f32 to vector<8x128xf32>
    %29 = arith.addf %28, %27 : vector<8x128xf32>
    %30 = arith.divf %28, %29 : vector<8x128xf32>
    %31 = arith.mulf %22, %5 : vector<8x128xf32>
    %32 = arith.mulf %16, %24 : vector<8x128xf32>
    %33 = arith.addf %31, %32 : vector<8x128xf32>
    %34 = math.tanh %33 : vector<8x128xf32>
    %35 = arith.mulf %30, %34 : vector<8x128xf32>
    %36 = arith.index_cast %c0_i32_6 : i32 to index
    %c0_12 = arith.constant 0 : index
    %c0_13 = arith.constant 0 : index
    %37 = vector.load %arg3[%36, %c0_12, %c0_13] : memref<8x8x128xf32, #tpu.memory_space<vmem>>, vector<1x8x128xf32>
    %38 = vector.shape_cast %37 : vector<1x8x128xf32> to vector<8x128xf32>
    %39 = vector.shape_cast %35 : vector<8x128xf32> to vector<1x8x128xf32>
    tpu.vector_store %arg3[%36, %c0_12, %c0_13], %39 {strides = array<i32>} : memref<8x8x128xf32, #tpu.memory_space<vmem>>, vector<1x8x128xf32>,
    %c1_i32 = arith.constant 1 : i32
    %40 = arith.index_cast %c1_i32 : i32 to index
    %c0_14 = arith.constant 0 : index
    %c0_15 = arith.constant 0 : index
    %41 = vector.load %arg1[%40, %c0_14, %c0_15] : memref<8x8x512xf32, #tpu.memory_space<vmem>>, vector<1x8x512xf32>
    %42 = vector.shape_cast %41 : vector<1x8x512xf32> to vector<8x512xf32>
    %cst_16 = arith.constant dense<0.000000e+00> : vector<8x512xf32>
    %43 = tpu.matmul %35, %3, %cst_16 {dimension_numbers = #tpu.dot_dimension_numbers<[1], [0], [0], [1], [0, 0, 1, 1], [], []>} : vector<8x128xf32>, vector<128x512xf32>, vector<8x512xf32> -> vector<8x512xf32>
    %44 = arith.addf %42, %43 : vector<8x512xf32>
    %45 = vector.extract_strided_slice %44 {offsets = [0, 0], sizes = [8, 128], strides = [1, 1]} : vector<8x512xf32> to vector<8x128xf32>
    %46 = arith.negf %45 : vector<8x128xf32>
    %47 = math.exp %46 : vector<8x128xf32>
    %cst_17 = arith.constant 1.000000e+00 : f32
    %48 = vector.broadcast %cst_17 : f32 to vector<8x128xf32>
    %49 = arith.addf %48, %47 : vector<8x128xf32>
    %50 = arith.divf %48, %49 : vector<8x128xf32>
    %51 = vector.extract_strided_slice %44 {offsets = [0, 128], sizes = [8, 128], strides = [1, 1]} : vector<8x512xf32> to vector<8x128xf32>
    %52 = arith.negf %51 : vector<8x128xf32>
    %53 = math.exp %52 : vector<8x128xf32>
    %cst_18 = arith.constant 1.000000e+00 : f32
    %54 = vector.broadcast %cst_18 : f32 to vector<8x128xf32>
    %55 = arith.addf %54, %53 : vector<8x128xf32>
    %56 = arith.divf %54, %55 : vector<8x128xf32>
    %57 = vector.extract_strided_slice %44 {offsets = [0, 256], sizes = [8, 128], strides = [1, 1]} : vector<8x512xf32> to vector<8x128xf32>
    %58 = math.tanh %57 : vector<8x128xf32>
    %59 = vector.extract_strided_slice %44 {offsets = [0, 384], sizes = [8, 128], strides = [1, 1]} : vector<8x512xf32> to vector<8x128xf32>
    %60 = arith.negf %59 : vector<8x128xf32>
    %61 = math.exp %60 : vector<8x128xf32>
    %cst_19 = arith.constant 1.000000e+00 : f32
    %62 = vector.broadcast %cst_19 : f32 to vector<8x128xf32>
    %63 = arith.addf %62, %61 : vector<8x128xf32>
    %64 = arith.divf %62, %63 : vector<8x128xf32>
    %65 = arith.mulf %56, %33 : vector<8x128xf32>
    %66 = arith.mulf %50, %58 : vector<8x128xf32>
    %67 = arith.addf %65, %66 : vector<8x128xf32>
    %68 = math.tanh %67 : vector<8x128xf32>
    %69 = arith.mulf %64, %68 : vector<8x128xf32>
    %70 = arith.index_cast %c1_i32 : i32 to index
    %c0_20 = arith.constant 0 : index
    %c0_21 = arith.constant 0 : index
    %71 = vector.load %arg3[%70, %c0_20, %c0_21] : memref<8x8x128xf32, #tpu.memory_space<vmem>>, vector<1x8x128xf32>
    %72 = vector.shape_cast %71 : vector<1x8x128xf32> to vector<8x128xf32>
    %73 = vector.shape_cast %69 : vector<8x128xf32> to vector<1x8x128xf32>
    tpu.vector_store %arg3[%70, %c0_20, %c0_21], %73 {strides = array<i32>} : memref<8x8x128xf32, #tpu.memory_space<vmem>>, vector<1x8x128xf32>,
    %c2_i32 = arith.constant 2 : i32
    %74 = arith.index_cast %c2_i32 : i32 to index
    %c0_22 = arith.constant 0 : index
    %c0_23 = arith.constant 0 : index
    %75 = vector.load %arg1[%74, %c0_22, %c0_23] : memref<8x8x512xf32, #tpu.memory_space<vmem>>, vector<1x8x512xf32>
    %76 = vector.shape_cast %75 : vector<1x8x512xf32> to vector<8x512xf32>
    %cst_24 = arith.constant dense<0.000000e+00> : vector<8x512xf32>
    %77 = tpu.matmul %69, %3, %cst_24 {dimension_numbers = #tpu.dot_dimension_numbers<[1], [0], [0], [1], [0, 0, 1, 1], [], []>} : vector<8x128xf32>, vector<128x512xf32>, vector<8x512xf32> -> vector<8x512xf32>
    %78 = arith.addf %76, %77 : vector<8x512xf32>
    %79 = vector.extract_strided_slice %78 {offsets = [0, 0], sizes = [8, 128], strides = [1, 1]} : vector<8x512xf32> to vector<8x128xf32>
    %80 = arith.negf %79 : vector<8x128xf32>
    %81 = math.exp %80 : vector<8x128xf32>
    %cst_25 = arith.constant 1.000000e+00 : f32
    %82 = vector.broadcast %cst_25 : f32 to vector<8x128xf32>
    %83 = arith.addf %82, %81 : vector<8x128xf32>
    %84 = arith.divf %82, %83 : vector<8x128xf32>
    %85 = vector.extract_strided_slice %78 {offsets = [0, 128], sizes = [8, 128], strides = [1, 1]} : vector<8x512xf32> to vector<8x128xf32>
    %86 = arith.negf %85 : vector<8x128xf32>
    %87 = math.exp %86 : vector<8x128xf32>
    %cst_26 = arith.constant 1.000000e+00 : f32
    %88 = vector.broadcast %cst_26 : f32 to vector<8x128xf32>
    %89 = arith.addf %88, %87 : vector<8x128xf32>
    %90 = arith.divf %88, %89 : vector<8x128xf32>
    %91 = vector.extract_strided_slice %78 {offsets = [0, 256], sizes = [8, 128], strides = [1, 1]} : vector<8x512xf32> to vector<8x128xf32>
    %92 = math.tanh %91 : vector<8x128xf32>
    %93 = vector.extract_strided_slice %78 {offsets = [0, 384], sizes = [8, 128], strides = [1, 1]} : vector<8x512xf32> to vector<8x128xf32>
    %94 = arith.negf %93 : vector<8x128xf32>
    %95 = math.exp %94 : vector<8x128xf32>
    %cst_27 = arith.constant 1.000000e+00 : f32
    %96 = vector.broadcast %cst_27 : f32 to vector<8x128xf32>
    %97 = arith.addf %96, %95 : vector<8x128xf32>
    %98 = arith.divf %96, %97 : vector<8x128xf32>
    %99 = arith.mulf %90, %67 : vector<8x128xf32>
    %100 = arith.mulf %84, %92 : vector<8x128xf32>
    %101 = arith.addf %99, %100 : vector<8x128xf32>
    %102 = math.tanh %101 : vector<8x128xf32>
    %103 = arith.mulf %98, %102 : vector<8x128xf32>
    %104 = arith.index_cast %c2_i32 : i32 to index
    %c0_28 = arith.constant 0 : index
    %c0_29 = arith.constant 0 : index
    %105 = vector.load %arg3[%104, %c0_28, %c0_29] : memref<8x8x128xf32, #tpu.memory_space<vmem>>, vector<1x8x128xf32>
    %106 = vector.shape_cast %105 : vector<1x8x128xf32> to vector<8x128xf32>
    %107 = vector.shape_cast %103 : vector<8x128xf32> to vector<1x8x128xf32>
    tpu.vector_store %arg3[%104, %c0_28, %c0_29], %107 {strides = array<i32>} : memref<8x8x128xf32, #tpu.memory_space<vmem>>, vector<1x8x128xf32>,
    %c3_i32 = arith.constant 3 : i32
    %108 = arith.index_cast %c3_i32 : i32 to index
    %c0_30 = arith.constant 0 : index
    %c0_31 = arith.constant 0 : index
    %109 = vector.load %arg1[%108, %c0_30, %c0_31] : memref<8x8x512xf32, #tpu.memory_space<vmem>>, vector<1x8x512xf32>
    %110 = vector.shape_cast %109 : vector<1x8x512xf32> to vector<8x512xf32>
    %cst_32 = arith.constant dense<0.000000e+00> : vector<8x512xf32>
    %111 = tpu.matmul %103, %3, %cst_32 {dimension_numbers = #tpu.dot_dimension_numbers<[1], [0], [0], [1], [0, 0, 1, 1], [], []>} : vector<8x128xf32>, vector<128x512xf32>, vector<8x512xf32> -> vector<8x512xf32>
    %112 = arith.addf %110, %111 : vector<8x512xf32>
    %113 = vector.extract_strided_slice %112 {offsets = [0, 0], sizes = [8, 128], strides = [1, 1]} : vector<8x512xf32> to vector<8x128xf32>
    %114 = arith.negf %113 : vector<8x128xf32>
    %115 = math.exp %114 : vector<8x128xf32>
    %cst_33 = arith.constant 1.000000e+00 : f32
    %116 = vector.broadcast %cst_33 : f32 to vector<8x128xf32>
    %117 = arith.addf %116, %115 : vector<8x128xf32>
    %118 = arith.divf %116, %117 : vector<8x128xf32>
    %119 = vector.extract_strided_slice %112 {offsets = [0, 128], sizes = [8, 128], strides = [1, 1]} : vector<8x512xf32> to vector<8x128xf32>
    %120 = arith.negf %119 : vector<8x128xf32>
    %121 = math.exp %120 : vector<8x128xf32>
    %cst_34 = arith.constant 1.000000e+00 : f32
    %122 = vector.broadcast %cst_34 : f32 to vector<8x128xf32>
    %123 = arith.addf %122, %121 : vector<8x128xf32>
    %124 = arith.divf %122, %123 : vector<8x128xf32>
    %125 = vector.extract_strided_slice %112 {offsets = [0, 256], sizes = [8, 128], strides = [1, 1]} : vector<8x512xf32> to vector<8x128xf32>
    %126 = math.tanh %125 : vector<8x128xf32>
    %127 = vector.extract_strided_slice %112 {offsets = [0, 384], sizes = [8, 128], strides = [1, 1]} : vector<8x512xf32> to vector<8x128xf32>
    %128 = arith.negf %127 : vector<8x128xf32>
    %129 = math.exp %128 : vector<8x128xf32>
    %cst_35 = arith.constant 1.000000e+00 : f32
    %130 = vector.broadcast %cst_35 : f32 to vector<8x128xf32>
    %131 = arith.addf %130, %129 : vector<8x128xf32>
    %132 = arith.divf %130, %131 : vector<8x128xf32>
    %133 = arith.mulf %124, %101 : vector<8x128xf32>
    %134 = arith.mulf %118, %126 : vector<8x128xf32>
    %135 = arith.addf %133, %134 : vector<8x128xf32>
    %136 = math.tanh %135 : vector<8x128xf32>
    %137 = arith.mulf %132, %136 : vector<8x128xf32>
    %138 = arith.index_cast %c3_i32 : i32 to index
    %c0_36 = arith.constant 0 : index
    %c0_37 = arith.constant 0 : index
    %139 = vector.load %arg3[%138, %c0_36, %c0_37] : memref<8x8x128xf32, #tpu.memory_space<vmem>>, vector<1x8x128xf32>
    %140 = vector.shape_cast %139 : vector<1x8x128xf32> to vector<8x128xf32>
    %141 = vector.shape_cast %137 : vector<8x128xf32> to vector<1x8x128xf32>
    tpu.vector_store %arg3[%138, %c0_36, %c0_37], %141 {strides = array<i32>} : memref<8x8x128xf32, #tpu.memory_space<vmem>>, vector<1x8x128xf32>,
    %c4_i32 = arith.constant 4 : i32
    %142 = arith.index_cast %c4_i32 : i32 to index
    %c0_38 = arith.constant 0 : index
    %c0_39 = arith.constant 0 : index
    %143 = vector.load %arg1[%142, %c0_38, %c0_39] : memref<8x8x512xf32, #tpu.memory_space<vmem>>, vector<1x8x512xf32>
    %144 = vector.shape_cast %143 : vector<1x8x512xf32> to vector<8x512xf32>
    %cst_40 = arith.constant dense<0.000000e+00> : vector<8x512xf32>
    %145 = tpu.matmul %137, %3, %cst_40 {dimension_numbers = #tpu.dot_dimension_numbers<[1], [0], [0], [1], [0, 0, 1, 1], [], []>} : vector<8x128xf32>, vector<128x512xf32>, vector<8x512xf32> -> vector<8x512xf32>
    %146 = arith.addf %144, %145 : vector<8x512xf32>
    %147 = vector.extract_strided_slice %146 {offsets = [0, 0], sizes = [8, 128], strides = [1, 1]} : vector<8x512xf32> to vector<8x128xf32>
    %148 = arith.negf %147 : vector<8x128xf32>
    %149 = math.exp %148 : vector<8x128xf32>
    %cst_41 = arith.constant 1.000000e+00 : f32
    %150 = vector.broadcast %cst_41 : f32 to vector<8x128xf32>
    %151 = arith.addf %150, %149 : vector<8x128xf32>
    %152 = arith.divf %150, %151 : vector<8x128xf32>
    %153 = vector.extract_strided_slice %146 {offsets = [0, 128], sizes = [8, 128], strides = [1, 1]} : vector<8x512xf32> to vector<8x128xf32>
    %154 = arith.negf %153 : vector<8x128xf32>
    %155 = math.exp %154 : vector<8x128xf32>
    %cst_42 = arith.constant 1.000000e+00 : f32
    %156 = vector.broadcast %cst_42 : f32 to vector<8x128xf32>
    %157 = arith.addf %156, %155 : vector<8x128xf32>
    %158 = arith.divf %156, %157 : vector<8x128xf32>
    %159 = vector.extract_strided_slice %146 {offsets = [0, 256], sizes = [8, 128], strides = [1, 1]} : vector<8x512xf32> to vector<8x128xf32>
    %160 = math.tanh %159 : vector<8x128xf32>
    %161 = vector.extract_strided_slice %146 {offsets = [0, 384], sizes = [8, 128], strides = [1, 1]} : vector<8x512xf32> to vector<8x128xf32>
    %162 = arith.negf %161 : vector<8x128xf32>
    %163 = math.exp %162 : vector<8x128xf32>
    %cst_43 = arith.constant 1.000000e+00 : f32
    %164 = vector.broadcast %cst_43 : f32 to vector<8x128xf32>
    %165 = arith.addf %164, %163 : vector<8x128xf32>
    %166 = arith.divf %164, %165 : vector<8x128xf32>
    %167 = arith.mulf %158, %135 : vector<8x128xf32>
    %168 = arith.mulf %152, %160 : vector<8x128xf32>
    %169 = arith.addf %167, %168 : vector<8x128xf32>
    %170 = math.tanh %169 : vector<8x128xf32>
    %171 = arith.mulf %166, %170 : vector<8x128xf32>
    %172 = arith.index_cast %c4_i32 : i32 to index
    %c0_44 = arith.constant 0 : index
    %c0_45 = arith.constant 0 : index
    %173 = vector.load %arg3[%172, %c0_44, %c0_45] : memref<8x8x128xf32, #tpu.memory_space<vmem>>, vector<1x8x128xf32>
    %174 = vector.shape_cast %173 : vector<1x8x128xf32> to vector<8x128xf32>
    %175 = vector.shape_cast %171 : vector<8x128xf32> to vector<1x8x128xf32>
    tpu.vector_store %arg3[%172, %c0_44, %c0_45], %175 {strides = array<i32>} : memref<8x8x128xf32, #tpu.memory_space<vmem>>, vector<1x8x128xf32>,
    %c5_i32 = arith.constant 5 : i32
    %176 = arith.index_cast %c5_i32 : i32 to index
    %c0_46 = arith.constant 0 : index
    %c0_47 = arith.constant 0 : index
    %177 = vector.load %arg1[%176, %c0_46, %c0_47] : memref<8x8x512xf32, #tpu.memory_space<vmem>>, vector<1x8x512xf32>
    %178 = vector.shape_cast %177 : vector<1x8x512xf32> to vector<8x512xf32>
    %cst_48 = arith.constant dense<0.000000e+00> : vector<8x512xf32>
    %179 = tpu.matmul %171, %3, %cst_48 {dimension_numbers = #tpu.dot_dimension_numbers<[1], [0], [0], [1], [0, 0, 1, 1], [], []>} : vector<8x128xf32>, vector<128x512xf32>, vector<8x512xf32> -> vector<8x512xf32>
    %180 = arith.addf %178, %179 : vector<8x512xf32>
    %181 = vector.extract_strided_slice %180 {offsets = [0, 0], sizes = [8, 128], strides = [1, 1]} : vector<8x512xf32> to vector<8x128xf32>
    %182 = arith.negf %181 : vector<8x128xf32>
    %183 = math.exp %182 : vector<8x128xf32>
    %cst_49 = arith.constant 1.000000e+00 : f32
    %184 = vector.broadcast %cst_49 : f32 to vector<8x128xf32>
    %185 = arith.addf %184, %183 : vector<8x128xf32>
    %186 = arith.divf %184, %185 : vector<8x128xf32>
    %187 = vector.extract_strided_slice %180 {offsets = [0, 128], sizes = [8, 128], strides = [1, 1]} : vector<8x512xf32> to vector<8x128xf32>
    %188 = arith.negf %187 : vector<8x128xf32>
    %189 = math.exp %188 : vector<8x128xf32>
    %cst_50 = arith.constant 1.000000e+00 : f32
    %190 = vector.broadcast %cst_50 : f32 to vector<8x128xf32>
    %191 = arith.addf %190, %189 : vector<8x128xf32>
    %192 = arith.divf %190, %191 : vector<8x128xf32>
    %193 = vector.extract_strided_slice %180 {offsets = [0, 256], sizes = [8, 128], strides = [1, 1]} : vector<8x512xf32> to vector<8x128xf32>
    %194 = math.tanh %193 : vector<8x128xf32>
    %195 = vector.extract_strided_slice %180 {offsets = [0, 384], sizes = [8, 128], strides = [1, 1]} : vector<8x512xf32> to vector<8x128xf32>
    %196 = arith.negf %195 : vector<8x128xf32>
    %197 = math.exp %196 : vector<8x128xf32>
    %cst_51 = arith.constant 1.000000e+00 : f32
    %198 = vector.broadcast %cst_51 : f32 to vector<8x128xf32>
    %199 = arith.addf %198, %197 : vector<8x128xf32>
    %200 = arith.divf %198, %199 : vector<8x128xf32>
    %201 = arith.mulf %192, %169 : vector<8x128xf32>
    %202 = arith.mulf %186, %194 : vector<8x128xf32>
    %203 = arith.addf %201, %202 : vector<8x128xf32>
    %204 = math.tanh %203 : vector<8x128xf32>
    %205 = arith.mulf %200, %204 : vector<8x128xf32>
    %206 = arith.index_cast %c5_i32 : i32 to index
    %c0_52 = arith.constant 0 : index
    %c0_53 = arith.constant 0 : index
    %207 = vector.load %arg3[%206, %c0_52, %c0_53] : memref<8x8x128xf32, #tpu.memory_space<vmem>>, vector<1x8x128xf32>
    %208 = vector.shape_cast %207 : vector<1x8x128xf32> to vector<8x128xf32>
    %209 = vector.shape_cast %205 : vector<8x128xf32> to vector<1x8x128xf32>
    tpu.vector_store %arg3[%206, %c0_52, %c0_53], %209 {strides = array<i32>} : memref<8x8x128xf32, #tpu.memory_space<vmem>>, vector<1x8x128xf32>,
    %c6_i32 = arith.constant 6 : i32
    %210 = arith.index_cast %c6_i32 : i32 to index
    %c0_54 = arith.constant 0 : index
    %c0_55 = arith.constant 0 : index
    %211 = vector.load %arg1[%210, %c0_54, %c0_55] : memref<8x8x512xf32, #tpu.memory_space<vmem>>, vector<1x8x512xf32>
    %212 = vector.shape_cast %211 : vector<1x8x512xf32> to vector<8x512xf32>
    %cst_56 = arith.constant dense<0.000000e+00> : vector<8x512xf32>
    %213 = tpu.matmul %205, %3, %cst_56 {dimension_numbers = #tpu.dot_dimension_numbers<[1], [0], [0], [1], [0, 0, 1, 1], [], []>} : vector<8x128xf32>, vector<128x512xf32>, vector<8x512xf32> -> vector<8x512xf32>
    %214 = arith.addf %212, %213 : vector<8x512xf32>
    %215 = vector.extract_strided_slice %214 {offsets = [0, 0], sizes = [8, 128], strides = [1, 1]} : vector<8x512xf32> to vector<8x128xf32>
    %216 = arith.negf %215 : vector<8x128xf32>
    %217 = math.exp %216 : vector<8x128xf32>
    %cst_57 = arith.constant 1.000000e+00 : f32
    %218 = vector.broadcast %cst_57 : f32 to vector<8x128xf32>
    %219 = arith.addf %218, %217 : vector<8x128xf32>
    %220 = arith.divf %218, %219 : vector<8x128xf32>
    %221 = vector.extract_strided_slice %214 {offsets = [0, 128], sizes = [8, 128], strides = [1, 1]} : vector<8x512xf32> to vector<8x128xf32>
    %222 = arith.negf %221 : vector<8x128xf32>
    %223 = math.exp %222 : vector<8x128xf32>
    %cst_58 = arith.constant 1.000000e+00 : f32
    %224 = vector.broadcast %cst_58 : f32 to vector<8x128xf32>
    %225 = arith.addf %224, %223 : vector<8x128xf32>
    %226 = arith.divf %224, %225 : vector<8x128xf32>
    %227 = vector.extract_strided_slice %214 {offsets = [0, 256], sizes = [8, 128], strides = [1, 1]} : vector<8x512xf32> to vector<8x128xf32>
    %228 = math.tanh %227 : vector<8x128xf32>
    %229 = vector.extract_strided_slice %214 {offsets = [0, 384], sizes = [8, 128], strides = [1, 1]} : vector<8x512xf32> to vector<8x128xf32>
    %230 = arith.negf %229 : vector<8x128xf32>
    %231 = math.exp %230 : vector<8x128xf32>
    %cst_59 = arith.constant 1.000000e+00 : f32
    %232 = vector.broadcast %cst_59 : f32 to vector<8x128xf32>
    %233 = arith.addf %232, %231 : vector<8x128xf32>
    %234 = arith.divf %232, %233 : vector<8x128xf32>
    %235 = arith.mulf %226, %203 : vector<8x128xf32>
    %236 = arith.mulf %220, %228 : vector<8x128xf32>
    %237 = arith.addf %235, %236 : vector<8x128xf32>
    %238 = math.tanh %237 : vector<8x128xf32>
    %239 = arith.mulf %234, %238 : vector<8x128xf32>
    %240 = arith.index_cast %c6_i32 : i32 to index
    %c0_60 = arith.constant 0 : index
    %c0_61 = arith.constant 0 : index
    %241 = vector.load %arg3[%240, %c0_60, %c0_61] : memref<8x8x128xf32, #tpu.memory_space<vmem>>, vector<1x8x128xf32>
    %242 = vector.shape_cast %241 : vector<1x8x128xf32> to vector<8x128xf32>
    %243 = vector.shape_cast %239 : vector<8x128xf32> to vector<1x8x128xf32>
    tpu.vector_store %arg3[%240, %c0_60, %c0_61], %243 {strides = array<i32>} : memref<8x8x128xf32, #tpu.memory_space<vmem>>, vector<1x8x128xf32>,
    %c7_i32 = arith.constant 7 : i32
    %244 = arith.index_cast %c7_i32 : i32 to index
    %c0_62 = arith.constant 0 : index
    %c0_63 = arith.constant 0 : index
    %245 = vector.load %arg1[%244, %c0_62, %c0_63] : memref<8x8x512xf32, #tpu.memory_space<vmem>>, vector<1x8x512xf32>
    %246 = vector.shape_cast %245 : vector<1x8x512xf32> to vector<8x512xf32>
    %cst_64 = arith.constant dense<0.000000e+00> : vector<8x512xf32>
    %247 = tpu.matmul %239, %3, %cst_64 {dimension_numbers = #tpu.dot_dimension_numbers<[1], [0], [0], [1], [0, 0, 1, 1], [], []>} : vector<8x128xf32>, vector<128x512xf32>, vector<8x512xf32> -> vector<8x512xf32>
    %248 = arith.addf %246, %247 : vector<8x512xf32>
    %249 = vector.extract_strided_slice %248 {offsets = [0, 0], sizes = [8, 128], strides = [1, 1]} : vector<8x512xf32> to vector<8x128xf32>
    %250 = arith.negf %249 : vector<8x128xf32>
    %251 = math.exp %250 : vector<8x128xf32>
    %cst_65 = arith.constant 1.000000e+00 : f32
    %252 = vector.broadcast %cst_65 : f32 to vector<8x128xf32>
    %253 = arith.addf %252, %251 : vector<8x128xf32>
    %254 = arith.divf %252, %253 : vector<8x128xf32>
    %255 = vector.extract_strided_slice %248 {offsets = [0, 128], sizes = [8, 128], strides = [1, 1]} : vector<8x512xf32> to vector<8x128xf32>
    %256 = arith.negf %255 : vector<8x128xf32>
    %257 = math.exp %256 : vector<8x128xf32>
    %cst_66 = arith.constant 1.000000e+00 : f32
    %258 = vector.broadcast %cst_66 : f32 to vector<8x128xf32>
    %259 = arith.addf %258, %257 : vector<8x128xf32>
    %260 = arith.divf %258, %259 : vector<8x128xf32>
    %261 = vector.extract_strided_slice %248 {offsets = [0, 256], sizes = [8, 128], strides = [1, 1]} : vector<8x512xf32> to vector<8x128xf32>
    %262 = math.tanh %261 : vector<8x128xf32>
    %263 = vector.extract_strided_slice %248 {offsets = [0, 384], sizes = [8, 128], strides = [1, 1]} : vector<8x512xf32> to vector<8x128xf32>
    %264 = arith.negf %263 : vector<8x128xf32>
    %265 = math.exp %264 : vector<8x128xf32>
    %cst_67 = arith.constant 1.000000e+00 : f32
    %266 = vector.broadcast %cst_67 : f32 to vector<8x128xf32>
    %267 = arith.addf %266, %265 : vector<8x128xf32>
    %268 = arith.divf %266, %267 : vector<8x128xf32>
    %269 = arith.mulf %260, %237 : vector<8x128xf32>
    %270 = arith.mulf %254, %262 : vector<8x128xf32>
    %271 = arith.addf %269, %270 : vector<8x128xf32>
    %272 = math.tanh %271 : vector<8x128xf32>
    %273 = arith.mulf %268, %272 : vector<8x128xf32>
    %274 = arith.index_cast %c7_i32 : i32 to index
    %c0_68 = arith.constant 0 : index
    %c0_69 = arith.constant 0 : index
    %275 = vector.load %arg3[%274, %c0_68, %c0_69] : memref<8x8x128xf32, #tpu.memory_space<vmem>>, vector<1x8x128xf32>
    %276 = vector.shape_cast %275 : vector<1x8x128xf32> to vector<8x128xf32>
    %277 = vector.shape_cast %273 : vector<8x128xf32> to vector<1x8x128xf32>
    tpu.vector_store %arg3[%274, %c0_68, %c0_69], %277 {strides = array<i32>} : memref<8x8x128xf32, #tpu.memory_space<vmem>>, vector<1x8x128xf32>,
    %c8_i32 = arith.constant 8 : i32
    %c0_70 = arith.constant 0 : index
    %c0_71 = arith.constant 0 : index
    %278 = vector.load %arg4[%c0_70, %c0_71] : memref<8x128xf32, #tpu.memory_space<vmem>>, vector<8x128xf32>
    tpu.vector_store %arg4[%c0_70, %c0_71], %273 {strides = array<i32>} : memref<8x128xf32, #tpu.memory_space<vmem>>, vector<8x128xf32>,
    %c0_72 = arith.constant 0 : index
    %c0_73 = arith.constant 0 : index
    %279 = vector.load %arg5[%c0_72, %c0_73] : memref<8x128xf32, #tpu.memory_space<vmem>>, vector<8x128xf32>
    tpu.vector_store %arg5[%c0_72, %c0_73], %271 {strides = array<i32>} : memref<8x128xf32, #tpu.memory_space<vmem>>, vector<8x128xf32>,
    return
  }
  func.func @transform_0(%arg0: i32) -> (i32, i32, i32) {
    %c0_i32 = arith.constant 0 : i32
    %c0_i32_0 = arith.constant 0 : i32
    %c0_i32_1 = arith.constant 0 : i32
    return %arg0, %c0_i32, %c0_i32_0 : i32, i32, i32
  }
  func.func @transform_1(%arg0: i32) -> (i32, i32) {
    %c0_i32 = arith.constant 0 : i32
    %c0_i32_0 = arith.constant 0 : i32
    %c0_i32_1 = arith.constant 0 : i32
    return %c0_i32, %c0_i32_0 : i32, i32
  }
  func.func @transform_2(%arg0: i32) -> (i32, i32, i32) {
    %c0_i32 = arith.constant 0 : i32
    %c0_i32_0 = arith.constant 0 : i32
    %c0_i32_1 = arith.constant 0 : i32
    return %arg0, %c0_i32, %c0_i32_0 : i32, i32, i32
  }
}

module attributes {stable_mosaic.version = 11 : i64} {
  func.func @_matmul_kernel(%arg0: i32, %arg1: i32, %arg2: memref<16x128xf32, #tpu.memory_space<vmem>>, %arg3: memref<128x128xf32, #tpu.memory_space<vmem>>, %arg4: memref<16x128xf32, #tpu.memory_space<vmem>>) attributes {dimension_semantics = [#tpu.dimension_semantics<parallel>, #tpu.dimension_semantics<parallel>], iteration_bounds = array<i64: 1, 1>, scalar_prefetch = 0 : i64, scratch_operands = 0 : i64, tpu.core_type = #tpu.core_type<tc>, window_params = [{transform_indices = @transform_0, window_bounds = array<i64: 16, 128>}, {transform_indices = @transform_1, window_bounds = array<i64: 128, 128>}, {transform_indices = @transform_2, window_bounds = array<i64: 16, 128>}]} {
    %c0 = arith.constant 0 : index
    %c0_0 = arith.constant 0 : index
    %0 = vector.load %arg2[%c0, %c0_0] : memref<16x128xf32, #tpu.memory_space<vmem>>, vector<16x128xf32>
    %c0_1 = arith.constant 0 : index
    %c0_2 = arith.constant 0 : index
    %1 = vector.load %arg3[%c0_1, %c0_2] : memref<128x128xf32, #tpu.memory_space<vmem>>, vector<128x128xf32>
    %cst = arith.constant dense<0.000000e+00> : vector<16x128xf32>
    %2 = tpu.matmul %0, %1, %cst {dimension_numbers = #tpu.dot_dimension_numbers<[1], [0], [0], [1], [0, 0, 1, 1], [], []>} : vector<16x128xf32>, vector<128x128xf32>, vector<16x128xf32> -> vector<16x128xf32>
    %c0_3 = arith.constant 0 : index
    %c0_4 = arith.constant 0 : index
    %3 = vector.load %arg4[%c0_3, %c0_4] : memref<16x128xf32, #tpu.memory_space<vmem>>, vector<16x128xf32>
    tpu.vector_store %arg4[%c0_3, %c0_4], %2 {strides = array<i32>} : memref<16x128xf32, #tpu.memory_space<vmem>>, vector<16x128xf32>,
    return
  }
  func.func @transform_0(%arg0: i32, %arg1: i32) -> (i32, i32) {
    %c0_i32 = arith.constant 0 : i32
    %c0_i32_0 = arith.constant 0 : i32
    return %arg0, %c0_i32 : i32, i32
  }
  func.func @transform_1(%arg0: i32, %arg1: i32) -> (i32, i32) {
    %c0_i32 = arith.constant 0 : i32
    %c0_i32_0 = arith.constant 0 : i32
    return %c0_i32, %arg1 : i32, i32
  }
  func.func @transform_2(%arg0: i32, %arg1: i32) -> (i32, i32) {
    %c0_i32 = arith.constant 0 : i32
    return %arg0, %arg1 : i32, i32
  }
}

</mosaic_0001>

<bundles_post_ra>
// kernel: language_model_forward.7
= control target key start
LH: loop header
LB: loop body
LE: loop exit
PB: predicated region body
PF: predicated region fallthrough
CT: control target
= control target key end

     0   :  { %s671_s1 = inlined_call_operand.vmem [shape: f32[128,512], index: 1, kind: input, shape index: {}]   ;;  %s672_s0 = inlined_call_operand.vmem [shape: f32[64,128], index: 0, kind: input, shape index: {}]   ;;  %s673_s2 = inlined_call_operand.vmem [shape: f32[1,512], index: 2, kind: input, shape index: {}]   ;;  %s674_s3 = inlined_call_operand.vmem [shape: f32[64,512], index: 3, kind: output, shape index: {}]  }
   0x1   :  { %v84_v0 = vld [vmem:[%s671_s1 + $0x1f0] sm:$0xff]  ;;  %v85_v1 = vld [vmem:[%s671_s1 + $0x1f8] sm:$0xff]  ;;  %v82_v6 = vld [vmem:[%s671_s1 + $0x1e0] sm:$0xff] }
   0x2   :  { %v80_v2 = vld [vmem:[%s671_s1 + $0x1d0] sm:$0xff]  ;;  %178 = vmatpush.msra.mxu2 %v84_v0  ;;  %219 = vmatpush.msra.mxu3 %v85_v1  ;;  %v81_v3 = vld [vmem:[%s671_s1 + $0x1d8] sm:$0xff]  ;;  %v83_v7 = vld [vmem:[%s671_s1 + $0x1e8] sm:$0xff] }
   0x3   :  { %v76_v4 = vld [vmem:[%s671_s1 + $0x1b0] sm:$0xff]  ;;  %v77_v5 = vld [vmem:[%s671_s1 + $0x1b8] sm:$0xff]  ;;  %v78_v8 = vld [vmem:[%s671_s1 + $0x1c0] sm:$0xff]  ;;  %96 = vmatpush.msra.mxu0 %v82_v6  ;;  %137 = vmatpush.msra.mxu1 %v83_v7 }
   0x4   :  { %179 = vmatpush.msra.mxu2 %v80_v2  ;;  %220 = vmatpush.msra.mxu3 %v81_v3  ;;  %v79_v9 = vld [vmem:[%s671_s1 + $0x1c8] sm:$0xff]  ;;  %v72_v10 = vld [vmem:[%s671_s1 + $0x190] sm:$0xff]  ;;  %v73_v11 = vld [vmem:[%s671_s1 + $0x198] sm:$0xff] }
   0x5   :  { %v74_v12 = vld [vmem:[%s671_s1 + $0x1a0] sm:$0xff]  ;;  %v75_v13 = vld [vmem:[%s671_s1 + $0x1a8] sm:$0xff]  ;;  %97 = vmatpush.msra.mxu0 %v78_v8  ;;  %138 = vmatpush.msra.mxu1 %v79_v9  ;;  %v68_v14 = vld [vmem:[%s671_s1 + $0x170] sm:$0xff] }
   0x6   :  { %180 = vmatpush.msra.mxu2 %v76_v4  ;;  %221 = vmatpush.msra.mxu3 %v77_v5  ;;  %v69_v15 = vld [vmem:[%s671_s1 + $0x178] sm:$0xff]  ;;  %v70_v16 = vld [vmem:[%s671_s1 + $0x180] sm:$0xff]  ;;  %v71_v17 = vld [vmem:[%s671_s1 + $0x188] sm:$0xff] }
   0x7   :  { %98 = vmatpush.msra.mxu0 %v74_v12  ;;  %139 = vmatpush.msra.mxu1 %v75_v13  ;;  %v64_v18 = vld [vmem:[%s671_s1 + $0x150] sm:$0xff]  ;;  %v65_v19 = vld [vmem:[%s671_s1 + $0x158] sm:$0xff]  ;;  %v66_v20 = vld [vmem:[%s671_s1 + $0x160] sm:$0xff] }
   0x8   :  { %181 = vmatpush.msra.mxu2 %v72_v10  ;;  %222 = vmatpush.msra.mxu3 %v73_v11  ;;  %v67_v21 = vld [vmem:[%s671_s1 + $0x168] sm:$0xff]  ;;  %v60_v22 = vld [vmem:[%s671_s1 + $0x130] sm:$0xff]  ;;  %v61_v23 = vld [vmem:[%s671_s1 + $0x138] sm:$0xff] }
   0x9   :  { %99 = vmatpush.msra.mxu0 %v70_v16  ;;  %140 = vmatpush.msra.mxu1 %v71_v17  ;;  %v62_v24 = vld [vmem:[%s671_s1 + $0x140] sm:$0xff]  ;;  %v63_v25 = vld [vmem:[%s671_s1 + $0x148] sm:$0xff]  ;;  %v56_v26 = vld [vmem:[%s671_s1 + $0x110] sm:$0xff] }
   0xa   :  { %182 = vmatpush.msra.mxu2 %v68_v14  ;;  %223 = vmatpush.msra.mxu3 %v69_v15  ;;  %v57_v27 = vld [vmem:[%s671_s1 + $0x118] sm:$0xff]  ;;  %v58_v28 = vld [vmem:[%s671_s1 + $0x120] sm:$0xff]  ;;  %v59_v29 = vld [vmem:[%s671_s1 + $0x128] sm:$0xff] }
   0xb   :  { %100 = vmatpush.msra.mxu0 %v66_v20  ;;  %141 = vmatpush.msra.mxu1 %v67_v21  ;;  %v52_v30 = vld [vmem:[%s671_s1 + $0xf0] sm:$0xff]  ;;  %v53_v31 = vld [vmem:[%s671_s1 + $0xf8] sm:$0xff]  ;;  %v54_v32 = vld [vmem:[%s671_s1 + $0x100] sm:$0xff] }
   0xc   :  { %183 = vmatpush.msra.mxu2 %v64_v18  ;;  %224 = vmatpush.msra.mxu3 %v65_v19  ;;  %v55_v33 = vld [vmem:[%s671_s1 + $0x108] sm:$0xff]  ;;  %v48_v34 = vld [vmem:[%s671_s1 + $0xd0] sm:$0xff]  ;;  %v49_v35 = vld [vmem:[%s671_s1 + $0xd8] sm:$0xff] }
   0xd   :  { %101 = vmatpush.msra.mxu0 %v62_v24  ;;  %142 = vmatpush.msra.mxu1 %v63_v25  ;;  %v50_v36 = vld [vmem:[%s671_s1 + $0xe0] sm:$0xff]  ;;  %v51_v37 = vld [vmem:[%s671_s1 + $0xe8] sm:$0xff]  ;;  %v44_v38 = vld [vmem:[%s671_s1 + $0xb0] sm:$0xff] }
   0xe   :  { %184 = vmatpush.msra.mxu2 %v60_v22  ;;  %225 = vmatpush.msra.mxu3 %v61_v23  ;;  %v45_v39 = vld [vmem:[%s671_s1 + $0xb8] sm:$0xff]  ;;  %v46_v40 = vld [vmem:[%s671_s1 + $0xc0] sm:$0xff]  ;;  %v47_v41 = vld [vmem:[%s671_s1 + $0xc8] sm:$0xff] }
   0xf   :  { %102 = vmatpush.msra.mxu0 %v58_v28  ;;  %143 = vmatpush.msra.mxu1 %v59_v29  ;;  %v40_v42 = vld [vmem:[%s671_s1 + $0x90] sm:$0xff]  ;;  %v41_v43 = vld [vmem:[%s671_s1 + $0x98] sm:$0xff]  ;;  %v42_v44 = vld [vmem:[%s671_s1 + $0xa0] sm:$0xff] }
  0x10   :  { %185 = vmatpush.msra.mxu2 %v56_v26  ;;  %226 = vmatpush.msra.mxu3 %v57_v27  ;;  %v43_v45 = vld [vmem:[%s671_s1 + $0xa8] sm:$0xff]  ;;  %v36_v46 = vld [vmem:[%s671_s1 + $0x70] sm:$0xff]  ;;  %v37_v47 = vld [vmem:[%s671_s1 + $0x78] sm:$0xff] }
  0x11   :  { %103 = vmatpush.msra.mxu0 %v54_v32  ;;  %144 = vmatpush.msra.mxu1 %v55_v33  ;;  %v38_v48 = vld [vmem:[%s671_s1 + $0x80] sm:$0xff]  ;;  %v39_v49 = vld [vmem:[%s671_s1 + $0x88] sm:$0xff]  ;;  %v32_v50 = vld [vmem:[%s671_s1 + $0x50] sm:$0xff] }
  0x12   :  { %186 = vmatpush.msra.mxu2 %v52_v30  ;;  %227 = vmatpush.msra.mxu3 %v53_v31  ;;  %v33_v51 = vld [vmem:[%s671_s1 + $0x58] sm:$0xff]  ;;  %v34_v52 = vld [vmem:[%s671_s1 + $0x60] sm:$0xff]  ;;  %v35_v53 = vld [vmem:[%s671_s1 + $0x68] sm:$0xff] }
  0x13   :  { %104 = vmatpush.msra.mxu0 %v50_v36  ;;  %145 = vmatpush.msra.mxu1 %v51_v37  ;;  %v28_v54 = vld [vmem:[%s671_s1 + $0x30] sm:$0xff]  ;;  %v29_v55 = vld [vmem:[%s671_s1 + $0x38] sm:$0xff]  ;;  %v30_v56 = vld [vmem:[%s671_s1 + $0x40] sm:$0xff] }
  0x14   :  { %187 = vmatpush.msra.mxu2 %v48_v34  ;;  %228 = vmatpush.msra.mxu3 %v49_v35  ;;  %v31_v57 = vld [vmem:[%s671_s1 + $0x48] sm:$0xff]  ;;  %v24_v58 = vld [vmem:[%s671_s1 + $0x10] sm:$0xff]  ;;  %v25_v59 = vld [vmem:[%s671_s1 + $0x18] sm:$0xff] }
  0x15   :  { %105 = vmatpush.msra.mxu0 %v46_v40  ;;  %146 = vmatpush.msra.mxu1 %v47_v41  ;;  %v14_v60 = vld [vmem:[%s672_s0] sm:$0xff]  ;;  %v27_v62 = vld [vmem:[%s671_s1 + $0x28] sm:$0xff]  ;;  %v16_v2 = vld [vmem:[%s672_s0 + $0x10] sm:$0xff] }
  0x16   :  { %188 = vmatpush.msra.mxu2 %v44_v38  ;;  %229 = vmatpush.msra.mxu3 %v45_v39  ;;  %v26_v61 = vld [vmem:[%s671_s1 + $0x20] sm:$0xff]  ;;  %v23_v0 = vld [vmem:[%s671_s1 + $0x8] sm:$0xff]  ;;  %v17_v3 = vld [vmem:[%s672_s0 + $0x18] sm:$0xff] }
  0x17   :  { %106 = vmatpush.msra.mxu0 %v42_v44  ;;  %147 = vmatpush.msra.mxu1 %v43_v45  ;;  %v22_v63 = vld [vmem:[%s671_s1] sm:$0xff]  ;;  %v15_v1 = vld [vmem:[%s672_s0 + $0x8] sm:$0xff]  ;;  %v20_v6 = vld [vmem:[%s672_s0 + $0x30] sm:$0xff] }
  0x18   :  { %189 = vmatpush.msra.mxu2 %v40_v42  ;;  %230 = vmatpush.msra.mxu3 %v41_v43  ;;  %v18_v4 = vld [vmem:[%s672_s0 + $0x20] sm:$0xff]  ;;  %v19_v5 = vld [vmem:[%s672_s0 + $0x28] sm:$0xff]  ;;  %v21_v7 = vld [vmem:[%s672_s0 + $0x38] sm:$0xff] }
  0x19   :  { %107 = vmatpush.msra.mxu0 %v38_v48  ;;  %148 = vmatpush.msra.mxu1 %v39_v49  ;;  %v86_v8 = vld [vmem:[%s673_s2] sm:$0xf] }
  0x1a   :  { %190 = vmatpush.msra.mxu2 %v36_v46  ;;  %231 = vmatpush.msra.mxu3 %v37_v47  ;;  %v535_v9 = vperm.slane %v86_v8, 0  ;;  %v537_v10 = vperm.slane %v86_v8, 1  ;;  %v539_v11 = vperm.slane %v86_v8, 2  ;;  %v541_v12 = vperm.slane %v86_v8, 3 }
  0x1b   :  { %108 = vmatpush.msra.mxu0 %v34_v52  ;;  %149 = vmatpush.msra.mxu1 %v35_v53 }
  0x1c   :  { %191 = vmatpush.msra.mxu2 %v32_v50  ;;  %232 = vmatpush.msra.mxu3 %v33_v51 }
  0x1d   :  { %109 = vmatpush.msra.mxu0 %v30_v56  ;;  %150 = vmatpush.msra.mxu1 %v31_v57 }
  0x1e   :  { %192 = vmatpush.msra.mxu2 %v28_v54  ;;  %233 = vmatpush.msra.mxu3 %v29_v55 }
  0x1f   :  { %110 = vmatpush.msra.mxu0 %v26_v61  ;;  %151 = vmatpush.msra.mxu1 %v27_v62 }
  0x20   :  { %193 = vmatpush.msra.mxu2 %v24_v58  ;;  %234 = vmatpush.msra.mxu3 %v25_v59 }
  0x21   :  { %194 = vmatmul.f32.vlgmr.msra.gmra.mxu2 %v14_v60  ;;  %235 = vmatmul.f32.vlgmr.msra.gmra.mxu3 %v14_v60 }
  0x22   :  { %111 = vmatpush.msra.mxu0 %v22_v63  ;;  %152 = vmatpush.msra.mxu1 %v23_v0 }
  0x23   :  { %112 = vmatmul.f32.vlgmr.msra.gmra.mxu0 %v14_v60  ;;  %153 = vmatmul.f32.vlgmr.msra.gmra.mxu1 %v14_v60 }
  0x29   :  { %197 = vmatmul.f32.gmra.mxu2 %v15_v1  ;;  %238 = vmatmul.f32.gmra.mxu3 %v15_v1 }
  0x2b   :  { %115 = vmatmul.f32.gmra.mxu0 %v15_v1  ;;  %156 = vmatmul.f32.gmra.mxu1 %v15_v1 }
  0x31   :  { %200 = vmatmul.f32.gmra.mxu2 %v16_v2  ;;  %241 = vmatmul.f32.gmra.mxu3 %v16_v2 }
  0x33   :  { %118 = vmatmul.f32.gmra.mxu0 %v16_v2  ;;  %159 = vmatmul.f32.gmra.mxu1 %v16_v2 }
  0x39   :  { %203 = vmatmul.f32.gmra.mxu2 %v17_v3  ;;  %244 = vmatmul.f32.gmra.mxu3 %v17_v3 }
  0x3b   :  { %121 = vmatmul.f32.gmra.mxu0 %v17_v3  ;;  %162 = vmatmul.f32.gmra.mxu1 %v17_v3 }
  0x41   :  { %206 = vmatmul.f32.gmra.mxu2 %v18_v4  ;;  %247 = vmatmul.f32.gmra.mxu3 %v18_v4 }
  0x43   :  { %124 = vmatmul.f32.gmra.mxu0 %v18_v4  ;;  %165 = vmatmul.f32.gmra.mxu1 %v18_v4 }
  0x49   :  { %209 = vmatmul.f32.gmra.mxu2 %v19_v5  ;;  %250 = vmatmul.f32.gmra.mxu3 %v19_v5 }
  0x4b   :  { %127 = vmatmul.f32.gmra.mxu0 %v19_v5  ;;  %168 = vmatmul.f32.gmra.mxu1 %v19_v5 }
  0x51   :  { %212 = vmatmul.f32.gmra.mxu2 %v20_v6  ;;  %253 = vmatmul.f32.gmra.mxu3 %v20_v6 }
  0x53   :  { %130 = vmatmul.f32.gmra.mxu0 %v20_v6  ;;  %171 = vmatmul.f32.gmra.mxu1 %v20_v6 }
  0x59   :  { %215 = vmatmul.f32.gmra.mxu2 %v21_v7  ;;  %256 = vmatmul.f32.gmra.mxu3 %v21_v7 }
  0x5b   :  { %133 = vmatmul.f32.gmra.mxu0 %v21_v7  ;;  %174 = vmatmul.f32.gmra.mxu1 %v21_v7 }
  0xa0   :  { %v113_v13 = vpop.f32.mrf.mxu0  ;;  %v154_v14 = vpop.f32.mrf.mxu1 }
  0xa1   :  { %v114_v15 = vadd.f32 %v113_v13, %v535_v9  ;;  %v155_v16 = vadd.f32 %v154_v14, %v537_v10 }
  0xa3   :  { %260 = vst [vmem:[%s674_s3] sm:$0xff] %v114_v15 }
  0xa4   :  { %v195_v17 = vpop.f32.mrf.mxu2  ;;  %v236_v18 = vpop.f32.mrf.mxu3  ;;  %261 = vst [vmem:[%s674_s3 + $0x8] sm:$0xff] %v155_v16 }
  0xa5   :  { %v196_v19 = vadd.f32 %v195_v17, %v539_v11  ;;  %v237_v20 = vadd.f32 %v236_v18, %v541_v12 }
  0xa7   :  { %262 = vst [vmem:[%s674_s3 + $0x10] sm:$0xff] %v196_v19 }
  0xa8   :  { %263 = vst [vmem:[%s674_s3 + $0x18] sm:$0xff] %v237_v20  ;;  %v116_v21 = vpop.f32.mrf.mxu0  ;;  %v157_v22 = vpop.f32.mrf.mxu1 }
  0xa9   :  { %v117_v23 = vadd.f32 %v116_v21, %v535_v9  ;;  %v158_v24 = vadd.f32 %v157_v22, %v537_v10 }
  0xab   :  { %264 = vst [vmem:[%s674_s3 + $0x20] sm:$0xff] %v117_v23 }
  0xac   :  { %v198_v25 = vpop.f32.mrf.mxu2  ;;  %v239_v26 = vpop.f32.mrf.mxu3  ;;  %265 = vst [vmem:[%s674_s3 + $0x28] sm:$0xff] %v158_v24 }
  0xad   :  { %v199_v27 = vadd.f32 %v198_v25, %v539_v11  ;;  %v240_v28 = vadd.f32 %v239_v26, %v541_v12 }
  0xaf   :  { %266 = vst [vmem:[%s674_s3 + $0x30] sm:$0xff] %v199_v27 }
  0xb0   :  { %267 = vst [vmem:[%s674_s3 + $0x38] sm:$0xff] %v240_v28  ;;  %v119_v29 = vpop.f32.mrf.mxu0  ;;  %v160_v30 = vpop.f32.mrf.mxu1 }
  0xb1   :  { %v120_v31 = vadd.f32 %v119_v29, %v535_v9  ;;  %v161_v32 = vadd.f32 %v160_v30, %v537_v10 }
  0xb3   :  { %268 = vst [vmem:[%s674_s3 + $0x40] sm:$0xff] %v120_v31 }
  0xb4   :  { %v201_v33 = vpop.f32.mrf.mxu2  ;;  %v242_v34 = vpop.f32.mrf.mxu3  ;;  %269 = vst [vmem:[%s674_s3 + $0x48] sm:$0xff] %v161_v32 }
  0xb5   :  { %v202_v35 = vadd.f32 %v201_v33, %v539_v11  ;;  %v243_v36 = vadd.f32 %v242_v34, %v541_v12 }
  0xb7   :  { %270 = vst [vmem:[%s674_s3 + $0x50] sm:$0xff] %v202_v35 }
  0xb8   :  { %271 = vst [vmem:[%s674_s3 + $0x58] sm:$0xff] %v243_v36  ;;  %v122_v37 = vpop.f32.mrf.mxu0  ;;  %v163_v38 = vpop.f32.mrf.mxu1 }
  0xb9   :  { %v123_v39 = vadd.f32 %v122_v37, %v535_v9  ;;  %v164_v40 = vadd.f32 %v163_v38, %v537_v10 }
  0xbb   :  { %272 = vst [vmem:[%s674_s3 + $0x60] sm:$0xff] %v123_v39 }
  0xbc   :  { %v204_v41 = vpop.f32.mrf.mxu2  ;;  %v245_v42 = vpop.f32.mrf.mxu3  ;;  %273 = vst [vmem:[%s674_s3 + $0x68] sm:$0xff] %v164_v40 }
  0xbd   :  { %v205_v43 = vadd.f32 %v204_v41, %v539_v11  ;;  %v246_v44 = vadd.f32 %v245_v42, %v541_v12 }
  0xbf   :  { %274 = vst [vmem:[%s674_s3 + $0x70] sm:$0xff] %v205_v43 }
  0xc0   :  { %275 = vst [vmem:[%s674_s3 + $0x78] sm:$0xff] %v246_v44  ;;  %v125_v45 = vpop.f32.mrf.mxu0  ;;  %v166_v46 = vpop.f32.mrf.mxu1 }
  0xc1   :  { %v126_v47 = vadd.f32 %v125_v45, %v535_v9  ;;  %v167_v48 = vadd.f32 %v166_v46, %v537_v10 }
  0xc3   :  { %276 = vst [vmem:[%s674_s3 + $0x80] sm:$0xff] %v126_v47 }
  0xc4   :  { %v207_v49 = vpop.f32.mrf.mxu2  ;;  %v248_v50 = vpop.f32.mrf.mxu3  ;;  %277 = vst [vmem:[%s674_s3 + $0x88] sm:$0xff] %v167_v48 }
  0xc5   :  { %v208_v51 = vadd.f32 %v207_v49, %v539_v11  ;;  %v249_v52 = vadd.f32 %v248_v50, %v541_v12 }
  0xc7   :  { %278 = vst [vmem:[%s674_s3 + $0x90] sm:$0xff] %v208_v51 }
  0xc8   :  { %279 = vst [vmem:[%s674_s3 + $0x98] sm:$0xff] %v249_v52  ;;  %v128_v53 = vpop.f32.mrf.mxu0  ;;  %v169_v54 = vpop.f32.mrf.mxu1 }
  0xc9   :  { %v129_v55 = vadd.f32 %v128_v53, %v535_v9  ;;  %v170_v56 = vadd.f32 %v169_v54, %v537_v10 }
  0xcb   :  { %280 = vst [vmem:[%s674_s3 + $0xa0] sm:$0xff] %v129_v55 }
  0xcc   :  { %v210_v57 = vpop.f32.mrf.mxu2  ;;  %v251_v58 = vpop.f32.mrf.mxu3  ;;  %281 = vst [vmem:[%s674_s3 + $0xa8] sm:$0xff] %v170_v56 }
  0xcd   :  { %v211_v59 = vadd.f32 %v210_v57, %v539_v11  ;;  %v252_v60 = vadd.f32 %v251_v58, %v541_v12 }
  0xcf   :  { %282 = vst [vmem:[%s674_s3 + $0xb0] sm:$0xff] %v211_v59 }
  0xd0   :  { %283 = vst [vmem:[%s674_s3 + $0xb8] sm:$0xff] %v252_v60  ;;  %v131_v61 = vpop.f32.mrf.mxu0  ;;  %v172_v62 = vpop.f32.mrf.mxu1 }
  0xd1   :  { %v132_v63 = vadd.f32 %v131_v61, %v535_v9  ;;  %v173_v0 = vadd.f32 %v172_v62, %v537_v10 }
  0xd3   :  { %284 = vst [vmem:[%s674_s3 + $0xc0] sm:$0xff] %v132_v63 }
  0xd4   :  { %v213_v1 = vpop.f32.mrf.mxu2  ;;  %v254_v2 = vpop.f32.mrf.mxu3  ;;  %285 = vst [vmem:[%s674_s3 + $0xc8] sm:$0xff] %v173_v0 }
  0xd5   :  { %v214_v3 = vadd.f32 %v213_v1, %v539_v11  ;;  %v255_v4 = vadd.f32 %v254_v2, %v541_v12 }
  0xd7   :  { %286 = vst [vmem:[%s674_s3 + $0xd0] sm:$0xff] %v214_v3 }
  0xd8   :  { %287 = vst [vmem:[%s674_s3 + $0xd8] sm:$0xff] %v255_v4  ;;  %v134_v5 = vpop.f32.mrf.mxu0  ;;  %v175_v6 = vpop.f32.mrf.mxu1 }
  0xd9   :  { %v135_v7 = vadd.f32 %v134_v5, %v535_v9  ;;  %v176_v8 = vadd.f32 %v175_v6, %v537_v10 }
  0xdb   :  { %288 = vst [vmem:[%s674_s3 + $0xe0] sm:$0xff] %v135_v7 }
  0xdc   :  { %v216_v13 = vpop.f32.mrf.mxu2  ;;  %v257_v14 = vpop.f32.mrf.mxu3  ;;  %289 = vst [vmem:[%s674_s3 + $0xe8] sm:$0xff] %v176_v8 }
  0xdd   :  { %v217_v15 = vadd.f32 %v216_v13, %v539_v11  ;;  %v258_v16 = vadd.f32 %v257_v14, %v541_v12 }
  0xdf   :  { %290 = vst [vmem:[%s674_s3 + $0xf0] sm:$0xff] %v217_v15 }
  0xe0   :  { %291 = vst [vmem:[%s674_s3 + $0xf8] sm:$0xff] %v258_v16 }

// kernel: language_model_forward.13
= control target key start
LH: loop header
LB: loop body
LE: loop exit
PB: predicated region body
PF: predicated region fallthrough
CT: control target
= control target key end

     0   :  { %s193_s0 = inlined_call_operand.vmem [shape: f32[16,128], index: 0, kind: input, shape index: {}]   ;;  %s194_s1 = inlined_call_operand.vmem [shape: f32[128,128], index: 1, kind: input, shape index: {}]   ;;  %s195_s2 = inlined_call_operand.hbm [shape: f32[16,128], index: 2, kind: output, shape index: {}]  }
   0x1   :  { %v29_v0 = vld [vmem:[%s194_s1 + $0x78] sm:$0xff]  ;;  %v28_v1 = vld [vmem:[%s194_s1 + $0x70] sm:$0xff]  ;;  %v27_v2 = vld [vmem:[%s194_s1 + $0x68] sm:$0xff] }
   0x2   :  { %30 = vmatpush.msra.mxu0 %v29_v0  ;;  %73 = vmatpush.msra.mxu1 %v29_v0  ;;  %v26_v3 = vld [vmem:[%s194_s1 + $0x60] sm:$0xff]  ;;  %v25_v4 = vld [vmem:[%s194_s1 + $0x58] sm:$0xff] }
   0x4   :  { %31 = vmatpush.msra.mxu0 %v28_v1  ;;  %74 = vmatpush.msra.mxu1 %v28_v1 }
   0x6   :  { %32 = vmatpush.msra.mxu0 %v27_v2  ;;  %75 = vmatpush.msra.mxu1 %v27_v2 }
   0x7   :  { %7 = vsyncpa [#allocation3], 0  ;;  %v24_v5 = vld [vmem:[%s194_s1 + $0x50] sm:$0xff]  ;;  %v23_v6 = vld [vmem:[%s194_s1 + $0x48] sm:$0xff]  ;;  %s118_s17 = smov [#allocation2]   ;;  %s119_s21 = smov 128  }
   0x8   :  { %33 = vmatpush.msra.mxu0 %v26_v3  ;;  %76 = vmatpush.msra.mxu1 %v26_v3  ;;  %v22_v7 = vld [vmem:[%s194_s1 + $0x40] sm:$0xff]  ;;  %v21_v8 = vld [vmem:[%s194_s1 + $0x38] sm:$0xff]  ;;  %v20_v9 = vld [vmem:[%s194_s1 + $0x30] sm:$0xff]  ;;  %s59_s18 = sshll.u32 %s118_s17, 4  ;;  %s120_s22 = smov 8   ;;  %s60_s18 = int_to_ptr.vmem [resolvable:$true] %s59_s18 }
   0x9   :  { %v19_v10 = vld [vmem:[%s194_s1 + $0x28] sm:$0xff]  ;;  %v18_v11 = vld [vmem:[%s194_s1 + $0x20] sm:$0xff]  ;;  %v17_v12 = vld [vmem:[%s194_s1 + $0x18] sm:$0xff] }
   0xa   :  { %34 = vmatpush.msra.mxu0 %v25_v4  ;;  %77 = vmatpush.msra.mxu1 %v25_v4  ;;  %v16_v13 = vld [vmem:[%s194_s1 + $0x10] sm:$0xff]  ;;  %v15_v14 = vld [vmem:[%s194_s1 + $0x8] sm:$0xff]  ;;  %v14_v15 = vld [vmem:[%s194_s1] sm:$0xff]  ;;  %s61_s1 = sshll.u32 %s195_s2, 4  ;;  %s62_s1 = int_to_ptr.hbm [resolvable:$true] %s61_s1 }
   0xb   :  { %v12_v16 = vld [vmem:[%s193_s0] sm:$0xff]  ;;  %v13_v17 = vld [vmem:[%s193_s0 + $0x8] sm:$0xff] }
   0xc   :  { %35 = vmatpush.msra.mxu0 %v24_v5  ;;  %78 = vmatpush.msra.mxu1 %v24_v5 }
   0xe   :  { %36 = vmatpush.msra.mxu0 %v23_v6  ;;  %79 = vmatpush.msra.mxu1 %v23_v6 }
  0x10   :  { %37 = vmatpush.msra.mxu0 %v22_v7  ;;  %80 = vmatpush.msra.mxu1 %v22_v7 }
  0x12   :  { %38 = vmatpush.msra.mxu0 %v21_v8  ;;  %81 = vmatpush.msra.mxu1 %v21_v8 }
  0x14   :  { %39 = vmatpush.msra.mxu0 %v20_v9  ;;  %82 = vmatpush.msra.mxu1 %v20_v9 }
  0x16   :  { %40 = vmatpush.msra.mxu0 %v19_v10  ;;  %83 = vmatpush.msra.mxu1 %v19_v10 }
  0x18   :  { %41 = vmatpush.msra.mxu0 %v18_v11  ;;  %84 = vmatpush.msra.mxu1 %v18_v11 }
  0x1a   :  { %42 = vmatpush.msra.mxu0 %v17_v12  ;;  %85 = vmatpush.msra.mxu1 %v17_v12 }
  0x1c   :  { %43 = vmatpush.msra.mxu0 %v16_v13  ;;  %86 = vmatpush.msra.mxu1 %v16_v13 }
  0x1e   :  { %44 = vmatpush.msra.mxu0 %v15_v14  ;;  %87 = vmatpush.msra.mxu1 %v15_v14 }
  0x20   :  { %45 = vmatpush.msra.mxu0 %v14_v15  ;;  %88 = vmatpush.msra.mxu1 %v14_v15 }
  0x21   :  { %46 = vmatmul.f32.vlgmr.msra.gmra.mxu0 %v12_v16  ;;  %49 = vmatmul.f32.vlgmr.msra.gmra.mxu1 %v13_v17 }
  0x9e   :  { %v47_v18 = vpop.f32.mrf.mxu0  ;;  %v50_v19 = vpop.f32.mrf.mxu1 }
  0x9f   :  { %53 = vst [vmem:[#allocation2] sm:$0xff] %v47_v18 }
  0xa0   :  { %54 = vst [vmem:[#allocation2 + $0x8] sm:$0xff] %v50_v19 }
  0xa1   :  { %67 = dma.vmem_to_hbm [thread:$0]  %s60_s18, 256, %s62_s1, [#allocation3], %s119_s21, %s119_s21, %s120_s22  }
  0xa2   :  { %116 = dma.done.wait [#allocation3], 256  }
  0xa3   :  { %117 = vsyncadd [#allocation3], 4294967040 }
  0xa4   :  { %72 = vsyncpa [#allocation3], 1 }

// kernel: language_model_forward.8
= control target key start
LH: loop header
LB: loop body
LE: loop exit
PB: predicated region body
PF: predicated region fallthrough
CT: control target
= control target key end

     0   :  { %v1571_v60 = vmov 0.0   ;;  %s2887_s1 = inlined_call_operand.vmem [shape: f32[128,512], index: 1, kind: input, shape index: {}]   ;;  %s2888_s0 = inlined_call_operand.vmem [shape: f32[8,8,512], index: 0, kind: input, shape index: {}]   ;;  %s2889_s2 = inlined_call_operand.vmem [shape: f32[8,8,128], index: 2, kind: output, shape index: {}]  }
   0x1   :  { %v1590_v0 = vld [vmem:[%s2887_s1 + $0x1e0] sm:$0xff]  ;;  %v1595_v1 = vld [vmem:[%s2887_s1 + $0x1e8] sm:$0xff]  ;;  %v1600_v2 = vld [vmem:[%s2887_s1 + $0x1f8] sm:$0xff] }
   0x2   :  { %2996 = vst [vmem:[#allocation4_spill] sm:$0xff] %v1600_v2  ;;  %87 = vmatpush.msra.mxu0 %v1590_v0  ;;  %107 = vmatpush.msra.mxu1 %v1595_v1  ;;  %v1607_v3 = vld [vmem:[%s2887_s1 + $0x1c0] sm:$0xff]  ;;  %v1612_v4 = vld [vmem:[%s2887_s1 + $0x1c8] sm:$0xff]  ;;  %v1617_v5 = vld [vmem:[%s2887_s1 + $0x1d8] sm:$0xff] }
   0x3   :  { %147 = vmatpush.msra.mxu3 %v1600_v2  ;;  %v1623_v6 = vld [vmem:[%s2887_s1 + $0x1a0] sm:$0xff]  ;;  %v1628_v7 = vld [vmem:[%s2887_s1 + $0x1a8] sm:$0xff]  ;;  %v1635_v8 = vld [vmem:[%s2887_s1 + $0x1b8] sm:$0xff] }
   0x4   :  { %88 = vmatpush.msra.mxu0 %v1607_v3  ;;  %108 = vmatpush.msra.mxu1 %v1612_v4  ;;  %v1641_v9 = vld [vmem:[%s2887_s1 + $0x180] sm:$0xff]  ;;  %v1646_v10 = vld [vmem:[%s2887_s1 + $0x188] sm:$0xff]  ;;  %v1653_v11 = vld [vmem:[%s2887_s1 + $0x198] sm:$0xff] }
   0x5   :  { %148 = vmatpush.msra.mxu3 %v1617_v5  ;;  %v1659_v12 = vld [vmem:[%s2887_s1 + $0x160] sm:$0xff]  ;;  %v1664_v13 = vld [vmem:[%s2887_s1 + $0x168] sm:$0xff]  ;;  %v1671_v14 = vld [vmem:[%s2887_s1 + $0x178] sm:$0xff] }
   0x6   :  { %89 = vmatpush.msra.mxu0 %v1623_v6  ;;  %109 = vmatpush.msra.mxu1 %v1628_v7  ;;  %v1677_v15 = vld [vmem:[%s2887_s1 + $0x140] sm:$0xff]  ;;  %v1682_v16 = vld [vmem:[%s2887_s1 + $0x148] sm:$0xff]  ;;  %v1687_v17 = vld [vmem:[%s2887_s1 + $0x1f0] sm:$0xff] }
   0x7   :  { %149 = vmatpush.msra.mxu3 %v1635_v8  ;;  %v1694_v18 = vld [vmem:[%s2887_s1 + $0x158] sm:$0xff]  ;;  %v1699_v19 = vld [vmem:[%s2887_s1 + $0x1d0] sm:$0xff]  ;;  %v1705_v20 = vld [vmem:[%s2887_s1 + $0x120] sm:$0xff]  ;;  %127 = vmatpush.msra.mxu2 %v1687_v17 }
   0x8   :  { %90 = vmatpush.msra.mxu0 %v1641_v9  ;;  %110 = vmatpush.msra.mxu1 %v1646_v10  ;;  %v1710_v21 = vld [vmem:[%s2887_s1 + $0x128] sm:$0xff]  ;;  %v1718_v22 = vld [vmem:[%s2887_s1 + $0x138] sm:$0xff]  ;;  %v1723_v23 = vld [vmem:[%s2887_s1 + $0x1b0] sm:$0xff] }
   0x9   :  { %150 = vmatpush.msra.mxu3 %v1653_v11  ;;  %v1729_v24 = vld [vmem:[%s2887_s1 + $0x100] sm:$0xff]  ;;  %v1734_v25 = vld [vmem:[%s2887_s1 + $0x108] sm:$0xff]  ;;  %128 = vmatpush.msra.mxu2 %v1699_v19  ;;  %v1742_v26 = vld [vmem:[%s2887_s1 + $0x118] sm:$0xff] }
   0xa   :  { %91 = vmatpush.msra.mxu0 %v1659_v12  ;;  %111 = vmatpush.msra.mxu1 %v1664_v13  ;;  %v1747_v27 = vld [vmem:[%s2887_s1 + $0x190] sm:$0xff]  ;;  %v1753_v28 = vld [vmem:[%s2887_s1 + $0xe0] sm:$0xff]  ;;  %v1758_v29 = vld [vmem:[%s2887_s1 + $0xe8] sm:$0xff] }
   0xb   :  { %151 = vmatpush.msra.mxu3 %v1671_v14  ;;  %129 = vmatpush.msra.mxu2 %v1723_v23  ;;  %v1766_v30 = vld [vmem:[%s2887_s1 + $0xf8] sm:$0xff]  ;;  %v1771_v31 = vld [vmem:[%s2887_s1 + $0x170] sm:$0xff]  ;;  %v1777_v32 = vld [vmem:[%s2887_s1 + $0xc0] sm:$0xff] }
   0xc   :  { %92 = vmatpush.msra.mxu0 %v1677_v15  ;;  %112 = vmatpush.msra.mxu1 %v1682_v16  ;;  %v1782_v33 = vld [vmem:[%s2887_s1 + $0xc8] sm:$0xff]  ;;  %v1790_v34 = vld [vmem:[%s2887_s1 + $0xd8] sm:$0xff]  ;;  %v1795_v35 = vld [vmem:[%s2887_s1 + $0x150] sm:$0xff] }
   0xd   :  { %152 = vmatpush.msra.mxu3 %v1694_v18  ;;  %130 = vmatpush.msra.mxu2 %v1747_v27  ;;  %2997 = vst [vmem:[#allocation5_spill] sm:$0xff] %v1790_v34  ;;  %v1801_v36 = vld [vmem:[%s2887_s1 + $0xa0] sm:$0xff]  ;;  %v1806_v37 = vld [vmem:[%s2887_s1 + $0xa8] sm:$0xff]  ;;  %v1814_v38 = vld [vmem:[%s2887_s1 + $0xb8] sm:$0xff] }
   0xe   :  { %93 = vmatpush.msra.mxu0 %v1705_v20  ;;  %113 = vmatpush.msra.mxu1 %v1710_v21  ;;  %2998 = vst [vmem:[#allocation6_spill] sm:$0xff] %v1801_v36  ;;  %v1819_v39 = vld [vmem:[%s2887_s1 + $0x130] sm:$0xff]  ;;  %v1825_v40 = vld [vmem:[%s2887_s1 + $0x80] sm:$0xff]  ;;  %v1830_v41 = vld [vmem:[%s2887_s1 + $0x88] sm:$0xff] }
   0xf   :  { %153 = vmatpush.msra.mxu3 %v1718_v22  ;;  %2999 = vst [vmem:[#allocation7_spill] sm:$0xff] %v1806_v37  ;;  %131 = vmatpush.msra.mxu2 %v1771_v31  ;;  %v1838_v42 = vld [vmem:[%s2887_s1 + $0x98] sm:$0xff]  ;;  %v1843_v43 = vld [vmem:[%s2887_s1 + $0x110] sm:$0xff]  ;;  %v1849_v44 = vld [vmem:[%s2887_s1 + $0x60] sm:$0xff] }
  0x10   :  { %94 = vmatpush.msra.mxu0 %v1729_v24  ;;  %114 = vmatpush.msra.mxu1 %v1734_v25  ;;  %3000 = vst [vmem:[#allocation8_spill] sm:$0xff] %v1814_v38  ;;  %v1854_v45 = vld [vmem:[%s2887_s1 + $0x68] sm:$0xff]  ;;  %v1862_v46 = vld [vmem:[%s2887_s1 + $0x78] sm:$0xff]  ;;  %v1867_v47 = vld [vmem:[%s2887_s1 + $0xf0] sm:$0xff] }
  0x11   :  { %154 = vmatpush.msra.mxu3 %v1742_v26  ;;  %3001 = vst [vmem:[#allocation9_spill] sm:$0xff] %v1825_v40  ;;  %132 = vmatpush.msra.mxu2 %v1795_v35  ;;  %v1873_v48 = vld [vmem:[%s2887_s1 + $0x40] sm:$0xff]  ;;  %v1878_v49 = vld [vmem:[%s2887_s1 + $0x48] sm:$0xff]  ;;  %v1886_v50 = vld [vmem:[%s2887_s1 + $0x58] sm:$0xff] }
  0x12   :  { %95 = vmatpush.msra.mxu0 %v1753_v28  ;;  %115 = vmatpush.msra.mxu1 %v1758_v29  ;;  %3002 = vst [vmem:[#allocation10_spill] sm:$0xff] %v1830_v41  ;;  %v1891_v51 = vld [vmem:[%s2887_s1 + $0xd0] sm:$0xff]  ;;  %v1897_v52 = vld [vmem:[%s2887_s1 + $0x20] sm:$0xff]  ;;  %v1902_v53 = vld [vmem:[%s2887_s1 + $0x28] sm:$0xff] }
  0x13   :  { %155 = vmatpush.msra.mxu3 %v1766_v30  ;;  %3003 = vst [vmem:[#allocation11_spill] sm:$0xff] %v1838_v42  ;;  %133 = vmatpush.msra.mxu2 %v1819_v39  ;;  %v1910_v54 = vld [vmem:[%s2887_s1 + $0x38] sm:$0xff]  ;;  %v1915_v55 = vld [vmem:[%s2887_s1 + $0xb0] sm:$0xff]  ;;  %v1921_v56 = vld [vmem:[%s2887_s1] sm:$0xff] }
  0x14   :  { %96 = vmatpush.msra.mxu0 %v1777_v32  ;;  %116 = vmatpush.msra.mxu1 %v1782_v33  ;;  %3004 = vst [vmem:[#allocation12_spill] sm:$0xff] %v1849_v44  ;;  %v1926_v57 = vld [vmem:[%s2887_s1 + $0x8] sm:$0xff]  ;;  %v1934_v58 = vld [vmem:[%s2887_s1 + $0x18] sm:$0xff]  ;;  %v1943_v59 = vld [vmem:[%s2887_s1 + $0x90] sm:$0xff] }
  0x15   :  { %156 = vmatpush.msra.mxu3 %v1790_v34  ;;  %3005 = vst [vmem:[#allocation13_spill] sm:$0xff] %v1854_v45  ;;  %134 = vmatpush.msra.mxu2 %v1843_v43  ;;  %v1949_v61 = vld [vmem:[%s2887_s1 + $0x70] sm:$0xff] }
  0x16   :  { %97 = vmatpush.msra.mxu0 %v1801_v36  ;;  %117 = vmatpush.msra.mxu1 %v1806_v37  ;;  %3006 = vst [vmem:[#allocation14_spill] sm:$0xff] %v1862_v46  ;;  %v1956_v62 = vld [vmem:[%s2887_s1 + $0x50] sm:$0xff] }
  0x17   :  { %157 = vmatpush.msra.mxu3 %v1814_v38  ;;  %3007 = vst [vmem:[#allocation15_spill] sm:$0xff] %v1873_v48  ;;  %135 = vmatpush.msra.mxu2 %v1867_v47  ;;  %v1965_v63 = vld [vmem:[%s2887_s1 + $0x30] sm:$0xff] }
  0x18   :  { %98 = vmatpush.msra.mxu0 %v1825_v40  ;;  %118 = vmatpush.msra.mxu1 %v1830_v41  ;;  %3008 = vst [vmem:[#allocation16_spill] sm:$0xff] %v1878_v49 }
  0x19   :  { %158 = vmatpush.msra.mxu3 %v1838_v42  ;;  %3009 = vst [vmem:[#allocation17_spill] sm:$0xff] %v1886_v50  ;;  %136 = vmatpush.msra.mxu2 %v1891_v51 }
  0x1a   :  { %99 = vmatpush.msra.mxu0 %v1849_v44  ;;  %119 = vmatpush.msra.mxu1 %v1854_v45  ;;  %3010 = vst [vmem:[#allocation18_spill] sm:$0xff] %v1891_v51 }
  0x1b   :  { %159 = vmatpush.msra.mxu3 %v1862_v46  ;;  %3011 = vst [vmem:[#allocation19_spill] sm:$0xff] %v1897_v52  ;;  %137 = vmatpush.msra.mxu2 %v1915_v55 }
  0x1c   :  { %3012 = vst [vmem:[#allocation20_spill] sm:$0xff] %v1902_v53  ;;  %100 = vmatpush.msra.mxu0 %v1873_v48  ;;  %120 = vmatpush.msra.mxu1 %v1878_v49 }
  0x1d   :  { %3013 = vst [vmem:[#allocation21_spill] sm:$0xff] %v1910_v54  ;;  %160 = vmatpush.msra.mxu3 %v1886_v50  ;;  %138 = vmatpush.msra.mxu2 %v1943_v59 }
  0x1e   :  { %3014 = vst [vmem:[#allocation22_spill] sm:$0xff] %v1915_v55  ;;  %101 = vmatpush.msra.mxu0 %v1897_v52  ;;  %121 = vmatpush.msra.mxu1 %v1902_v53 }
  0x1f   :  { %3015 = vst [vmem:[#allocation23_spill] sm:$0xff] %v1921_v56  ;;  %161 = vmatpush.msra.mxu3 %v1910_v54  ;;  %139 = vmatpush.msra.mxu2 %v1949_v61 }
  0x20   :  { %3016 = vst [vmem:[#allocation24_spill] sm:$0xff] %v1926_v57  ;;  %102 = vmatpush.msra.mxu0 %v1921_v56  ;;  %122 = vmatpush.msra.mxu1 %v1926_v57 }
  0x21   :  { %3017 = vst [vmem:[#allocation25_spill] sm:$0xff] %v1934_v58  ;;  %162 = vmatpush.msra.mxu3 %v1934_v58  ;;  %103 = vmatmul.f32.vlgmr.msra.gmra.mxu0 %v1571_v60 }
  0x22   :  { %3018 = vst [vmem:[#allocation26_spill] sm:$0xff] %v1943_v59  ;;  %123 = vmatmul.f32.vlgmr.msra.gmra.mxu1 %v1571_v60  ;;  %163 = vmatmul.f32.vlgmr.msra.gmra.mxu3 %v1571_v60 }
  0x23   :  { %3019 = vst [vmem:[#allocation27_spill] sm:$0xff] %v1949_v61  ;;  %240 = vmatpush.msrb.mxu0 %v1590_v0  ;;  %260 = vmatpush.msrb.mxu1 %v1595_v1 }
  0x24   :  { %3020 = vst [vmem:[#allocation28_spill] sm:$0xff] %v1956_v62  ;;  %300 = vmatpush.msrb.mxu3 %v1600_v2  ;;  %140 = vmatpush.msra.mxu2 %v1956_v62  ;;  %v1974_v2 = vld [vmem:[%s2887_s1 + $0x10] sm:$0xff] }
  0x25   :  { %241 = vmatpush.msrb.mxu0 %v1607_v3  ;;  %3021 = vst [vmem:[#allocation29_spill] sm:$0xff] %v1965_v63  ;;  %261 = vmatpush.msrb.mxu1 %v1612_v4 }
  0x26   :  { %301 = vmatpush.msrb.mxu3 %v1617_v5  ;;  %3022 = vst [vmem:[#allocation30_spill] sm:$0xff] %v1974_v2  ;;  %141 = vmatpush.msra.mxu2 %v1965_v63 }
  0x27   :  { %242 = vmatpush.msrb.mxu0 %v1623_v6  ;;  %262 = vmatpush.msrb.mxu1 %v1628_v7 }
  0x28   :  { %302 = vmatpush.msrb.mxu3 %v1635_v8  ;;  %142 = vmatpush.msra.mxu2 %v1974_v2 }
  0x29   :  { %243 = vmatpush.msrb.mxu0 %v1641_v9  ;;  %263 = vmatpush.msrb.mxu1 %v1646_v10 }
  0x2a   :  { %303 = vmatpush.msrb.mxu3 %v1653_v11  ;;  %143 = vmatmul.f32.vlgmr.msra.gmra.mxu2 %v1571_v60  ;;  %v3023_v60 = vld [vmem:[#allocation4_spill] sm:$0xff] }
  0x2b   :  { %244 = vmatpush.msrb.mxu0 %v1659_v12  ;;  %264 = vmatpush.msrb.mxu1 %v1664_v13 }
  0x2c   :  { %280 = vmatpush.msrb.mxu2 %v1687_v17  ;;  %304 = vmatpush.msrb.mxu3 %v1671_v14 }
  0x2d   :  { %245 = vmatpush.msrb.mxu0 %v1677_v15  ;;  %265 = vmatpush.msrb.mxu1 %v1682_v16 }
  0x2e   :  { %281 = vmatpush.msrb.mxu2 %v1699_v19  ;;  %305 = vmatpush.msrb.mxu3 %v1694_v18 }
  0x2f   :  { %246 = vmatpush.msrb.mxu0 %v1705_v20  ;;  %266 = vmatpush.msrb.mxu1 %v1710_v21 }
  0x30   :  { %282 = vmatpush.msrb.mxu2 %v1723_v23  ;;  %306 = vmatpush.msrb.mxu3 %v1718_v22 }
  0x31   :  { %247 = vmatpush.msrb.mxu0 %v1729_v24  ;;  %267 = vmatpush.msrb.mxu1 %v1734_v25 }
  0x32   :  { %283 = vmatpush.msrb.mxu2 %v1747_v27  ;;  %307 = vmatpush.msrb.mxu3 %v1742_v26 }
  0x33   :  { %248 = vmatpush.msrb.mxu0 %v1753_v28  ;;  %268 = vmatpush.msrb.mxu1 %v1758_v29 }
  0x34   :  { %284 = vmatpush.msrb.mxu2 %v1771_v31  ;;  %308 = vmatpush.msrb.mxu3 %v1766_v30 }
  0x35   :  { %249 = vmatpush.msrb.mxu0 %v1777_v32  ;;  %269 = vmatpush.msrb.mxu1 %v1782_v33 }
  0x36   :  { %285 = vmatpush.msrb.mxu2 %v1795_v35  ;;  %309 = vmatpush.msrb.mxu3 %v1790_v34 }
  0x37   :  { %250 = vmatpush.msrb.mxu0 %v1801_v36  ;;  %270 = vmatpush.msrb.mxu1 %v1806_v37 }
  0x38   :  { %286 = vmatpush.msrb.mxu2 %v1819_v39  ;;  %310 = vmatpush.msrb.mxu3 %v1814_v38 }
  0x39   :  { %251 = vmatpush.msrb.mxu0 %v1825_v40  ;;  %271 = vmatpush.msrb.mxu1 %v1830_v41 }
  0x3a   :  { %287 = vmatpush.msrb.mxu2 %v1843_v43  ;;  %311 = vmatpush.msrb.mxu3 %v1838_v42 }
  0x3b   :  { %252 = vmatpush.msrb.mxu0 %v1849_v44  ;;  %272 = vmatpush.msrb.mxu1 %v1854_v45 }
  0x3c   :  { %288 = vmatpush.msrb.mxu2 %v1867_v47  ;;  %312 = vmatpush.msrb.mxu3 %v1862_v46 }
  0x3d   :  { %253 = vmatpush.msrb.mxu0 %v1873_v48  ;;  %273 = vmatpush.msrb.mxu1 %v1878_v49 }
  0x3e   :  { %289 = vmatpush.msrb.mxu2 %v1891_v51  ;;  %313 = vmatpush.msrb.mxu3 %v1886_v50 }
  0x3f   :  { %254 = vmatpush.msrb.mxu0 %v1897_v52  ;;  %274 = vmatpush.msrb.mxu1 %v1902_v53 }
  0x40   :  { %290 = vmatpush.msrb.mxu2 %v1915_v55  ;;  %314 = vmatpush.msrb.mxu3 %v1910_v54 }
  0x41   :  { %255 = vmatpush.msrb.mxu0 %v1921_v56  ;;  %275 = vmatpush.msrb.mxu1 %v1926_v57 }
  0x42   :  { %291 = vmatpush.msrb.mxu2 %v1943_v59  ;;  %315 = vmatpush.msrb.mxu3 %v1934_v58 }
  0x43   :  { %394 = vmatpush.msra.mxu0 %v1590_v0  ;;  %414 = vmatpush.msra.mxu1 %v1595_v1 }
  0x44   :  { %292 = vmatpush.msrb.mxu2 %v1949_v61  ;;  %454 = vmatpush.msra.mxu3 %v3023_v60 }
  0x45   :  { %395 = vmatpush.msra.mxu0 %v1607_v3  ;;  %415 = vmatpush.msra.mxu1 %v1612_v4 }
  0x46   :  { %293 = vmatpush.msrb.mxu2 %v1956_v62  ;;  %455 = vmatpush.msra.mxu3 %v1617_v5 }
  0x47   :  { %396 = vmatpush.msra.mxu0 %v1623_v6  ;;  %416 = vmatpush.msra.mxu1 %v1628_v7 }
  0x48   :  { %294 = vmatpush.msrb.mxu2 %v1965_v63  ;;  %456 = vmatpush.msra.mxu3 %v1635_v8 }
  0x49   :  { %397 = vmatpush.msra.mxu0 %v1641_v9  ;;  %417 = vmatpush.msra.mxu1 %v1646_v10 }
  0x4a   :  { %295 = vmatpush.msrb.mxu2 %v1974_v2  ;;  %457 = vmatpush.msra.mxu3 %v1653_v11 }
  0x4b   :  { %398 = vmatpush.msra.mxu0 %v1659_v12  ;;  %418 = vmatpush.msra.mxu1 %v1664_v13 }
  0x4c   :  { %434 = vmatpush.msra.mxu2 %v1687_v17  ;;  %458 = vmatpush.msra.mxu3 %v1671_v14 }
  0x4d   :  { %399 = vmatpush.msra.mxu0 %v1677_v15  ;;  %419 = vmatpush.msra.mxu1 %v1682_v16 }
  0x4e   :  { %435 = vmatpush.msra.mxu2 %v1699_v19  ;;  %459 = vmatpush.msra.mxu3 %v1694_v18 }
  0x4f   :  { %400 = vmatpush.msra.mxu0 %v1705_v20  ;;  %420 = vmatpush.msra.mxu1 %v1710_v21 }
  0x50   :  { %436 = vmatpush.msra.mxu2 %v1723_v23  ;;  %460 = vmatpush.msra.mxu3 %v1718_v22 }
  0x51   :  { %401 = vmatpush.msra.mxu0 %v1729_v24  ;;  %421 = vmatpush.msra.mxu1 %v1734_v25 }
  0x52   :  { %437 = vmatpush.msra.mxu2 %v1747_v27  ;;  %461 = vmatpush.msra.mxu3 %v1742_v26 }
  0x53   :  { %402 = vmatpush.msra.mxu0 %v1753_v28  ;;  %422 = vmatpush.msra.mxu1 %v1758_v29 }
  0x54   :  { %438 = vmatpush.msra.mxu2 %v1771_v31  ;;  %462 = vmatpush.msra.mxu3 %v1766_v30 }
  0x55   :  { %403 = vmatpush.msra.mxu0 %v1777_v32  ;;  %423 = vmatpush.msra.mxu1 %v1782_v33 }
  0x56   :  { %439 = vmatpush.msra.mxu2 %v1795_v35  ;;  %463 = vmatpush.msra.mxu3 %v1790_v34 }
  0x57   :  { %404 = vmatpush.msra.mxu0 %v1801_v36  ;;  %424 = vmatpush.msra.mxu1 %v1806_v37 }
  0x58   :  { %440 = vmatpush.msra.mxu2 %v1819_v39  ;;  %464 = vmatpush.msra.mxu3 %v1814_v38 }
  0x59   :  { %405 = vmatpush.msra.mxu0 %v1825_v40  ;;  %425 = vmatpush.msra.mxu1 %v1830_v41 }
  0x5a   :  { %441 = vmatpush.msra.mxu2 %v1843_v43  ;;  %465 = vmatpush.msra.mxu3 %v1838_v42 }
  0x5b   :  { %406 = vmatpush.msra.mxu0 %v1849_v44  ;;  %426 = vmatpush.msra.mxu1 %v1854_v45 }
  0x5c   :  { %442 = vmatpush.msra.mxu2 %v1867_v47  ;;  %466 = vmatpush.msra.mxu3 %v1862_v46 }
  0x5d   :  { %407 = vmatpush.msra.mxu0 %v1873_v48  ;;  %427 = vmatpush.msra.mxu1 %v1878_v49 }
  0x5e   :  { %443 = vmatpush.msra.mxu2 %v1891_v51  ;;  %467 = vmatpush.msra.mxu3 %v1886_v50 }
  0x5f   :  { %408 = vmatpush.msra.mxu0 %v1897_v52  ;;  %428 = vmatpush.msra.mxu1 %v1902_v53 }
  0x60   :  { %444 = vmatpush.msra.mxu2 %v1915_v55  ;;  %468 = vmatpush.msra.mxu3 %v1910_v54  ;;  %v83_v54 = vld [vmem:[%s2888_s0] sm:$0xff] }
  0x61   :  { %409 = vmatpush.msra.mxu0 %v1921_v56  ;;  %429 = vmatpush.msra.mxu1 %v1926_v57  ;;  %v84_v56 = vld [vmem:[%s2888_s0 + $0x8] sm:$0xff] }
  0x62   :  { %445 = vmatpush.msra.mxu2 %v1943_v59  ;;  %469 = vmatpush.msra.mxu3 %v1934_v58 }
  0x64   :  { %446 = vmatpush.msra.mxu2 %v1949_v61 }
  0x66   :  { %447 = vmatpush.msra.mxu2 %v1956_v62 }
  0x68   :  { %448 = vmatpush.msra.mxu2 %v1965_v63  ;;  %v86_v63 = vld [vmem:[%s2888_s0 + $0x18] sm:$0xff] }
  0x6a   :  { %449 = vmatpush.msra.mxu2 %v1974_v2 }
  0x9e   :  { %v104_v53 = vpop.f32.mrf.mxu0 }
  0x9f   :  { %v167_v57 = vadd.f32 %v104_v53, %v83_v54  ;;  %v124_v52 = vpop.f32.mrf.mxu1 }
  0xa0   :  { %v168_v58 = vadd.f32 %v124_v52, %v84_v56  ;;  %v85_v52 = vld [vmem:[%s2888_s0 + $0x10] sm:$0xff] }
  0xa1   :  { %v1319_v50 = vmul.f32 -1.442695, %v167_v57 }
  0xa2   :  { %v1320_v49 = vmul.f32 -1.442695, %v168_v58 }
  0xa3   :  { %1379 = vpow2.f32 %v1319_v50 }
  0xa4   :  { %1381 = vpow2.f32 %v1320_v49 }
  0xa5   :  { %v164_v2 = vpop.f32.mrf.mxu3 }
  0xa6   :  { %v170_v62 = vadd.f32 %v164_v2, %v86_v63 }
  0xa8   :  { %v1321_v48 = vmul.f32 -1.442695, %v170_v62 }
  0xa9   :  { %v1380_v46 = vpop.eup %1379 }
  0xaa   :  { %v1382_v61 = vpop.eup %1381  ;;  %v174_v45 = vadd.f32 1.0, %v1380_v46  ;;  %1383 = vpow2.f32 %v1321_v48 }
  0xab   :  { %v193_v44 = vadd.f32 1.0, %v1382_v61 }
  0xac   :  { %1385 = vrcp.f32 %v174_v45  ;;  %v186_v48 = vand.u32 2147483648, %v174_v45  ;;  %v184_v42 = vand.u32 2147483647, %v174_v45  ;;  %vm180_vm2 = vweird.f32 %v174_v45 }
  0xad   :  { %1387 = vrcp.f32 %v193_v44  ;;  %v144_v50 = vpop.f32.mrf.mxu2  ;;  %v205_v61 = vand.u32 2147483648, %v193_v44  ;;  %v203_v41 = vand.u32 2147483647, %v193_v44  ;;  %vm199_vm3 = vweird.f32 %v193_v44 }
  0xae   :  { %v169_v54 = vadd.f32 %v144_v50, %v85_v52  ;;  %vm185_vm5 = vcmp.eq.f32.partialorder %v184_v42, 8.507059e+37 }
  0xaf   :  { %vm204_vm7 = vcmp.eq.f32.partialorder %v203_v41, 8.507059e+37 }
  0xb0   :  { %v1384_v53 = vpop.eup %1383 }
  0xb1   :  { %v213_v56 = vadd.f32 1.0, %v1384_v53  ;;  %v187_v53 = vor.u32 1.1754944e-38, %v186_v48  ;;  %v3031_v48 = vld [vmem:[#allocation10_spill] sm:$0xff] }
  0xb2   :  { %v1386_v57 = vpop.eup %1385 }
  0xb3   :  { %v1388_v49 = vpop.eup %1387  ;;  %v176_v58 = vmul.f32 %v1386_v57, %v174_v45  ;;  %1389 = vrcp.f32 %v213_v56  ;;  %vm181_vm0 = vweird.f32 %v1386_v57  ;;  %v225_v45 = vand.u32 2147483648, %v213_v56 }
  0xb4   :  { %v195_v2 = vmul.f32 %v1388_v49, %v193_v44  ;;  %1391 = vtanh.f32 %v169_v54  ;;  %vm200_vm1 = vweird.f32 %v1388_v49  ;;  %vm182_vm4 = vmor %vm180_vm2, %vm181_vm0  ;;  %v206_v54 = vor.u32 1.1754944e-38, %v205_v61  ;;  %v3032_v61 = vld [vmem:[#allocation26_spill] sm:$0xff] }
  0xb5   :  { %v177_v62 = vsub.f32 1.0, %v176_v58  ;;  %vm201_vm6 = vmor %vm199_vm3, %vm200_vm1  ;;  %vm219_vm9 = vweird.f32 %v213_v56  ;;  %v226_v42 = vor.u32 1.1754944e-38, %v225_v45  ;;  %v3042_v45 = vld [vmem:[#allocation19_spill] sm:$0xff] }
  0xb6   :  { %v196_v46 = vsub.f32 1.0, %v195_v2 }
  0xb7   :  { %v178_v63 = vmul.f32 %v1386_v57, %v177_v62 }
  0xb8   :  { %v197_v59 = vmul.f32 %v1388_v49, %v196_v46 }
  0xb9   :  { %v1390_v40 = vpop.eup %1389  ;;  %v179_v38 = vadd.f32 %v1386_v57, %v178_v63 }
  0xba   :  { %v1392_v52 = vpop.eup %1391  ;;  %v215_v50 = vmul.f32 %v1390_v40, %v213_v56  ;;  %v198_v55 = vadd.f32 %v1388_v49, %v197_v59  ;;  %vm220_vm8 = vweird.f32 %v1390_v40  ;;  %v223_v59 = vand.u32 2147483647, %v213_v56  ;;  %v3029_v56 = vld [vmem:[#allocation8_spill] sm:$0xff] }
  0xbb   :  { %v183_v58 = vsel %vm182_vm4, %v1386_v57, %v179_v38  ;;  %vm221_vm10 = vmor %vm219_vm9, %vm220_vm8 }
  0xbc   :  { %v216_v2 = vsub.f32 1.0, %v215_v50  ;;  %v188_v62 = vsel %vm185_vm5, %v187_v53, %v183_v58  ;;  %v202_v37 = vsel %vm201_vm6, %v1388_v49, %v198_v55  ;;  %vm224_vm11 = vcmp.eq.f32.partialorder %v223_v59, 8.507059e+37  ;;  %v3030_v49 = vld [vmem:[#allocation9_spill] sm:$0xff]  ;;  %v3034_v50 = vld [vmem:[#allocation12_spill] sm:$0xff]  ;;  %v3037_v58 = vld [vmem:[#allocation14_spill] sm:$0xff] }
  0xbd   :  { %v207_v46 = vsel %vm204_vm7, %v206_v54, %v202_v37  ;;  %v230_v36 = vmul.f32 %v1392_v52, %v188_v62  ;;  %v3026_v37 = vld [vmem:[#allocation6_spill] sm:$0xff]  ;;  %v3033_v52 = vld [vmem:[#allocation11_spill] sm:$0xff]  ;;  %v3035_v53 = vld [vmem:[#allocation13_spill] sm:$0xff] }
  0xbe   :  { %v217_v34 = vmul.f32 %v1390_v40, %v216_v2  ;;  %v229_v51 = vmul.f32 0.0, %v207_v46  ;;  %v3036_v54 = vld [vmem:[#allocation27_spill] sm:$0xff]  ;;  %v3039_v62 = vld [vmem:[#allocation16_spill] sm:$0xff] }
  0xbf   :  { %v3038_v2 = vld [vmem:[#allocation15_spill] sm:$0xff]  ;;  %v3040_v46 = vld [vmem:[#allocation28_spill] sm:$0xff] }
  0xc0   :  { %v2111_v63 = vadd.f32 %v230_v36, %v229_v51  ;;  %v218_v44 = vadd.f32 %v1390_v40, %v217_v34  ;;  %v3024_v34 = vld [vmem:[#allocation18_spill] sm:$0xff]  ;;  %v3025_v36 = vld [vmem:[#allocation5_spill] sm:$0xff]  ;;  %v3043_v59 = vld [vmem:[#allocation20_spill] sm:$0xff] }
  0xc1   :  { %v3028_v51 = vld [vmem:[#allocation22_spill] sm:$0xff] }
  0xc2   :  { %1393 = vtanh.f32 %v2111_v63  ;;  %v222_v38 = vsel %vm221_vm10, %v1390_v40, %v218_v44  ;;  %v3027_v40 = vld [vmem:[#allocation7_spill] sm:$0xff]  ;;  %v3041_v44 = vld [vmem:[#allocation17_spill] sm:$0xff] }
  0xc3   :  { %v227_v55 = vsel %vm224_vm11, %v226_v42, %v222_v38  ;;  %v3044_v38 = vld [vmem:[#allocation29_spill] sm:$0xff] }
  0xc4   :  { %v3045_v42 = vld [vmem:[#allocation21_spill] sm:$0xff] }
  0xc8   :  { %v1394_v57 = vpop.eup %1393 }
  0xc9   :  { %v233_v41 = vmul.f32 %v1394_v57, %v227_v55  ;;  %v3046_v57 = vld [vmem:[#allocation23_spill] sm:$0xff]  ;;  %v3047_v55 = vld [vmem:[#allocation24_spill] sm:$0xff] }
  0xcb   :  { %234 = vst [vmem:[%s2889_s2] sm:$0xff] %v233_v41  ;;  %256 = vmatmul.f32.vlgmr.msrb.gmra.mxu0 %v233_v41  ;;  %276 = vmatmul.f32.vlgmr.msrb.gmra.mxu1 %v233_v41 }
  0xcc   :  { %296 = vmatmul.f32.vlgmr.msrb.gmra.mxu2 %v233_v41  ;;  %316 = vmatmul.f32.vlgmr.msrb.gmra.mxu3 %v233_v41  ;;  %v3048_v41 = vld [vmem:[#allocation30_spill] sm:$0xff] }
  0xcd   :  { %548 = vmatpush.msrb.mxu0 %v1590_v0  ;;  %568 = vmatpush.msrb.mxu1 %v1595_v1 }
  0xce   :  { %588 = vmatpush.msrb.mxu2 %v1687_v17  ;;  %608 = vmatpush.msrb.mxu3 %v3023_v60 }
  0xcf   :  { %549 = vmatpush.msrb.mxu0 %v1607_v3  ;;  %569 = vmatpush.msrb.mxu1 %v1612_v4 }
  0xd0   :  { %589 = vmatpush.msrb.mxu2 %v1699_v19  ;;  %609 = vmatpush.msrb.mxu3 %v1617_v5 }
  0xd1   :  { %550 = vmatpush.msrb.mxu0 %v1623_v6  ;;  %570 = vmatpush.msrb.mxu1 %v1628_v7 }
  0xd2   :  { %590 = vmatpush.msrb.mxu2 %v1723_v23  ;;  %610 = vmatpush.msrb.mxu3 %v1635_v8 }
  0xd3   :  { %551 = vmatpush.msrb.mxu0 %v1641_v9  ;;  %571 = vmatpush.msrb.mxu1 %v1646_v10 }
  0xd4   :  { %591 = vmatpush.msrb.mxu2 %v1747_v27  ;;  %611 = vmatpush.msrb.mxu3 %v1653_v11 }
  0xd5   :  { %552 = vmatpush.msrb.mxu0 %v1659_v12  ;;  %572 = vmatpush.msrb.mxu1 %v1664_v13 }
  0xd6   :  { %592 = vmatpush.msrb.mxu2 %v1771_v31  ;;  %612 = vmatpush.msrb.mxu3 %v1671_v14 }
  0xd7   :  { %553 = vmatpush.msrb.mxu0 %v1677_v15  ;;  %573 = vmatpush.msrb.mxu1 %v1682_v16 }
  0xd8   :  { %593 = vmatpush.msrb.mxu2 %v1795_v35  ;;  %613 = vmatpush.msrb.mxu3 %v1694_v18 }
  0xd9   :  { %554 = vmatpush.msrb.mxu0 %v1705_v20  ;;  %574 = vmatpush.msrb.mxu1 %v1710_v21 }
  0xda   :  { %594 = vmatpush.msrb.mxu2 %v1819_v39  ;;  %614 = vmatpush.msrb.mxu3 %v1718_v22 }
  0xdb   :  { %555 = vmatpush.msrb.mxu0 %v1729_v24  ;;  %575 = vmatpush.msrb.mxu1 %v1734_v25 }
  0xdc   :  { %595 = vmatpush.msrb.mxu2 %v1843_v43  ;;  %615 = vmatpush.msrb.mxu3 %v1742_v26 }
  0xdd   :  { %556 = vmatpush.msrb.mxu0 %v1753_v28  ;;  %576 = vmatpush.msrb.mxu1 %v1758_v29 }
  0xde   :  { %596 = vmatpush.msrb.mxu2 %v1867_v47  ;;  %616 = vmatpush.msrb.mxu3 %v1766_v30 }
  0xdf   :  { %557 = vmatpush.msrb.mxu0 %v1777_v32  ;;  %577 = vmatpush.msrb.mxu1 %v1782_v33 }
  0xe0   :  { %597 = vmatpush.msrb.mxu2 %v3024_v34  ;;  %617 = vmatpush.msrb.mxu3 %v3025_v36 }
  0xe1   :  { %558 = vmatpush.msrb.mxu0 %v3026_v37  ;;  %578 = vmatpush.msrb.mxu1 %v3027_v40 }
  0xe2   :  { %598 = vmatpush.msrb.mxu2 %v3028_v51  ;;  %618 = vmatpush.msrb.mxu3 %v3029_v56 }
  0xe3   :  { %559 = vmatpush.msrb.mxu0 %v3030_v49  ;;  %579 = vmatpush.msrb.mxu1 %v3031_v48 }
  0xe4   :  { %599 = vmatpush.msrb.mxu2 %v3032_v61  ;;  %619 = vmatpush.msrb.mxu3 %v3033_v52 }
  0xe5   :  { %560 = vmatpush.msrb.mxu0 %v3034_v50  ;;  %580 = vmatpush.msrb.mxu1 %v3035_v53 }
  0xe6   :  { %600 = vmatpush.msrb.mxu2 %v3036_v54  ;;  %620 = vmatpush.msrb.mxu3 %v3037_v58 }
  0xe7   :  { %561 = vmatpush.msrb.mxu0 %v3038_v2  ;;  %581 = vmatpush.msrb.mxu1 %v3039_v62  ;;  %v3049_v2 = vld [vmem:[#allocation25_spill] sm:$0xff] }
  0xe8   :  { %601 = vmatpush.msrb.mxu2 %v3040_v46  ;;  %621 = vmatpush.msrb.mxu3 %v3041_v44  ;;  %v1322_v44 = vld [vmem:[%s2888_s0 + $0x20] sm:$0xff] }
  0xe9   :  { %562 = vmatpush.msrb.mxu0 %v3042_v45  ;;  %582 = vmatpush.msrb.mxu1 %v3043_v59  ;;  %v1323_v59 = vld [vmem:[%s2888_s0 + $0x28] sm:$0xff] }
  0xea   :  { %602 = vmatpush.msrb.mxu2 %v3044_v38  ;;  %622 = vmatpush.msrb.mxu3 %v3045_v42 }
  0xeb   :  { %563 = vmatpush.msrb.mxu0 %v3046_v57  ;;  %583 = vmatpush.msrb.mxu1 %v3047_v55 }
  0xec   :  { %603 = vmatpush.msrb.mxu2 %v3048_v41  ;;  %623 = vmatpush.msrb.mxu3 %v3049_v2  ;;  %v1325_v41 = vld [vmem:[%s2888_s0 + $0x38] sm:$0xff] }
 0x148   :  { %v257_v45 = vpop.f32.mrf.mxu0  ;;  %v277_v38 = vpop.f32.mrf.mxu1 }
 0x149   :  { %v320_v46 = vadd.f32 %v1322_v44, %v257_v45  ;;  %v321_v42 = vadd.f32 %v1323_v59, %v277_v38 }
 0x14b   :  { %v1326_v62 = vmul.f32 -1.442695, %v320_v46  ;;  %v1327_v57 = vmul.f32 -1.442695, %v321_v42  ;;  %v1324_v46 = vld [vmem:[%s2888_s0 + $0x30] sm:$0xff] }
 0x14d   :  { %1395 = vpow2.f32 %v1326_v62 }
 0x14e   :  { %1397 = vpow2.f32 %v1327_v57 }
 0x14f   :  { %v317_v2 = vpop.f32.mrf.mxu3  ;;  %v297_v62 = vpop.f32.mrf.mxu2 }
 0x150   :  { %v323_v55 = vadd.f32 %v1325_v41, %v317_v2  ;;  %v322_v38 = vadd.f32 %v1324_v46, %v297_v62 }
 0x152   :  { %v1328_v58 = vmul.f32 -1.442695, %v323_v55 }
 0x153   :  { %v1396_v54 = vpop.eup %1395 }
 0x154   :  { %v1398_v53 = vpop.eup %1397  ;;  %v327_v50 = vadd.f32 1.0, %v1396_v54  ;;  %1399 = vpow2.f32 %v1328_v58 }
 0x155   :  { %v346_v52 = vadd.f32 1.0, %v1398_v53 }
 0x156   :  { %1401 = vrcp.f32 %v327_v50  ;;  %v339_v54 = vand.u32 2147483648, %v327_v50  ;;  %v337_v61 = vand.u32 2147483647, %v327_v50  ;;  %vm333_vm14 = vweird.f32 %v327_v50 }
 0x157   :  { %1403 = vrcp.f32 %v346_v52  ;;  %v358_v53 = vand.u32 2147483648, %v346_v52  ;;  %v356_v49 = vand.u32 2147483647, %v346_v52  ;;  %vm352_vm15 = vweird.f32 %v346_v52 }
 0x158   :  { %v340_v46 = vor.u32 1.1754944e-38, %v339_v54  ;;  %vm338_vm2 = vcmp.eq.f32.partialorder %v337_v61, 8.507059e+37 }
 0x159   :  { %vm357_vm3 = vcmp.eq.f32.partialorder %v356_v49, 8.507059e+37 }
 0x15a   :  { %v1400_v44 = vpop.eup %1399 }
 0x15b   :  { %v366_v45 = vadd.f32 1.0, %v1400_v44 }
 0x15c   :  { %v1402_v59 = vpop.eup %1401 }
 0x15d   :  { %v1404_v42 = vpop.eup %1403  ;;  %v329_v57 = vmul.f32 %v1402_v59, %v327_v50  ;;  %1405 = vrcp.f32 %v366_v45  ;;  %vm334_vm12 = vweird.f32 %v1402_v59  ;;  %vm372_vm5 = vweird.f32 %v366_v45 }
 0x15e   :  { %v348_v2 = vmul.f32 %v1404_v42, %v346_v52  ;;  %1407 = vtanh.f32 %v322_v38  ;;  %vm353_vm13 = vweird.f32 %v1404_v42  ;;  %vm335_vm0 = vmor %vm333_vm14, %vm334_vm12 }
 0x15f   :  { %v330_v55 = vsub.f32 1.0, %v329_v57  ;;  %vm354_vm1 = vmor %vm352_vm15, %vm353_vm13  ;;  %v359_v57 = vor.u32 1.1754944e-38, %v358_v53 }
 0x160   :  { %v349_v41 = vsub.f32 1.0, %v348_v2 }
 0x161   :  { %v331_v58 = vmul.f32 %v1402_v59, %v330_v55 }
 0x162   :  { %v350_v48 = vmul.f32 %v1404_v42, %v349_v41 }
 0x163   :  { %v1406_v56 = vpop.eup %1405  ;;  %v332_v51 = vadd.f32 %v1402_v59, %v331_v58 }
 0x164   :  { %v351_v62 = vadd.f32 %v1404_v42, %v350_v48  ;;  %v368_v44 = vmul.f32 %v1406_v56, %v366_v45  ;;  %v1408_v38 = vpop.eup %1407  ;;  %vm373_vm4 = vweird.f32 %v1406_v56  ;;  %v378_v48 = vand.u32 2147483648, %v366_v45 }
 0x165   :  { %v336_v2 = vsel %vm335_vm0, %v1402_v59, %v332_v51  ;;  %v376_v51 = vand.u32 2147483647, %v366_v45  ;;  %vm374_vm6 = vmor %vm372_vm5, %vm373_vm4 }
 0x166   :  { %v341_v40 = vsel %vm338_vm2, %v340_v46, %v336_v2  ;;  %v355_v55 = vsel %vm354_vm1, %v1404_v42, %v351_v62  ;;  %v369_v37 = vsub.f32 1.0, %v368_v44  ;;  %v379_v59 = vor.u32 1.1754944e-38, %v378_v48 }
 0x167   :  { %v360_v41 = vsel %vm357_vm3, %v359_v57, %v355_v55  ;;  %v383_v36 = vmul.f32 %v1408_v38, %v341_v40  ;;  %vm377_vm7 = vcmp.eq.f32.partialorder %v376_v51, 8.507059e+37  ;;  %v1332_v40 = vld [vmem:[%s2888_s0 + $0x50] sm:$0xff] }
 0x168   :  { %v382_v34 = vmul.f32 %v360_v41, %v2111_v63  ;;  %v370_v58 = vmul.f32 %v1406_v56, %v369_v37 }
 0x16a   :  { %v2194_v50 = vadd.f32 %v383_v36, %v382_v34  ;;  %v371_v52 = vadd.f32 %v1406_v56, %v370_v58 }
 0x16c   :  { %1409 = vtanh.f32 %v2194_v50  ;;  %v375_v61 = vsel %vm374_vm6, %v1406_v56, %v371_v52 }
 0x16d   :  { %v380_v42 = vsel %vm377_vm7, %v379_v59, %v375_v61 }
 0x172   :  { %v1410_v49 = vpop.eup %1409 }
 0x173   :  { %v386_v54 = vmul.f32 %v1410_v49, %v380_v42 }
 0x175   :  { %1329 = vst [vmem:[%s2889_s2 + $0x8] sm:$0xff] %v386_v54  ;;  %410 = vmatmul.f32.vlgmr.msra.gmra.mxu0 %v386_v54  ;;  %430 = vmatmul.f32.vlgmr.msra.gmra.mxu1 %v386_v54 }
 0x176   :  { %450 = vmatmul.f32.vlgmr.msra.gmra.mxu2 %v386_v54  ;;  %470 = vmatmul.f32.vlgmr.msra.gmra.mxu3 %v386_v54 }
 0x177   :  { %702 = vmatpush.msra.mxu0 %v1590_v0  ;;  %722 = vmatpush.msra.mxu1 %v1595_v1  ;;  %v3050_v0 = vld [vmem:[#allocation18_spill] sm:$0xff]  ;;  %v3051_v1 = vld [vmem:[#allocation5_spill] sm:$0xff] }
 0x178   :  { %742 = vmatpush.msra.mxu2 %v1687_v17  ;;  %762 = vmatpush.msra.mxu3 %v3023_v60  ;;  %v3066_v17 = vld [vmem:[#allocation28_spill] sm:$0xff] }
 0x179   :  { %703 = vmatpush.msra.mxu0 %v1607_v3  ;;  %723 = vmatpush.msra.mxu1 %v1612_v4  ;;  %v3052_v3 = vld [vmem:[#allocation6_spill] sm:$0xff]  ;;  %v3053_v4 = vld [vmem:[#allocation7_spill] sm:$0xff] }
 0x17a   :  { %743 = vmatpush.msra.mxu2 %v1699_v19  ;;  %763 = vmatpush.msra.mxu3 %v1617_v5  ;;  %v3054_v5 = vld [vmem:[#allocation22_spill] sm:$0xff]  ;;  %v3068_v19 = vld [vmem:[#allocation19_spill] sm:$0xff] }
 0x17b   :  { %704 = vmatpush.msra.mxu0 %v1623_v6  ;;  %724 = vmatpush.msra.mxu1 %v1628_v7  ;;  %v3055_v6 = vld [vmem:[#allocation8_spill] sm:$0xff]  ;;  %v3056_v7 = vld [vmem:[#allocation9_spill] sm:$0xff] }
 0x17c   :  { %744 = vmatpush.msra.mxu2 %v1723_v23  ;;  %764 = vmatpush.msra.mxu3 %v1635_v8  ;;  %v3057_v8 = vld [vmem:[#allocation10_spill] sm:$0xff]  ;;  %v3072_v23 = vld [vmem:[#allocation23_spill] sm:$0xff] }
 0x17d   :  { %705 = vmatpush.msra.mxu0 %v1641_v9  ;;  %725 = vmatpush.msra.mxu1 %v1646_v10  ;;  %v3058_v9 = vld [vmem:[#allocation26_spill] sm:$0xff]  ;;  %v3059_v10 = vld [vmem:[#allocation11_spill] sm:$0xff] }
 0x17e   :  { %745 = vmatpush.msra.mxu2 %v1747_v27  ;;  %765 = vmatpush.msra.mxu3 %v1653_v11  ;;  %v3060_v11 = vld [vmem:[#allocation12_spill] sm:$0xff] }
 0x17f   :  { %706 = vmatpush.msra.mxu0 %v1659_v12  ;;  %726 = vmatpush.msra.mxu1 %v1664_v13  ;;  %v3061_v12 = vld [vmem:[#allocation13_spill] sm:$0xff]  ;;  %v3062_v13 = vld [vmem:[#allocation27_spill] sm:$0xff]  ;;  %v1330_v27 = vld [vmem:[%s2888_s0 + $0x40] sm:$0xff] }
 0x180   :  { %746 = vmatpush.msra.mxu2 %v1771_v31  ;;  %766 = vmatpush.msra.mxu3 %v1671_v14  ;;  %v3063_v14 = vld [vmem:[#allocation14_spill] sm:$0xff] }
 0x181   :  { %707 = vmatpush.msra.mxu0 %v1677_v15  ;;  %727 = vmatpush.msra.mxu1 %v1682_v16  ;;  %v3064_v15 = vld [vmem:[#allocation15_spill] sm:$0xff]  ;;  %v3065_v16 = vld [vmem:[#allocation16_spill] sm:$0xff] }
 0x182   :  { %747 = vmatpush.msra.mxu2 %v1795_v35  ;;  %767 = vmatpush.msra.mxu3 %v1694_v18  ;;  %v3067_v18 = vld [vmem:[#allocation17_spill] sm:$0xff] }
 0x183   :  { %708 = vmatpush.msra.mxu0 %v1705_v20  ;;  %728 = vmatpush.msra.mxu1 %v1710_v21  ;;  %v3069_v20 = vld [vmem:[#allocation20_spill] sm:$0xff]  ;;  %v3070_v21 = vld [vmem:[#allocation29_spill] sm:$0xff] }
 0x184   :  { %748 = vmatpush.msra.mxu2 %v1819_v39  ;;  %768 = vmatpush.msra.mxu3 %v1718_v22  ;;  %v3071_v22 = vld [vmem:[#allocation21_spill] sm:$0xff]  ;;  %v1333_v39 = vld [vmem:[%s2888_s0 + $0x58] sm:$0xff] }
 0x185   :  { %709 = vmatpush.msra.mxu0 %v1729_v24  ;;  %729 = vmatpush.msra.mxu1 %v1734_v25  ;;  %v3073_v24 = vld [vmem:[#allocation24_spill] sm:$0xff]  ;;  %v3074_v25 = vld [vmem:[#allocation30_spill] sm:$0xff] }
 0x186   :  { %749 = vmatpush.msra.mxu2 %v1843_v43  ;;  %769 = vmatpush.msra.mxu3 %v1742_v26  ;;  %v3075_v26 = vld [vmem:[#allocation25_spill] sm:$0xff] }
 0x187   :  { %710 = vmatpush.msra.mxu0 %v1753_v28  ;;  %730 = vmatpush.msra.mxu1 %v1758_v29  ;;  %v1331_v28 = vld [vmem:[%s2888_s0 + $0x48] sm:$0xff] }
 0x188   :  { %750 = vmatpush.msra.mxu2 %v1867_v47  ;;  %770 = vmatpush.msra.mxu3 %v1766_v30 }
 0x189   :  { %711 = vmatpush.msra.mxu0 %v1777_v32  ;;  %731 = vmatpush.msra.mxu1 %v1782_v33 }
 0x18a   :  { %751 = vmatpush.msra.mxu2 %v3050_v0  ;;  %771 = vmatpush.msra.mxu3 %v3051_v1 }
 0x18b   :  { %712 = vmatpush.msra.mxu0 %v3052_v3  ;;  %732 = vmatpush.msra.mxu1 %v3053_v4 }
 0x18c   :  { %752 = vmatpush.msra.mxu2 %v3054_v5  ;;  %772 = vmatpush.msra.mxu3 %v3055_v6 }
 0x18d   :  { %713 = vmatpush.msra.mxu0 %v3056_v7  ;;  %733 = vmatpush.msra.mxu1 %v3057_v8 }
 0x18e   :  { %753 = vmatpush.msra.mxu2 %v3058_v9  ;;  %773 = vmatpush.msra.mxu3 %v3059_v10 }
 0x18f   :  { %714 = vmatpush.msra.mxu0 %v3060_v11  ;;  %734 = vmatpush.msra.mxu1 %v3061_v12 }
 0x190   :  { %754 = vmatpush.msra.mxu2 %v3062_v13  ;;  %774 = vmatpush.msra.mxu3 %v3063_v14 }
 0x191   :  { %715 = vmatpush.msra.mxu0 %v3064_v15  ;;  %735 = vmatpush.msra.mxu1 %v3065_v16 }
 0x192   :  { %755 = vmatpush.msra.mxu2 %v3066_v17  ;;  %775 = vmatpush.msra.mxu3 %v3067_v18 }
 0x193   :  { %716 = vmatpush.msra.mxu0 %v3068_v19  ;;  %736 = vmatpush.msra.mxu1 %v3069_v20 }
 0x194   :  { %756 = vmatpush.msra.mxu2 %v3070_v21  ;;  %776 = vmatpush.msra.mxu3 %v3071_v22  ;;  %v2292_v21 = vld [vmem:[%s2887_s1 + $0x1e8] sm:$0xff]  ;;  %v2298_v22 = vld [vmem:[%s2887_s1 + $0x1f0] sm:$0xff] }
 0x195   :  { %717 = vmatpush.msra.mxu0 %v3072_v23  ;;  %737 = vmatpush.msra.mxu1 %v3073_v24  ;;  %v2304_v23 = vld [vmem:[%s2887_s1 + $0x1f8] sm:$0xff]  ;;  %v2310_v24 = vld [vmem:[%s2887_s1 + $0x1c0] sm:$0xff] }
 0x196   :  { %757 = vmatpush.msra.mxu2 %v3074_v25  ;;  %777 = vmatpush.msra.mxu3 %v3075_v26  ;;  %v2316_v25 = vld [vmem:[%s2887_s1 + $0x1c8] sm:$0xff]  ;;  %v2322_v26 = vld [vmem:[%s2887_s1 + $0x1d0] sm:$0xff] }
 0x1f2   :  { %v411_v29 = vpop.f32.mrf.mxu0  ;;  %v431_v30 = vpop.f32.mrf.mxu1 }
 0x1f3   :  { %v474_v31 = vadd.f32 %v1330_v27, %v411_v29  ;;  %v475_v32 = vadd.f32 %v1331_v28, %v431_v30  ;;  %v2328_v27 = vld [vmem:[%s2887_s1 + $0x1d8] sm:$0xff]  ;;  %v2334_v28 = vld [vmem:[%s2887_s1 + $0x1a0] sm:$0xff]  ;;  %v2340_v29 = vld [vmem:[%s2887_s1 + $0x1a8] sm:$0xff] }
 0x1f4   :  { %v2346_v30 = vld [vmem:[%s2887_s1 + $0x1b0] sm:$0xff] }
 0x1f5   :  { %v1334_v33 = vmul.f32 -1.442695, %v474_v31  ;;  %v1335_v35 = vmul.f32 -1.442695, %v475_v32  ;;  %v2352_v31 = vld [vmem:[%s2887_s1 + $0x1b8] sm:$0xff]  ;;  %v2358_v32 = vld [vmem:[%s2887_s1 + $0x180] sm:$0xff] }
 0x1f7   :  { %1411 = vpow2.f32 %v1334_v33  ;;  %v2364_v33 = vld [vmem:[%s2887_s1 + $0x188] sm:$0xff] }
 0x1f8   :  { %1413 = vpow2.f32 %v1335_v35  ;;  %v2370_v35 = vld [vmem:[%s2887_s1 + $0x190] sm:$0xff] }
 0x1f9   :  { %v471_v43 = vpop.f32.mrf.mxu3  ;;  %v451_v56 = vpop.f32.mrf.mxu2 }
 0x1fa   :  { %v477_v47 = vadd.f32 %v1333_v39, %v471_v43  ;;  %v476_v62 = vadd.f32 %v1332_v40, %v451_v56  ;;  %v2376_v39 = vld [vmem:[%s2887_s1 + $0x198] sm:$0xff]  ;;  %v2382_v43 = vld [vmem:[%s2887_s1 + $0x160] sm:$0xff] }
 0x1fb   :  { %v2424_v40 = vld [vmem:[%s2887_s1 + $0x158] sm:$0xff]  ;;  %v2430_v56 = vld [vmem:[%s2887_s1 + $0x120] sm:$0xff] }
 0x1fc   :  { %v1336_v60 = vmul.f32 -1.442695, %v477_v47  ;;  %v2388_v47 = vld [vmem:[%s2887_s1 + $0x168] sm:$0xff] }
 0x1fd   :  { %v1412_v63 = vpop.eup %1411 }
 0x1fe   :  { %v1414_v34 = vpop.eup %1413  ;;  %v481_v36 = vadd.f32 1.0, %v1412_v63  ;;  %1415 = vpow2.f32 %v1336_v60  ;;  %v2394_v60 = vld [vmem:[%s2887_s1 + $0x170] sm:$0xff]  ;;  %v2400_v63 = vld [vmem:[%s2887_s1 + $0x178] sm:$0xff] }
 0x1ff   :  { %v500_v37 = vadd.f32 1.0, %v1414_v34  ;;  %v2406_v34 = vld [vmem:[%s2887_s1 + $0x140] sm:$0xff] }
 0x200   :  { %1417 = vrcp.f32 %v481_v36  ;;  %v493_v41 = vand.u32 2147483648, %v481_v36  ;;  %v491_v48 = vand.u32 2147483647, %v481_v36  ;;  %vm487_vm10 = vweird.f32 %v481_v36 }
 0x201   :  { %1419 = vrcp.f32 %v500_v37  ;;  %v512_v58 = vand.u32 2147483648, %v500_v37  ;;  %v510_v61 = vand.u32 2147483647, %v500_v37  ;;  %vm506_vm11 = vweird.f32 %v500_v37 }
 0x202   :  { %v494_v42 = vor.u32 1.1754944e-38, %v493_v41  ;;  %vm492_vm14 = vcmp.eq.f32.partialorder %v491_v48, 8.507059e+37  ;;  %v2490_v41 = vld [vmem:[%s2887_s1 + $0xf0] sm:$0xff]  ;;  %v2508_v48 = vld [vmem:[%s2887_s1 + $0xc8] sm:$0xff] }
 0x203   :  { %v513_v1 = vor.u32 1.1754944e-38, %v512_v58  ;;  %vm511_vm15 = vcmp.eq.f32.partialorder %v510_v61, 8.507059e+37  ;;  %v2496_v58 = vld [vmem:[%s2887_s1 + $0xf8] sm:$0xff] }
 0x204   :  { %v1416_v45 = vpop.eup %1415  ;;  %v2520_v61 = vld [vmem:[%s2887_s1 + $0xd8] sm:$0xff] }
 0x205   :  { %v520_v53 = vadd.f32 1.0, %v1416_v45  ;;  %v2436_v45 = vld [vmem:[%s2887_s1 + $0x128] sm:$0xff]  ;;  %3077 = vst [vmem:[#allocation18_spill] sm:$0xff] %v2520_v61 }
 0x206   :  { %v1418_v46 = vpop.eup %1417 }
 0x207   :  { %v1420_v44 = vpop.eup %1419  ;;  %v483_v57 = vmul.f32 %v1418_v46, %v481_v36  ;;  %1421 = vrcp.f32 %v520_v53  ;;  %vm488_vm8 = vweird.f32 %v1418_v46  ;;  %v532_v14 = vand.u32 2147483648, %v520_v53  ;;  %v2412_v36 = vld [vmem:[%s2887_s1 + $0x148] sm:$0xff] }
 0x208   :  { %v502_v2 = vmul.f32 %v1420_v44, %v500_v37  ;;  %1423 = vtanh.f32 %v476_v62  ;;  %vm507_vm9 = vweird.f32 %v1420_v44  ;;  %vm489_vm12 = vmor %vm487_vm10, %vm488_vm8  ;;  %vm526_vm1 = vweird.f32 %v520_v53  ;;  %v2418_v37 = vld [vmem:[%s2887_s1 + $0x150] sm:$0xff]  ;;  %v2454_v62 = vld [vmem:[%s2887_s1 + $0x100] sm:$0xff] }
 0x209   :  { %v484_v38 = vsub.f32 1.0, %v483_v57  ;;  %vm508_vm13 = vmor %vm506_vm11, %vm507_vm9  ;;  %v530_v15 = vand.u32 2147483647, %v520_v53  ;;  %v533_v17 = vor.u32 1.1754944e-38, %v532_v14  ;;  %v2466_v57 = vld [vmem:[%s2887_s1 + $0x110] sm:$0xff]  ;;  %v2622_v14 = vld [vmem:[%s2887_s1 + $0x20] sm:$0xff] }
 0x20a   :  { %v503_v55 = vsub.f32 1.0, %v502_v2  ;;  %v2472_v2 = vld [vmem:[%s2887_s1 + $0x118] sm:$0xff]  ;;  %3094 = vst [vmem:[#allocation17_spill] sm:$0xff] %v2622_v14 }
 0x20b   :  { %v485_v52 = vmul.f32 %v1418_v46, %v484_v38  ;;  %vm531_vm3 = vcmp.eq.f32.partialorder %v530_v15, 8.507059e+37  ;;  %v2478_v38 = vld [vmem:[%s2887_s1 + $0xe0] sm:$0xff]  ;;  %v2628_v15 = vld [vmem:[%s2887_s1 + $0x28] sm:$0xff] }
 0x20c   :  { %v504_v51 = vmul.f32 %v1420_v44, %v503_v55  ;;  %v2484_v55 = vld [vmem:[%s2887_s1 + $0xe8] sm:$0xff]  ;;  %3095 = vst [vmem:[#allocation19_spill] sm:$0xff] %v2628_v15 }
 0x20d   :  { %v1422_v59 = vpop.eup %1421  ;;  %v486_v49 = vadd.f32 %v1418_v46, %v485_v52  ;;  %v2502_v52 = vld [vmem:[%s2887_s1 + $0xc0] sm:$0xff] }
 0x20e   :  { %v505_v54 = vadd.f32 %v1420_v44, %v504_v51  ;;  %v522_v0 = vmul.f32 %v1422_v59, %v520_v53  ;;  %v1424_v4 = vpop.eup %1423  ;;  %vm527_vm0 = vweird.f32 %v1422_v59  ;;  %v2442_v53 = vld [vmem:[%s2887_s1 + $0x130] sm:$0xff] }
 0x20f   :  { %v490_v3 = vsel %vm489_vm12, %v1418_v46, %v486_v49  ;;  %vm528_vm2 = vmor %vm526_vm1, %vm527_vm0  ;;  %v2448_v46 = vld [vmem:[%s2887_s1 + $0x138] sm:$0xff]  ;;  %v2514_v51 = vld [vmem:[%s2887_s1 + $0xd0] sm:$0xff] }
 0x210   :  { %v495_v5 = vsel %vm492_vm14, %v494_v42, %v490_v3  ;;  %v509_v6 = vsel %vm508_vm13, %v1420_v44, %v505_v54  ;;  %v523_v7 = vsub.f32 1.0, %v522_v0  ;;  %v2460_v44 = vld [vmem:[%s2887_s1 + $0x108] sm:$0xff]  ;;  %3076 = vst [vmem:[#allocation4_spill] sm:$0xff] %v2514_v51  ;;  %v2538_v42 = vld [vmem:[%s2887_s1 + $0xb0] sm:$0xff]  ;;  %v2544_v54 = vld [vmem:[%s2887_s1 + $0xb8] sm:$0xff] }
 0x211   :  { %v514_v8 = vsel %vm511_vm15, %v513_v1, %v509_v6  ;;  %v537_v9 = vmul.f32 %v1424_v4, %v495_v5  ;;  %v2532_v49 = vld [vmem:[%s2887_s1 + $0xa8] sm:$0xff]  ;;  %3080 = vst [vmem:[#allocation7_spill] sm:$0xff] %v2538_v42  ;;  %v2550_v0 = vld [vmem:[%s2887_s1 + $0x80] sm:$0xff]  ;;  %v2562_v3 = vld [vmem:[%s2887_s1 + $0x90] sm:$0xff] }
 0x212   :  { %v536_v10 = vmul.f32 %v514_v8, %v2194_v50  ;;  %v524_v11 = vmul.f32 %v1422_v59, %v523_v7  ;;  %v2286_v50 = vld [vmem:[%s2887_s1 + $0x1e0] sm:$0xff]  ;;  %3079 = vst [vmem:[#allocation6_spill] sm:$0xff] %v2532_v49  ;;  %v2556_v1 = vld [vmem:[%s2887_s1 + $0x88] sm:$0xff]  ;;  %v2568_v4 = vld [vmem:[%s2887_s1 + $0x98] sm:$0xff] }
 0x213   :  { %3081 = vst [vmem:[#allocation22_spill] sm:$0xff] %v2544_v54  ;;  %v2574_v5 = vld [vmem:[%s2887_s1 + $0x60] sm:$0xff]  ;;  %v2580_v6 = vld [vmem:[%s2887_s1 + $0x68] sm:$0xff]  ;;  %v2586_v7 = vld [vmem:[%s2887_s1 + $0x70] sm:$0xff] }
 0x214   :  { %v2277_v12 = vadd.f32 %v537_v9, %v536_v10  ;;  %v525_v13 = vadd.f32 %v1422_v59, %v524_v11  ;;  %3082 = vst [vmem:[#allocation8_spill] sm:$0xff] %v2550_v0  ;;  %v2592_v8 = vld [vmem:[%s2887_s1 + $0x78] sm:$0xff]  ;;  %v2598_v9 = vld [vmem:[%s2887_s1 + $0x40] sm:$0xff]  ;;  %v2604_v10 = vld [vmem:[%s2887_s1 + $0x48] sm:$0xff] }
 0x215   :  { %3083 = vst [vmem:[#allocation9_spill] sm:$0xff] %v2556_v1  ;;  %v2610_v11 = vld [vmem:[%s2887_s1 + $0x50] sm:$0xff] }
 0x216   :  { %1425 = vtanh.f32 %v2277_v12  ;;  %v529_v16 = vsel %vm528_vm2, %v1422_v59, %v525_v13  ;;  %v2526_v59 = vld [vmem:[%s2887_s1 + $0xa0] sm:$0xff]  ;;  %3084 = vst [vmem:[#allocation10_spill] sm:$0xff] %v2562_v3  ;;  %v2616_v13 = vld [vmem:[%s2887_s1 + $0x58] sm:$0xff] }
 0x217   :  { %v534_v19 = vsel %vm531_vm3, %v533_v17, %v529_v16  ;;  %3078 = vst [vmem:[#allocation5_spill] sm:$0xff] %v2526_v59  ;;  %v2634_v16 = vld [vmem:[%s2887_s1 + $0x30] sm:$0xff]  ;;  %v2640_v17 = vld [vmem:[%s2887_s1 + $0x38] sm:$0xff] }
 0x218   :  { %3085 = vst [vmem:[#allocation26_spill] sm:$0xff] %v2568_v4 }
 0x219   :  { %3086 = vst [vmem:[#allocation11_spill] sm:$0xff] %v2574_v5 }
 0x21a   :  { %3087 = vst [vmem:[#allocation12_spill] sm:$0xff] %v2580_v6 }
 0x21b   :  { %3088 = vst [vmem:[#allocation13_spill] sm:$0xff] %v2586_v7 }
 0x21c   :  { %v1426_v18 = vpop.eup %1425  ;;  %3089 = vst [vmem:[#allocation27_spill] sm:$0xff] %v2592_v8 }
 0x21d   :  { %v540_v20 = vmul.f32 %v1426_v18, %v534_v19  ;;  %3090 = vst [vmem:[#allocation14_spill] sm:$0xff] %v2598_v9  ;;  %v2646_v18 = vld [vmem:[%s2887_s1] sm:$0xff]  ;;  %v2652_v19 = vld [vmem:[%s2887_s1 + $0x8] sm:$0xff] }
 0x21e   :  { %3091 = vst [vmem:[#allocation15_spill] sm:$0xff] %v2604_v10 }
 0x21f   :  { %1337 = vst [vmem:[%s2889_s2 + $0x10] sm:$0xff] %v540_v20  ;;  %564 = vmatmul.f32.vlgmr.msrb.gmra.mxu0 %v540_v20  ;;  %584 = vmatmul.f32.vlgmr.msrb.gmra.mxu1 %v540_v20 }
 0x220   :  { %604 = vmatmul.f32.vlgmr.msrb.gmra.mxu2 %v540_v20  ;;  %624 = vmatmul.f32.vlgmr.msrb.gmra.mxu3 %v540_v20  ;;  %3092 = vst [vmem:[#allocation16_spill] sm:$0xff] %v2610_v11  ;;  %v2658_v20 = vld [vmem:[%s2887_s1 + $0x10] sm:$0xff] }
 0x221   :  { %856 = vmatpush.msrb.mxu0 %v2286_v50  ;;  %876 = vmatpush.msrb.mxu1 %v2292_v21  ;;  %3093 = vst [vmem:[#allocation28_spill] sm:$0xff] %v2616_v13 }
 0x222   :  { %896 = vmatpush.msrb.mxu2 %v2298_v22  ;;  %916 = vmatpush.msrb.mxu3 %v2304_v23  ;;  %3096 = vst [vmem:[#allocation20_spill] sm:$0xff] %v2634_v16 }
 0x223   :  { %857 = vmatpush.msrb.mxu0 %v2310_v24  ;;  %877 = vmatpush.msrb.mxu1 %v2316_v25  ;;  %3097 = vst [vmem:[#allocation29_spill] sm:$0xff] %v2640_v17 }
 0x224   :  { %897 = vmatpush.msrb.mxu2 %v2322_v26  ;;  %917 = vmatpush.msrb.mxu3 %v2328_v27  ;;  %3098 = vst [vmem:[#allocation21_spill] sm:$0xff] %v2646_v18 }
 0x225   :  { %858 = vmatpush.msrb.mxu0 %v2334_v28  ;;  %878 = vmatpush.msrb.mxu1 %v2340_v29  ;;  %3099 = vst [vmem:[#allocation23_spill] sm:$0xff] %v2652_v19 }
 0x226   :  { %898 = vmatpush.msrb.mxu2 %v2346_v30  ;;  %918 = vmatpush.msrb.mxu3 %v2352_v31  ;;  %3100 = vst [vmem:[#allocation24_spill] sm:$0xff] %v2658_v20 }
 0x227   :  { %859 = vmatpush.msrb.mxu0 %v2358_v32  ;;  %879 = vmatpush.msrb.mxu1 %v2364_v33 }
 0x228   :  { %899 = vmatpush.msrb.mxu2 %v2370_v35  ;;  %919 = vmatpush.msrb.mxu3 %v2376_v39 }
 0x229   :  { %860 = vmatpush.msrb.mxu0 %v2382_v43  ;;  %880 = vmatpush.msrb.mxu1 %v2388_v47 }
 0x22a   :  { %900 = vmatpush.msrb.mxu2 %v2394_v60  ;;  %920 = vmatpush.msrb.mxu3 %v2400_v63 }
 0x22b   :  { %861 = vmatpush.msrb.mxu0 %v2406_v34  ;;  %881 = vmatpush.msrb.mxu1 %v2412_v36 }
 0x22c   :  { %901 = vmatpush.msrb.mxu2 %v2418_v37  ;;  %921 = vmatpush.msrb.mxu3 %v2424_v40 }
 0x22d   :  { %862 = vmatpush.msrb.mxu0 %v2430_v56  ;;  %882 = vmatpush.msrb.mxu1 %v2436_v45 }
 0x22e   :  { %902 = vmatpush.msrb.mxu2 %v2442_v53  ;;  %922 = vmatpush.msrb.mxu3 %v2448_v46 }
 0x22f   :  { %863 = vmatpush.msrb.mxu0 %v2454_v62  ;;  %883 = vmatpush.msrb.mxu1 %v2460_v44 }
 0x230   :  { %903 = vmatpush.msrb.mxu2 %v2466_v57  ;;  %923 = vmatpush.msrb.mxu3 %v2472_v2 }
 0x231   :  { %864 = vmatpush.msrb.mxu0 %v2478_v38  ;;  %884 = vmatpush.msrb.mxu1 %v2484_v55 }
 0x232   :  { %904 = vmatpush.msrb.mxu2 %v2490_v41  ;;  %924 = vmatpush.msrb.mxu3 %v2496_v58 }
 0x233   :  { %865 = vmatpush.msrb.mxu0 %v2502_v52  ;;  %885 = vmatpush.msrb.mxu1 %v2508_v48 }
 0x234   :  { %905 = vmatpush.msrb.mxu2 %v2514_v51  ;;  %925 = vmatpush.msrb.mxu3 %v2520_v61 }
 0x235   :  { %866 = vmatpush.msrb.mxu0 %v2526_v59  ;;  %886 = vmatpush.msrb.mxu1 %v2532_v49 }
 0x236   :  { %906 = vmatpush.msrb.mxu2 %v2538_v42  ;;  %926 = vmatpush.msrb.mxu3 %v2544_v54 }
 0x237   :  { %867 = vmatpush.msrb.mxu0 %v2550_v0  ;;  %887 = vmatpush.msrb.mxu1 %v2556_v1 }
 0x238   :  { %907 = vmatpush.msrb.mxu2 %v2562_v3  ;;  %927 = vmatpush.msrb.mxu3 %v2568_v4 }
 0x239   :  { %868 = vmatpush.msrb.mxu0 %v2574_v5  ;;  %888 = vmatpush.msrb.mxu1 %v2580_v6 }
 0x23a   :  { %908 = vmatpush.msrb.mxu2 %v2586_v7  ;;  %928 = vmatpush.msrb.mxu3 %v2592_v8 }
 0x23b   :  { %869 = vmatpush.msrb.mxu0 %v2598_v9  ;;  %889 = vmatpush.msrb.mxu1 %v2604_v10  ;;  %v1341_v10 = vld [vmem:[%s2888_s0 + $0x78] sm:$0xff] }
 0x23c   :  { %909 = vmatpush.msrb.mxu2 %v2610_v11  ;;  %929 = vmatpush.msrb.mxu3 %v2616_v13 }
 0x23d   :  { %870 = vmatpush.msrb.mxu0 %v2622_v14  ;;  %890 = vmatpush.msrb.mxu1 %v2628_v15 }
 0x23e   :  { %910 = vmatpush.msrb.mxu2 %v2634_v16  ;;  %930 = vmatpush.msrb.mxu3 %v2640_v17  ;;  %v2664_v17 = vld [vmem:[%s2887_s1 + $0x18] sm:$0xff] }
 0x23f   :  { %871 = vmatpush.msrb.mxu0 %v2646_v18  ;;  %891 = vmatpush.msrb.mxu1 %v2652_v19  ;;  %3101 = vst [vmem:[#allocation30_spill] sm:$0xff] %v2664_v17  ;;  %v1338_v18 = vld [vmem:[%s2888_s0 + $0x60] sm:$0xff]  ;;  %v1339_v19 = vld [vmem:[%s2888_s0 + $0x68] sm:$0xff] }
 0x240   :  { %911 = vmatpush.msrb.mxu2 %v2658_v20  ;;  %931 = vmatpush.msrb.mxu3 %v2664_v17 }
 0x29c   :  { %v565_v16 = vpop.f32.mrf.mxu0  ;;  %v585_v15 = vpop.f32.mrf.mxu1 }
 0x29d   :  { %v628_v14 = vadd.f32 %v1338_v18, %v565_v16  ;;  %v629_v13 = vadd.f32 %v1339_v19, %v585_v15 }
 0x29f   :  { %v1342_v20 = vmul.f32 -1.442695, %v628_v14  ;;  %v1343_v11 = vmul.f32 -1.442695, %v629_v13  ;;  %v1340_v13 = vld [vmem:[%s2888_s0 + $0x70] sm:$0xff] }
 0x2a1   :  { %1427 = vpow2.f32 %v1342_v20 }
 0x2a2   :  { %1429 = vpow2.f32 %v1343_v11 }
 0x2a3   :  { %v625_v17 = vpop.f32.mrf.mxu3  ;;  %v605_v14 = vpop.f32.mrf.mxu2 }
 0x2a4   :  { %v631_v9 = vadd.f32 %v1341_v10, %v625_v17  ;;  %v630_v19 = vadd.f32 %v1340_v13, %v605_v14 }
 0x2a6   :  { %v1344_v8 = vmul.f32 -1.442695, %v631_v9 }
 0x2a7   :  { %v1428_v7 = vpop.eup %1427 }
 0x2a8   :  { %v1430_v6 = vpop.eup %1429  ;;  %v635_v5 = vadd.f32 1.0, %v1428_v7  ;;  %1431 = vpow2.f32 %v1344_v8 }
 0x2a9   :  { %v654_v4 = vadd.f32 1.0, %v1430_v6 }
 0x2aa   :  { %1433 = vrcp.f32 %v635_v5  ;;  %v647_v7 = vand.u32 2147483648, %v635_v5  ;;  %v645_v3 = vand.u32 2147483647, %v635_v5  ;;  %vm641_vm6 = vweird.f32 %v635_v5 }
 0x2ab   :  { %1435 = vrcp.f32 %v654_v4  ;;  %v666_v6 = vand.u32 2147483648, %v654_v4  ;;  %v664_v0 = vand.u32 2147483647, %v654_v4  ;;  %vm660_vm7 = vweird.f32 %v654_v4 }
 0x2ac   :  { %v648_v13 = vor.u32 1.1754944e-38, %v647_v7  ;;  %vm646_vm10 = vcmp.eq.f32.partialorder %v645_v3, 8.507059e+37 }
 0x2ad   :  { %vm665_vm11 = vcmp.eq.f32.partialorder %v664_v0, 8.507059e+37 }
 0x2ae   :  { %v1432_v15 = vpop.eup %1431 }
 0x2af   :  { %v674_v16 = vadd.f32 1.0, %v1432_v15 }
 0x2b0   :  { %v1434_v18 = vpop.eup %1433 }
 0x2b1   :  { %v1436_v11 = vpop.eup %1435  ;;  %v637_v20 = vmul.f32 %v1434_v18, %v635_v5  ;;  %1437 = vrcp.f32 %v674_v16  ;;  %vm642_vm4 = vweird.f32 %v1434_v18  ;;  %vm680_vm13 = vweird.f32 %v674_v16 }
 0x2b2   :  { %v656_v9 = vmul.f32 %v1436_v11, %v654_v4  ;;  %1439 = vtanh.f32 %v630_v19  ;;  %vm661_vm5 = vweird.f32 %v1436_v11  ;;  %vm643_vm8 = vmor %vm641_vm6, %vm642_vm4 }
 0x2b3   :  { %v638_v10 = vsub.f32 1.0, %v637_v20  ;;  %vm662_vm9 = vmor %vm660_vm7, %vm661_vm5  ;;  %v667_v20 = vor.u32 1.1754944e-38, %v666_v6  ;;  %v3109_v6 = vld [vmem:[#allocation9_spill] sm:$0xff] }
 0x2b4   :  { %v657_v17 = vsub.f32 1.0, %v656_v9 }
 0x2b5   :  { %v639_v8 = vmul.f32 %v1434_v18, %v638_v10 }
 0x2b6   :  { %v658_v1 = vmul.f32 %v1436_v11, %v657_v17 }
 0x2b7   :  { %v1438_v54 = vpop.eup %1437  ;;  %v640_v42 = vadd.f32 %v1434_v18, %v639_v8 }
 0x2b8   :  { %v659_v14 = vadd.f32 %v1436_v11, %v658_v1  ;;  %v676_v15 = vmul.f32 %v1438_v54, %v674_v16  ;;  %v1440_v19 = vpop.eup %1439  ;;  %vm681_vm12 = vweird.f32 %v1438_v54  ;;  %v686_v1 = vand.u32 2147483648, %v674_v16 }
 0x2b9   :  { %v644_v9 = vsel %vm643_vm8, %v1434_v18, %v640_v42  ;;  %v684_v42 = vand.u32 2147483647, %v674_v16  ;;  %vm682_vm14 = vmor %vm680_vm13, %vm681_vm12  ;;  %v3108_v16 = vld [vmem:[#allocation8_spill] sm:$0xff] }
 0x2ba   :  { %v649_v49 = vsel %vm646_vm10, %v648_v13, %v644_v9  ;;  %v663_v10 = vsel %vm662_vm9, %v1436_v11, %v659_v14  ;;  %v677_v59 = vsub.f32 1.0, %v676_v15  ;;  %v687_v18 = vor.u32 1.1754944e-38, %v686_v1  ;;  %v3110_v13 = vld [vmem:[#allocation10_spill] sm:$0xff]  ;;  %v3112_v15 = vld [vmem:[#allocation11_spill] sm:$0xff]  ;;  %v3114_v9 = vld [vmem:[#allocation13_spill] sm:$0xff] }
 0x2bb   :  { %v668_v17 = vsel %vm665_vm11, %v667_v20, %v663_v10  ;;  %v691_v61 = vmul.f32 %v1440_v19, %v649_v49  ;;  %vm685_vm15 = vcmp.eq.f32.partialorder %v684_v42, 8.507059e+37  ;;  %v3106_v49 = vld [vmem:[#allocation7_spill] sm:$0xff]  ;;  %v3111_v14 = vld [vmem:[#allocation26_spill] sm:$0xff]  ;;  %v3113_v20 = vld [vmem:[#allocation12_spill] sm:$0xff] }
 0x2bc   :  { %v690_v51 = vmul.f32 %v668_v17, %v2277_v12  ;;  %v678_v8 = vmul.f32 %v1438_v54, %v677_v59  ;;  %v3102_v12 = vld [vmem:[#allocation4_spill] sm:$0xff]  ;;  %v3105_v59 = vld [vmem:[#allocation6_spill] sm:$0xff]  ;;  %v3115_v19 = vld [vmem:[#allocation27_spill] sm:$0xff] }
 0x2bd   :  { %v3116_v10 = vld [vmem:[#allocation14_spill] sm:$0xff]  ;;  %v3117_v17 = vld [vmem:[#allocation15_spill] sm:$0xff]  ;;  %v3120_v1 = vld [vmem:[#allocation17_spill] sm:$0xff] }
 0x2be   :  { %v2680_v5 = vadd.f32 %v691_v61, %v690_v51  ;;  %v679_v4 = vadd.f32 %v1438_v54, %v678_v8  ;;  %v3103_v51 = vld [vmem:[#allocation18_spill] sm:$0xff]  ;;  %v3104_v61 = vld [vmem:[#allocation5_spill] sm:$0xff]  ;;  %v3118_v8 = vld [vmem:[#allocation16_spill] sm:$0xff] }
 0x2bf   :  { %v3121_v42 = vld [vmem:[#allocation19_spill] sm:$0xff] }
 0x2c0   :  { %1441 = vtanh.f32 %v2680_v5  ;;  %v683_v3 = vsel %vm682_vm14, %v1438_v54, %v679_v4  ;;  %v3107_v54 = vld [vmem:[#allocation22_spill] sm:$0xff]  ;;  %v3119_v4 = vld [vmem:[#allocation28_spill] sm:$0xff] }
 0x2c1   :  { %v688_v11 = vsel %vm685_vm15, %v687_v18, %v683_v3  ;;  %v3122_v3 = vld [vmem:[#allocation20_spill] sm:$0xff]  ;;  %v3123_v18 = vld [vmem:[#allocation29_spill] sm:$0xff] }
 0x2c6   :  { %v1442_v0 = vpop.eup %1441 }
 0x2c7   :  { %v694_v7 = vmul.f32 %v1442_v0, %v688_v11  ;;  %v3124_v0 = vld [vmem:[#allocation21_spill] sm:$0xff]  ;;  %v3125_v11 = vld [vmem:[#allocation23_spill] sm:$0xff] }
 0x2c9   :  { %1345 = vst [vmem:[%s2889_s2 + $0x18] sm:$0xff] %v694_v7  ;;  %718 = vmatmul.f32.vlgmr.msra.gmra.mxu0 %v694_v7  ;;  %738 = vmatmul.f32.vlgmr.msra.gmra.mxu1 %v694_v7 }
 0x2ca   :  { %758 = vmatmul.f32.vlgmr.msra.gmra.mxu2 %v694_v7  ;;  %778 = vmatmul.f32.vlgmr.msra.gmra.mxu3 %v694_v7  ;;  %v3126_v7 = vld [vmem:[#allocation24_spill] sm:$0xff] }
 0x2cb   :  { %1010 = vmatpush.msra.mxu0 %v2286_v50  ;;  %1030 = vmatpush.msra.mxu1 %v2292_v21 }
 0x2cc   :  { %1050 = vmatpush.msra.mxu2 %v2298_v22  ;;  %1070 = vmatpush.msra.mxu3 %v2304_v23 }
 0x2cd   :  { %1011 = vmatpush.msra.mxu0 %v2310_v24  ;;  %1031 = vmatpush.msra.mxu1 %v2316_v25 }
 0x2ce   :  { %1051 = vmatpush.msra.mxu2 %v2322_v26  ;;  %1071 = vmatpush.msra.mxu3 %v2328_v27 }
 0x2cf   :  { %1012 = vmatpush.msra.mxu0 %v2334_v28  ;;  %1032 = vmatpush.msra.mxu1 %v2340_v29 }
 0x2d0   :  { %1052 = vmatpush.msra.mxu2 %v2346_v30  ;;  %1072 = vmatpush.msra.mxu3 %v2352_v31 }
 0x2d1   :  { %1013 = vmatpush.msra.mxu0 %v2358_v32  ;;  %1033 = vmatpush.msra.mxu1 %v2364_v33 }
 0x2d2   :  { %1053 = vmatpush.msra.mxu2 %v2370_v35  ;;  %1073 = vmatpush.msra.mxu3 %v2376_v39 }
 0x2d3   :  { %1014 = vmatpush.msra.mxu0 %v2382_v43  ;;  %1034 = vmatpush.msra.mxu1 %v2388_v47 }
 0x2d4   :  { %1054 = vmatpush.msra.mxu2 %v2394_v60  ;;  %1074 = vmatpush.msra.mxu3 %v2400_v63 }
 0x2d5   :  { %1015 = vmatpush.msra.mxu0 %v2406_v34  ;;  %1035 = vmatpush.msra.mxu1 %v2412_v36 }
 0x2d6   :  { %1055 = vmatpush.msra.mxu2 %v2418_v37  ;;  %1075 = vmatpush.msra.mxu3 %v2424_v40 }
 0x2d7   :  { %1016 = vmatpush.msra.mxu0 %v2430_v56  ;;  %1036 = vmatpush.msra.mxu1 %v2436_v45 }
 0x2d8   :  { %1056 = vmatpush.msra.mxu2 %v2442_v53  ;;  %1076 = vmatpush.msra.mxu3 %v2448_v46 }
 0x2d9   :  { %1017 = vmatpush.msra.mxu0 %v2454_v62  ;;  %1037 = vmatpush.msra.mxu1 %v2460_v44 }
 0x2da   :  { %1057 = vmatpush.msra.mxu2 %v2466_v57  ;;  %1077 = vmatpush.msra.mxu3 %v2472_v2 }
 0x2db   :  { %1018 = vmatpush.msra.mxu0 %v2478_v38  ;;  %1038 = vmatpush.msra.mxu1 %v2484_v55 }
 0x2dc   :  { %1058 = vmatpush.msra.mxu2 %v2490_v41  ;;  %1078 = vmatpush.msra.mxu3 %v2496_v58 }
 0x2dd   :  { %1019 = vmatpush.msra.mxu0 %v2502_v52  ;;  %1039 = vmatpush.msra.mxu1 %v2508_v48 }
 0x2de   :  { %1059 = vmatpush.msra.mxu2 %v3102_v12  ;;  %1079 = vmatpush.msra.mxu3 %v3103_v51 }
 0x2df   :  { %1020 = vmatpush.msra.mxu0 %v3104_v61  ;;  %1040 = vmatpush.msra.mxu1 %v3105_v59 }
 0x2e0   :  { %1060 = vmatpush.msra.mxu2 %v3106_v49  ;;  %1080 = vmatpush.msra.mxu3 %v3107_v54 }
 0x2e1   :  { %1021 = vmatpush.msra.mxu0 %v3108_v16  ;;  %1041 = vmatpush.msra.mxu1 %v3109_v6 }
 0x2e2   :  { %1061 = vmatpush.msra.mxu2 %v3110_v13  ;;  %1081 = vmatpush.msra.mxu3 %v3111_v14 }
 0x2e3   :  { %1022 = vmatpush.msra.mxu0 %v3112_v15  ;;  %1042 = vmatpush.msra.mxu1 %v3113_v20 }
 0x2e4   :  { %1062 = vmatpush.msra.mxu2 %v3114_v9  ;;  %1082 = vmatpush.msra.mxu3 %v3115_v19 }
 0x2e5   :  { %1023 = vmatpush.msra.mxu0 %v3116_v10  ;;  %1043 = vmatpush.msra.mxu1 %v3117_v17  ;;  %v3127_v10 = vld [vmem:[#allocation30_spill] sm:$0xff] }
 0x2e6   :  { %1063 = vmatpush.msra.mxu2 %v3118_v8  ;;  %1083 = vmatpush.msra.mxu3 %v3119_v4  ;;  %v1346_v4 = vld [vmem:[%s2888_s0 + $0x80] sm:$0xff] }
 0x2e7   :  { %1024 = vmatpush.msra.mxu0 %v3120_v1  ;;  %1044 = vmatpush.msra.mxu1 %v3121_v42  ;;  %v1347_v42 = vld [vmem:[%s2888_s0 + $0x88] sm:$0xff] }
 0x2e8   :  { %1064 = vmatpush.msra.mxu2 %v3122_v3  ;;  %1084 = vmatpush.msra.mxu3 %v3123_v18 }
 0x2e9   :  { %1025 = vmatpush.msra.mxu0 %v3124_v0  ;;  %1045 = vmatpush.msra.mxu1 %v3125_v11 }
 0x2ea   :  { %1065 = vmatpush.msra.mxu2 %v3126_v7  ;;  %1085 = vmatpush.msra.mxu3 %v3127_v10  ;;  %v1349_v7 = vld [vmem:[%s2888_s0 + $0x98] sm:$0xff] }
 0x346   :  { %v719_v1 = vpop.f32.mrf.mxu0  ;;  %v739_v3 = vpop.f32.mrf.mxu1 }
 0x347   :  { %v782_v8 = vadd.f32 %v1346_v4, %v719_v1  ;;  %v783_v18 = vadd.f32 %v1347_v42, %v739_v3 }
 0x349   :  { %v1350_v17 = vmul.f32 -1.442695, %v782_v8  ;;  %v1351_v0 = vmul.f32 -1.442695, %v783_v18  ;;  %v1348_v8 = vld [vmem:[%s2888_s0 + $0x90] sm:$0xff] }
 0x34b   :  { %1443 = vpow2.f32 %v1350_v17 }
 0x34c   :  { %1445 = vpow2.f32 %v1351_v0 }
 0x34d   :  { %v779_v10 = vpop.f32.mrf.mxu3  ;;  %v759_v17 = vpop.f32.mrf.mxu2 }
 0x34e   :  { %v785_v11 = vadd.f32 %v1349_v7, %v779_v10  ;;  %v784_v3 = vadd.f32 %v1348_v8, %v759_v17 }
 0x350   :  { %v1352_v19 = vmul.f32 -1.442695, %v785_v11 }
 0x351   :  { %v1444_v9 = vpop.eup %1443 }
 0x352   :  { %v1446_v20 = vpop.eup %1445  ;;  %v789_v15 = vadd.f32 1.0, %v1444_v9  ;;  %1447 = vpow2.f32 %v1352_v19 }
 0x353   :  { %v808_v14 = vadd.f32 1.0, %v1446_v20 }
 0x354   :  { %1449 = vrcp.f32 %v789_v15  ;;  %v801_v9 = vand.u32 2147483648, %v789_v15  ;;  %v799_v13 = vand.u32 2147483647, %v789_v15  ;;  %vm795_vm2 = vweird.f32 %v789_v15 }
 0x355   :  { %1451 = vrcp.f32 %v808_v14  ;;  %v820_v20 = vand.u32 2147483648, %v808_v14  ;;  %v818_v16 = vand.u32 2147483647, %v808_v14  ;;  %vm814_vm3 = vweird.f32 %v808_v14 }
 0x356   :  { %v802_v8 = vor.u32 1.1754944e-38, %v801_v9  ;;  %vm800_vm6 = vcmp.eq.f32.partialorder %v799_v13, 8.507059e+37 }
 0x357   :  { %vm819_vm7 = vcmp.eq.f32.partialorder %v818_v16, 8.507059e+37 }
 0x358   :  { %v1448_v4 = vpop.eup %1447 }
 0x359   :  { %v828_v1 = vadd.f32 1.0, %v1448_v4 }
 0x35a   :  { %v1450_v42 = vpop.eup %1449 }
 0x35b   :  { %v1452_v18 = vpop.eup %1451  ;;  %v791_v0 = vmul.f32 %v1450_v42, %v789_v15  ;;  %1453 = vrcp.f32 %v828_v1  ;;  %vm796_vm0 = vweird.f32 %v1450_v42  ;;  %vm834_vm9 = vweird.f32 %v828_v1 }
 0x35c   :  { %v810_v10 = vmul.f32 %v1452_v18, %v808_v14  ;;  %1455 = vtanh.f32 %v784_v3  ;;  %vm815_vm1 = vweird.f32 %v1452_v18  ;;  %vm797_vm4 = vmor %vm795_vm2, %vm796_vm0 }
 0x35d   :  { %v792_v11 = vsub.f32 1.0, %v791_v0  ;;  %vm816_vm5 = vmor %vm814_vm3, %vm815_vm1  ;;  %v821_v0 = vor.u32 1.1754944e-38, %v820_v20 }
 0x35e   :  { %v811_v7 = vsub.f32 1.0, %v810_v10 }
 0x35f   :  { %v793_v19 = vmul.f32 %v1450_v42, %v792_v11 }
 0x360   :  { %v812_v6 = vmul.f32 %v1452_v18, %v811_v7 }
 0x361   :  { %v1454_v54 = vpop.eup %1453  ;;  %v794_v49 = vadd.f32 %v1450_v42, %v793_v19 }
 0x362   :  { %v813_v17 = vadd.f32 %v1452_v18, %v812_v6  ;;  %v830_v4 = vmul.f32 %v1454_v54, %v828_v1  ;;  %v1456_v3 = vpop.eup %1455  ;;  %vm835_vm8 = vweird.f32 %v1454_v54  ;;  %v840_v6 = vand.u32 2147483648, %v828_v1 }
 0x363   :  { %v798_v10 = vsel %vm797_vm4, %v1450_v42, %v794_v49  ;;  %v838_v49 = vand.u32 2147483647, %v828_v1  ;;  %vm836_vm10 = vmor %vm834_vm9, %vm835_vm8 }
 0x364   :  { %v803_v59 = vsel %vm800_vm6, %v802_v8, %v798_v10  ;;  %v817_v11 = vsel %vm816_vm5, %v1452_v18, %v813_v17  ;;  %v831_v61 = vsub.f32 1.0, %v830_v4  ;;  %v841_v42 = vor.u32 1.1754944e-38, %v840_v6 }
 0x365   :  { %v822_v7 = vsel %vm819_vm7, %v821_v0, %v817_v11  ;;  %v845_v51 = vmul.f32 %v1456_v3, %v803_v59  ;;  %vm839_vm11 = vcmp.eq.f32.partialorder %v838_v49, 8.507059e+37  ;;  %v1356_v59 = vld [vmem:[%s2888_s0 + $0xb0] sm:$0xff] }
 0x366   :  { %v844_v12 = vmul.f32 %v822_v7, %v2680_v5  ;;  %v832_v19 = vmul.f32 %v1454_v54, %v831_v61 }
 0x368   :  { %v2763_v15 = vadd.f32 %v845_v51, %v844_v12  ;;  %v833_v14 = vadd.f32 %v1454_v54, %v832_v19 }
 0x36a   :  { %1457 = vtanh.f32 %v2763_v15  ;;  %v837_v13 = vsel %vm836_vm10, %v1454_v54, %v833_v14 }
 0x36b   :  { %v842_v18 = vsel %vm839_vm11, %v841_v42, %v837_v13 }
 0x370   :  { %v1458_v16 = vpop.eup %1457 }
 0x371   :  { %v848_v9 = vmul.f32 %v1458_v16, %v842_v18 }
 0x373   :  { %1353 = vst [vmem:[%s2889_s2 + $0x20] sm:$0xff] %v848_v9  ;;  %872 = vmatmul.f32.vlgmr.msrb.gmra.mxu0 %v848_v9  ;;  %892 = vmatmul.f32.vlgmr.msrb.gmra.mxu1 %v848_v9 }
 0x374   :  { %912 = vmatmul.f32.vlgmr.msrb.gmra.mxu2 %v848_v9  ;;  %932 = vmatmul.f32.vlgmr.msrb.gmra.mxu3 %v848_v9 }
 0x375   :  { %1164 = vmatpush.msrb.mxu0 %v2286_v50  ;;  %1184 = vmatpush.msrb.mxu1 %v2292_v21  ;;  %v3128_v50 = vld [vmem:[#allocation4_spill] sm:$0xff]  ;;  %v3129_v21 = vld [vmem:[#allocation18_spill] sm:$0xff] }
 0x376   :  { %1204 = vmatpush.msrb.mxu2 %v2298_v22  ;;  %1224 = vmatpush.msrb.mxu3 %v2304_v23  ;;  %v3130_v22 = vld [vmem:[#allocation5_spill] sm:$0xff]  ;;  %v3131_v23 = vld [vmem:[#allocation6_spill] sm:$0xff] }
 0x377   :  { %1165 = vmatpush.msrb.mxu0 %v2310_v24  ;;  %1185 = vmatpush.msrb.mxu1 %v2316_v25  ;;  %v3132_v24 = vld [vmem:[#allocation7_spill] sm:$0xff]  ;;  %v3133_v25 = vld [vmem:[#allocation22_spill] sm:$0xff] }
 0x378   :  { %1205 = vmatpush.msrb.mxu2 %v2322_v26  ;;  %1225 = vmatpush.msrb.mxu3 %v2328_v27  ;;  %v3134_v26 = vld [vmem:[#allocation8_spill] sm:$0xff]  ;;  %v3135_v27 = vld [vmem:[#allocation9_spill] sm:$0xff] }
 0x379   :  { %1166 = vmatpush.msrb.mxu0 %v2334_v28  ;;  %1186 = vmatpush.msrb.mxu1 %v2340_v29  ;;  %v3136_v28 = vld [vmem:[#allocation10_spill] sm:$0xff] }
 0x37a   :  { %1206 = vmatpush.msrb.mxu2 %v2346_v30  ;;  %1226 = vmatpush.msrb.mxu3 %v2352_v31  ;;  %v3137_v29 = vld [vmem:[#allocation26_spill] sm:$0xff]  ;;  %v3138_v30 = vld [vmem:[#allocation11_spill] sm:$0xff]  ;;  %v3139_v31 = vld [vmem:[#allocation12_spill] sm:$0xff] }
 0x37b   :  { %1167 = vmatpush.msrb.mxu0 %v2358_v32  ;;  %1187 = vmatpush.msrb.mxu1 %v2364_v33  ;;  %v3140_v32 = vld [vmem:[#allocation13_spill] sm:$0xff]  ;;  %v3141_v33 = vld [vmem:[#allocation27_spill] sm:$0xff] }
 0x37c   :  { %1207 = vmatpush.msrb.mxu2 %v2370_v35  ;;  %1227 = vmatpush.msrb.mxu3 %v2376_v39  ;;  %v3142_v35 = vld [vmem:[#allocation14_spill] sm:$0xff]  ;;  %v3143_v39 = vld [vmem:[#allocation15_spill] sm:$0xff] }
 0x37d   :  { %1168 = vmatpush.msrb.mxu0 %v2382_v43  ;;  %1188 = vmatpush.msrb.mxu1 %v2388_v47  ;;  %v3144_v43 = vld [vmem:[#allocation16_spill] sm:$0xff] }
 0x37e   :  { %1208 = vmatpush.msrb.mxu2 %v2394_v60  ;;  %1228 = vmatpush.msrb.mxu3 %v2400_v63  ;;  %v3145_v47 = vld [vmem:[#allocation28_spill] sm:$0xff]  ;;  %v3146_v60 = vld [vmem:[#allocation17_spill] sm:$0xff]  ;;  %v3147_v63 = vld [vmem:[#allocation19_spill] sm:$0xff] }
 0x37f   :  { %1169 = vmatpush.msrb.mxu0 %v2406_v34  ;;  %1189 = vmatpush.msrb.mxu1 %v2412_v36  ;;  %v3148_v34 = vld [vmem:[#allocation20_spill] sm:$0xff]  ;;  %v3149_v36 = vld [vmem:[#allocation29_spill] sm:$0xff] }
 0x380   :  { %1209 = vmatpush.msrb.mxu2 %v2418_v37  ;;  %1229 = vmatpush.msrb.mxu3 %v2424_v40  ;;  %v3150_v37 = vld [vmem:[#allocation21_spill] sm:$0xff]  ;;  %v3151_v40 = vld [vmem:[#allocation23_spill] sm:$0xff] }
 0x381   :  { %1170 = vmatpush.msrb.mxu0 %v2430_v56  ;;  %1190 = vmatpush.msrb.mxu1 %v2436_v45  ;;  %v3152_v56 = vld [vmem:[#allocation24_spill] sm:$0xff]  ;;  %v3153_v45 = vld [vmem:[#allocation30_spill] sm:$0xff] }
 0x382   :  { %1210 = vmatpush.msrb.mxu2 %v2442_v53  ;;  %1230 = vmatpush.msrb.mxu3 %v2448_v46  ;;  %v1354_v53 = vld [vmem:[%s2888_s0 + $0xa0] sm:$0xff]  ;;  %v1355_v46 = vld [vmem:[%s2888_s0 + $0xa8] sm:$0xff] }
 0x383   :  { %1171 = vmatpush.msrb.mxu0 %v2454_v62  ;;  %1191 = vmatpush.msrb.mxu1 %v2460_v44 }
 0x384   :  { %1211 = vmatpush.msrb.mxu2 %v2466_v57  ;;  %1231 = vmatpush.msrb.mxu3 %v2472_v2 }
 0x385   :  { %1172 = vmatpush.msrb.mxu0 %v2478_v38  ;;  %1192 = vmatpush.msrb.mxu1 %v2484_v55 }
 0x386   :  { %1212 = vmatpush.msrb.mxu2 %v2490_v41  ;;  %1232 = vmatpush.msrb.mxu3 %v2496_v58  ;;  %v1357_v41 = vld [vmem:[%s2888_s0 + $0xb8] sm:$0xff] }
 0x387   :  { %1173 = vmatpush.msrb.mxu0 %v2502_v52  ;;  %1193 = vmatpush.msrb.mxu1 %v2508_v48 }
 0x388   :  { %1213 = vmatpush.msrb.mxu2 %v3128_v50  ;;  %1233 = vmatpush.msrb.mxu3 %v3129_v21 }
 0x389   :  { %1174 = vmatpush.msrb.mxu0 %v3130_v22  ;;  %1194 = vmatpush.msrb.mxu1 %v3131_v23 }
 0x38a   :  { %1214 = vmatpush.msrb.mxu2 %v3132_v24  ;;  %1234 = vmatpush.msrb.mxu3 %v3133_v25 }
 0x38b   :  { %1175 = vmatpush.msrb.mxu0 %v3134_v26  ;;  %1195 = vmatpush.msrb.mxu1 %v3135_v27 }
 0x38c   :  { %1215 = vmatpush.msrb.mxu2 %v3136_v28  ;;  %1235 = vmatpush.msrb.mxu3 %v3137_v29 }
 0x38d   :  { %1176 = vmatpush.msrb.mxu0 %v3138_v30  ;;  %1196 = vmatpush.msrb.mxu1 %v3139_v31 }
 0x38e   :  { %1216 = vmatpush.msrb.mxu2 %v3140_v32  ;;  %1236 = vmatpush.msrb.mxu3 %v3141_v33 }
 0x38f   :  { %1177 = vmatpush.msrb.mxu0 %v3142_v35  ;;  %1197 = vmatpush.msrb.mxu1 %v3143_v39 }
 0x390   :  { %1217 = vmatpush.msrb.mxu2 %v3144_v43  ;;  %1237 = vmatpush.msrb.mxu3 %v3145_v47 }
 0x391   :  { %1178 = vmatpush.msrb.mxu0 %v3146_v60  ;;  %1198 = vmatpush.msrb.mxu1 %v3147_v63 }
 0x392   :  { %1218 = vmatpush.msrb.mxu2 %v3148_v34  ;;  %1238 = vmatpush.msrb.mxu3 %v3149_v36  ;;  %v1363_v34 = vld [vmem:[%s2888_s0 + $0xc8] sm:$0xff] }
 0x393   :  { %1179 = vmatpush.msrb.mxu0 %v3150_v37  ;;  %1199 = vmatpush.msrb.mxu1 %v3151_v40 }
 0x394   :  { %1219 = vmatpush.msrb.mxu2 %v3152_v56  ;;  %1239 = vmatpush.msrb.mxu3 %v3153_v45 }
 0x3f0   :  { %v873_v62 = vpop.f32.mrf.mxu0  ;;  %v893_v44 = vpop.f32.mrf.mxu1 }
 0x3f1   :  { %v936_v57 = vadd.f32 %v1354_v53, %v873_v62  ;;  %v937_v2 = vadd.f32 %v1355_v46, %v893_v44  ;;  %v1365_v46 = vld [vmem:[%s2888_s0 + $0xd8] sm:$0xff] }
 0x3f3   :  { %v1358_v38 = vmul.f32 -1.442695, %v936_v57  ;;  %v1359_v55 = vmul.f32 -1.442695, %v937_v2 }
 0x3f5   :  { %1459 = vpow2.f32 %v1358_v38 }
 0x3f6   :  { %1461 = vpow2.f32 %v1359_v55 }
 0x3f7   :  { %v933_v58 = vpop.f32.mrf.mxu3  ;;  %v913_v54 = vpop.f32.mrf.mxu2 }
 0x3f8   :  { %v939_v52 = vadd.f32 %v1357_v41, %v933_v58  ;;  %v938_v17 = vadd.f32 %v1356_v59, %v913_v54  ;;  %v1364_v58 = vld [vmem:[%s2888_s0 + $0xd0] sm:$0xff] }
 0x3fa   :  { %v1360_v48 = vmul.f32 -1.442695, %v939_v52 }
 0x3fb   :  { %v1460_v5 = vpop.eup %1459 }
 0x3fc   :  { %v1462_v12 = vpop.eup %1461  ;;  %v943_v51 = vadd.f32 1.0, %v1460_v5  ;;  %1463 = vpow2.f32 %v1360_v48 }
 0x3fd   :  { %v962_v61 = vadd.f32 1.0, %v1462_v12 }
 0x3fe   :  { %1465 = vrcp.f32 %v943_v51  ;;  %v955_v7 = vand.u32 2147483648, %v943_v51  ;;  %v953_v6 = vand.u32 2147483647, %v943_v51  ;;  %vm949_vm14 = vweird.f32 %v943_v51 }
 0x3ff   :  { %1467 = vrcp.f32 %v962_v61  ;;  %v974_v19 = vand.u32 2147483648, %v962_v61  ;;  %v972_v13 = vand.u32 2147483647, %v962_v61  ;;  %vm968_vm15 = vweird.f32 %v962_v61 }
 0x400   :  { %v956_v18 = vor.u32 1.1754944e-38, %v955_v7  ;;  %vm954_vm2 = vcmp.eq.f32.partialorder %v953_v6, 8.507059e+37 }
 0x401   :  { %v975_v21 = vor.u32 1.1754944e-38, %v974_v19  ;;  %vm973_vm3 = vcmp.eq.f32.partialorder %v972_v13, 8.507059e+37 }
 0x402   :  { %v1464_v1 = vpop.eup %1463 }
 0x403   :  { %v982_v20 = vadd.f32 1.0, %v1464_v1 }
 0x404   :  { %v1466_v8 = vpop.eup %1465 }
 0x405   :  { %v1468_v4 = vpop.eup %1467  ;;  %v945_v0 = vmul.f32 %v1466_v8, %v943_v51  ;;  %1469 = vrcp.f32 %v982_v20  ;;  %vm950_vm12 = vweird.f32 %v1466_v8  ;;  %v994_v33 = vand.u32 2147483648, %v982_v20 }
 0x406   :  { %v964_v10 = vmul.f32 %v1468_v4, %v962_v61  ;;  %1471 = vtanh.f32 %v938_v17  ;;  %vm969_vm13 = vweird.f32 %v1468_v4  ;;  %vm951_vm0 = vmor %vm949_vm14, %vm950_vm12  ;;  %vm988_vm5 = vweird.f32 %v982_v20 }
 0x407   :  { %v946_v3 = vsub.f32 1.0, %v945_v0  ;;  %vm970_vm1 = vmor %vm968_vm15, %vm969_vm13  ;;  %v992_v35 = vand.u32 2147483647, %v982_v20  ;;  %v995_v43 = vor.u32 1.1754944e-38, %v994_v33 }
 0x408   :  { %v965_v11 = vsub.f32 1.0, %v964_v10 }
 0x409   :  { %v947_v14 = vmul.f32 %v1466_v8, %v946_v3  ;;  %vm993_vm7 = vcmp.eq.f32.partialorder %v992_v35, 8.507059e+37  ;;  %v1371_v35 = vld [vmem:[%s2888_s0 + $0xe8] sm:$0xff] }
 0x40a   :  { %v966_v49 = vmul.f32 %v1468_v4, %v965_v11 }
 0x40b   :  { %v1470_v42 = vpop.eup %1469  ;;  %v948_v16 = vadd.f32 %v1466_v8, %v947_v14 }
 0x40c   :  { %v967_v9 = vadd.f32 %v1468_v4, %v966_v49  ;;  %v984_v50 = vmul.f32 %v1470_v42, %v982_v20  ;;  %v1472_v23 = vpop.eup %1471  ;;  %vm989_vm4 = vweird.f32 %v1470_v42 }
 0x40d   :  { %v952_v22 = vsel %vm951_vm0, %v1466_v8, %v948_v16  ;;  %vm990_vm6 = vmor %vm988_vm5, %vm989_vm4 }
 0x40e   :  { %v957_v24 = vsel %vm954_vm2, %v956_v18, %v952_v22  ;;  %v971_v25 = vsel %vm970_vm1, %v1468_v4, %v967_v9  ;;  %v985_v26 = vsub.f32 1.0, %v984_v50 }
 0x40f   :  { %v976_v27 = vsel %vm973_vm3, %v975_v21, %v971_v25  ;;  %v999_v28 = vmul.f32 %v1472_v23, %v957_v24 }
 0x410   :  { %v998_v29 = vmul.f32 %v976_v27, %v2763_v15  ;;  %v986_v30 = vmul.f32 %v1470_v42, %v985_v26  ;;  %v1362_v15 = vld [vmem:[%s2888_s0 + $0xc0] sm:$0xff] }
 0x412   :  { %v2846_v31 = vadd.f32 %v999_v28, %v998_v29  ;;  %v987_v32 = vadd.f32 %v1470_v42, %v986_v30 }
 0x414   :  { %1473 = vtanh.f32 %v2846_v31  ;;  %v991_v39 = vsel %vm990_vm6, %v1470_v42, %v987_v32 }
 0x415   :  { %v996_v60 = vsel %vm993_vm7, %v995_v43, %v991_v39 }
 0x41a   :  { %v1474_v47 = vpop.eup %1473 }
 0x41b   :  { %v1002_v63 = vmul.f32 %v1474_v47, %v996_v60 }
 0x41d   :  { %1361 = vst [vmem:[%s2889_s2 + $0x28] sm:$0xff] %v1002_v63  ;;  %1026 = vmatmul.f32.vlgmr.msra.gmra.mxu0 %v1002_v63  ;;  %1046 = vmatmul.f32.vlgmr.msra.gmra.mxu1 %v1002_v63 }
 0x41e   :  { %1066 = vmatmul.f32.vlgmr.msra.gmra.mxu2 %v1002_v63  ;;  %1086 = vmatmul.f32.vlgmr.msra.gmra.mxu3 %v1002_v63 }
 0x49a   :  { %v1027_v36 = vpop.f32.mrf.mxu0  ;;  %v1047_v37 = vpop.f32.mrf.mxu1 }
 0x49b   :  { %v1090_v40 = vadd.f32 %v1362_v15, %v1027_v36  ;;  %v1091_v56 = vadd.f32 %v1363_v34, %v1047_v37  ;;  %v1373_v34 = vld [vmem:[%s2888_s0 + $0xf8] sm:$0xff] }
 0x49d   :  { %v1366_v45 = vmul.f32 -1.442695, %v1090_v40  ;;  %v1367_v53 = vmul.f32 -1.442695, %v1091_v56 }
 0x49f   :  { %1475 = vpow2.f32 %v1366_v45 }
 0x4a0   :  { %1477 = vpow2.f32 %v1367_v53 }
 0x4a1   :  { %v1087_v62 = vpop.f32.mrf.mxu3  ;;  %v1067_v52 = vpop.f32.mrf.mxu2 }
 0x4a2   :  { %v1093_v44 = vadd.f32 %v1365_v46, %v1087_v62  ;;  %v1092_v51 = vadd.f32 %v1364_v58, %v1067_v52  ;;  %v1372_v62 = vld [vmem:[%s2888_s0 + $0xf0] sm:$0xff] }
 0x4a4   :  { %v1368_v57 = vmul.f32 -1.442695, %v1093_v44 }
 0x4a5   :  { %v1476_v2 = vpop.eup %1475 }
 0x4a6   :  { %v1478_v38 = vpop.eup %1477  ;;  %v1097_v55 = vadd.f32 1.0, %v1476_v2  ;;  %1479 = vpow2.f32 %v1368_v57 }
 0x4a7   :  { %v1116_v41 = vadd.f32 1.0, %v1478_v38 }
 0x4a8   :  { %1481 = vrcp.f32 %v1097_v55  ;;  %v1109_v8 = vand.u32 2147483648, %v1097_v55  ;;  %v1107_v0 = vand.u32 2147483647, %v1097_v55  ;;  %vm1103_vm10 = vweird.f32 %v1097_v55 }
 0x4a9   :  { %1483 = vrcp.f32 %v1116_v41  ;;  %v1128_v17 = vand.u32 2147483648, %v1116_v41  ;;  %v1126_v3 = vand.u32 2147483647, %v1116_v41  ;;  %vm1122_vm11 = vweird.f32 %v1116_v41 }
 0x4aa   :  { %v1110_v19 = vor.u32 1.1754944e-38, %v1109_v8  ;;  %vm1108_vm14 = vcmp.eq.f32.partialorder %v1107_v0, 8.507059e+37 }
 0x4ab   :  { %v1129_v49 = vor.u32 1.1754944e-38, %v1128_v17  ;;  %vm1127_vm15 = vcmp.eq.f32.partialorder %v1126_v3, 8.507059e+37 }
 0x4ac   :  { %v1480_v48 = vpop.eup %1479 }
 0x4ad   :  { %v1136_v5 = vadd.f32 1.0, %v1480_v48 }
 0x4ae   :  { %v1482_v12 = vpop.eup %1481 }
 0x4af   :  { %v1484_v61 = vpop.eup %1483  ;;  %v1099_v59 = vmul.f32 %v1482_v12, %v1097_v55  ;;  %1485 = vrcp.f32 %v1136_v5  ;;  %vm1104_vm8 = vweird.f32 %v1482_v12  ;;  %v1148_v26 = vand.u32 2147483648, %v1136_v5 }
 0x4b0   :  { %v1118_v54 = vmul.f32 %v1484_v61, %v1116_v41  ;;  %1487 = vtanh.f32 %v1092_v51  ;;  %vm1123_vm9 = vweird.f32 %v1484_v61  ;;  %vm1105_vm12 = vmor %vm1103_vm10, %vm1104_vm8  ;;  %vm1142_vm1 = vweird.f32 %v1136_v5 }
 0x4b1   :  { %v1100_v1 = vsub.f32 1.0, %v1099_v59  ;;  %vm1124_vm13 = vmor %vm1122_vm11, %vm1123_vm9  ;;  %v1146_v27 = vand.u32 2147483647, %v1136_v5  ;;  %v1149_v29 = vor.u32 1.1754944e-38, %v1148_v26 }
 0x4b2   :  { %v1119_v20 = vsub.f32 1.0, %v1118_v54 }
 0x4b3   :  { %v1101_v4 = vmul.f32 %v1482_v12, %v1100_v1  ;;  %vm1147_vm3 = vcmp.eq.f32.partialorder %v1146_v27, 8.507059e+37 }
 0x4b4   :  { %v1120_v10 = vmul.f32 %v1484_v61, %v1119_v20 }
 0x4b5   :  { %v1486_v11 = vpop.eup %1485  ;;  %v1102_v7 = vadd.f32 %v1482_v12, %v1101_v4 }
 0x4b6   :  { %v1121_v14 = vadd.f32 %v1484_v61, %v1120_v10  ;;  %v1138_v6 = vmul.f32 %v1486_v11, %v1136_v5  ;;  %v1488_v42 = vpop.eup %1487  ;;  %vm1143_vm0 = vweird.f32 %v1486_v11 }
 0x4b7   :  { %v1106_v13 = vsel %vm1105_vm12, %v1482_v12, %v1102_v7  ;;  %vm1144_vm2 = vmor %vm1142_vm1, %vm1143_vm0 }
 0x4b8   :  { %v1111_v16 = vsel %vm1108_vm14, %v1110_v19, %v1106_v13  ;;  %v1125_v18 = vsel %vm1124_vm13, %v1484_v61, %v1121_v14  ;;  %v1139_v9 = vsub.f32 1.0, %v1138_v6 }
 0x4b9   :  { %v1130_v50 = vsel %vm1127_vm15, %v1129_v49, %v1125_v18  ;;  %v1153_v21 = vmul.f32 %v1488_v42, %v1111_v16 }
 0x4ba   :  { %v1152_v22 = vmul.f32 %v1130_v50, %v2846_v31  ;;  %v1140_v23 = vmul.f32 %v1486_v11, %v1139_v9  ;;  %v1370_v31 = vld [vmem:[%s2888_s0 + $0xe0] sm:$0xff] }
 0x4bc   :  { %v2865_v24 = vadd.f32 %v1153_v21, %v1152_v22  ;;  %v1141_v25 = vadd.f32 %v1486_v11, %v1140_v23 }
 0x4be   :  { %1489 = vtanh.f32 %v2865_v24  ;;  %v1145_v28 = vsel %vm1144_vm2, %v1486_v11, %v1141_v25 }
 0x4bf   :  { %v1150_v32 = vsel %vm1147_vm3, %v1149_v29, %v1145_v28 }
 0x4c4   :  { %v1490_v30 = vpop.eup %1489 }
 0x4c5   :  { %v1156_v33 = vmul.f32 %v1490_v30, %v1150_v32 }
 0x4c7   :  { %1369 = vst [vmem:[%s2889_s2 + $0x30] sm:$0xff] %v1156_v33  ;;  %1180 = vmatmul.f32.vlgmr.msrb.gmra.mxu0 %v1156_v33  ;;  %1200 = vmatmul.f32.vlgmr.msrb.gmra.mxu1 %v1156_v33 }
 0x4c8   :  { %1220 = vmatmul.f32.vlgmr.msrb.gmra.mxu2 %v1156_v33  ;;  %1240 = vmatmul.f32.vlgmr.msrb.gmra.mxu3 %v1156_v33 }
 0x544   :  { %v1181_v39 = vpop.f32.mrf.mxu0  ;;  %v1201_v43 = vpop.f32.mrf.mxu1 }
 0x545   :  { %v1244_v47 = vadd.f32 %v1370_v31, %v1181_v39  ;;  %v1245_v60 = vadd.f32 %v1371_v35, %v1201_v43 }
 0x547   :  { %v1374_v63 = vmul.f32 -1.442695, %v1244_v47  ;;  %v1375_v15 = vmul.f32 -1.442695, %v1245_v60 }
 0x549   :  { %1491 = vpow2.f32 %v1374_v63 }
 0x54a   :  { %1493 = vpow2.f32 %v1375_v15 }
 0x54b   :  { %v1241_v36 = vpop.f32.mrf.mxu3  ;;  %v1221_v44 = vpop.f32.mrf.mxu2 }
 0x54c   :  { %v1247_v37 = vadd.f32 %v1373_v34, %v1241_v36  ;;  %v1246_v55 = vadd.f32 %v1372_v62, %v1221_v44 }
 0x54e   :  { %v1376_v40 = vmul.f32 -1.442695, %v1247_v37 }
 0x54f   :  { %v1492_v56 = vpop.eup %1491 }
 0x550   :  { %v1494_v45 = vpop.eup %1493  ;;  %v1251_v53 = vadd.f32 1.0, %v1492_v56  ;;  %1495 = vpow2.f32 %v1376_v40 }
 0x551   :  { %v1270_v46 = vadd.f32 1.0, %v1494_v45 }
 0x552   :  { %1497 = vrcp.f32 %v1251_v53  ;;  %v1263_v12 = vand.u32 2147483648, %v1251_v53  ;;  %v1261_v59 = vand.u32 2147483647, %v1251_v53  ;;  %vm1257_vm6 = vweird.f32 %v1251_v53 }
 0x553   :  { %1499 = vrcp.f32 %v1270_v46  ;;  %v1282_v51 = vand.u32 2147483648, %v1270_v46  ;;  %v1280_v1 = vand.u32 2147483647, %v1270_v46  ;;  %vm1276_vm7 = vweird.f32 %v1270_v46 }
 0x554   :  { %v1264_v17 = vor.u32 1.1754944e-38, %v1263_v12  ;;  %vm1262_vm10 = vcmp.eq.f32.partialorder %v1261_v59, 8.507059e+37 }
 0x555   :  { %v1283_v10 = vor.u32 1.1754944e-38, %v1282_v51  ;;  %vm1281_vm11 = vcmp.eq.f32.partialorder %v1280_v1, 8.507059e+37 }
 0x556   :  { %v1496_v57 = vpop.eup %1495 }
 0x557   :  { %v1290_v2 = vadd.f32 1.0, %v1496_v57 }
 0x558   :  { %v1498_v38 = vpop.eup %1497 }
 0x559   :  { %v1500_v41 = vpop.eup %1499  ;;  %v1253_v58 = vmul.f32 %v1498_v38, %v1251_v53  ;;  %1501 = vrcp.f32 %v1290_v2  ;;  %vm1258_vm4 = vweird.f32 %v1498_v38  ;;  %v1302_v9 = vand.u32 2147483648, %v1290_v2 }
 0x55a   :  { %v1272_v52 = vmul.f32 %v1500_v41, %v1270_v46  ;;  %1503 = vtanh.f32 %v1246_v55  ;;  %vm1277_vm5 = vweird.f32 %v1500_v41  ;;  %vm1259_vm8 = vmor %vm1257_vm6, %vm1258_vm4  ;;  %vm1296_vm13 = vweird.f32 %v1290_v2 }
 0x55b   :  { %v1254_v48 = vsub.f32 1.0, %v1253_v58  ;;  %vm1278_vm9 = vmor %vm1276_vm7, %vm1277_vm5  ;;  %v1300_v50 = vand.u32 2147483647, %v1290_v2  ;;  %v1303_v22 = vor.u32 1.1754944e-38, %v1302_v9 }
 0x55c   :  { %v1273_v5 = vsub.f32 1.0, %v1272_v52 }
 0x55d   :  { %v1255_v61 = vmul.f32 %v1498_v38, %v1254_v48  ;;  %vm1301_vm15 = vcmp.eq.f32.partialorder %v1300_v50, 8.507059e+37 }
 0x55e   :  { %v1274_v54 = vmul.f32 %v1500_v41, %v1273_v5 }
 0x55f   :  { %v1502_v20 = vpop.eup %1501  ;;  %v1256_v8 = vadd.f32 %v1498_v38, %v1255_v61 }
 0x560   :  { %v1275_v4 = vadd.f32 %v1500_v41, %v1274_v54  ;;  %v1292_v0 = vmul.f32 %v1502_v20, %v1290_v2  ;;  %v1504_v11 = vpop.eup %1503  ;;  %vm1297_vm12 = vweird.f32 %v1502_v20 }
 0x561   :  { %v1260_v3 = vsel %vm1259_vm8, %v1498_v38, %v1256_v8  ;;  %vm1298_vm14 = vmor %vm1296_vm13, %vm1297_vm12 }
 0x562   :  { %v1265_v7 = vsel %vm1262_vm10, %v1264_v17, %v1260_v3  ;;  %v1279_v19 = vsel %vm1278_vm9, %v1500_v41, %v1275_v4  ;;  %v1293_v14 = vsub.f32 1.0, %v1292_v0 }
 0x563   :  { %v1284_v6 = vsel %vm1281_vm11, %v1283_v10, %v1279_v19  ;;  %v1307_v49 = vmul.f32 %v1504_v11, %v1265_v7 }
 0x564   :  { %v1306_v13 = vmul.f32 %v1284_v6, %v2865_v24  ;;  %v1294_v42 = vmul.f32 %v1502_v20, %v1293_v14 }
 0x566   :  { %v1308_v16 = vadd.f32 %v1307_v49, %v1306_v13  ;;  %v1295_v18 = vadd.f32 %v1502_v20, %v1294_v42 }
 0x568   :  { %1505 = vtanh.f32 %v1308_v16  ;;  %v1299_v21 = vsel %vm1298_vm14, %v1502_v20, %v1295_v18 }
 0x569   :  { %v1304_v25 = vsel %vm1301_vm15, %v1303_v22, %v1299_v21 }
 0x56e   :  { %v1506_v23 = vpop.eup %1505 }
 0x56f   :  { %v1310_v26 = vmul.f32 %v1506_v23, %v1304_v25 }
 0x571   :  { %1377 = vst [vmem:[%s2889_s2 + $0x38] sm:$0xff] %v1310_v26 }

</bundles_post_ra>
